<compile_context>
chip_gen: v7x
topology: tpu7x:2x2x1
jax: 0.10.0
libtpu: 0.0.40
codegen_flags: <defaults>
</compile_context>

<pallas_src>
import jax
import jax.numpy as jnp
from jax.experimental import pallas as pl
from jax.experimental.pallas import tpu as pltpu

EPS = 1e-5
D_IN, D1, D2, D3, D_OUT = 1024, 512, 256, 128, 2048 * 3
TN = 1536                     # fc4 output tile (multiple of 128); 6144/1536 = 4
N_TILES = D_OUT // TN         # 4
HALF = N_TILES // 2           # inner ("arbitrary") grid extent -> 2 tiles/core


def _bn_relu(h, gamma, beta):
    """Training-mode BatchNorm1d (biased variance) + ReLU, single pass over h.

    h: f32 [B, F]; gamma/beta: f32 [1, F]. var = E[h^2] - mean^2 (f32).
    Folded to one FMA + max. Returns bf16 [B, F].
    """
    mean = jnp.mean(h, axis=0, keepdims=True)
    mean_sq = jnp.mean(h * h, axis=0, keepdims=True)
    var = mean_sq - mean * mean
    scale = gamma * jax.lax.rsqrt(var + EPS)                    # [1, F]
    shift = beta - mean * scale                                 # [1, F]
    return jnp.maximum(h * scale + shift, 0.0).astype(jnp.bfloat16)


def decoder_kernel(
    x_ref,
    w1_ref, g1_ref, be1_ref,
    w2_ref, g2_ref, be2_ref,
    w3_ref, g3_ref, be3_ref,
    w4_ref, b4_ref,
    o_ref,
    h3_ref,            # VMEM scratch [B, 128] bf16: fc3+BN+ReLU activations
):
    # Prefix computed once per TensorCore: gated on the inner ("arbitrary")
    # grid index, so with the outer "parallel" axis each v7x core runs it
    # exactly once before streaming its fc4 tiles; on single-TC chips it runs
    # twice (negligible). b1/b2/b3 omitted: cancelled by train-mode BN.
    @pl.when(pl.program_id(1) == 0)
    def _():
        h = jnp.dot(x_ref[...], w1_ref[...], preferred_element_type=jnp.float32)
        h = _bn_relu(h, g1_ref[...], be1_ref[...])
        h = jnp.dot(h, w2_ref[...], preferred_element_type=jnp.float32)
        h = _bn_relu(h, g2_ref[...], be2_ref[...])
        h = jnp.dot(h, w3_ref[...], preferred_element_type=jnp.float32)
        h3_ref[...] = _bn_relu(h, g3_ref[...], be3_ref[...])

    # fc4 tile: [B, 128] @ [128, TN] + b4[:, tile], tanh.
    y = jnp.dot(h3_ref[...], w4_ref[...], preferred_element_type=jnp.float32)
    o_ref[...] = jnp.tanh(y + b4_ref[...])


def prepare_params(params):
    """One-time conversion to kernel layout: bf16 weight master copies, f32 BN
    affine params and fc4 bias. b1/b2/b3 dropped (cancelled by train-mode BN).
    Call once (outside the per-step forward)."""
    (w1, b1, g1, be1,
     w2, b2, g2, be2,
     w3, b3, g3, be3,
     w4, b4) = params
    del b1, b2, b3
    bf = lambda w: w.astype(jnp.bfloat16)
    return (bf(w1), g1, be1, bf(w2), g2, be2, bf(w3), g3, be3, bf(w4), b4)


@jax.jit
def decoder_forward(x, kparams):
    """x: [B, ...] flattened to [B, 1024]. kparams from prepare_params().
    Returns [B, 3, 2048] (f32)."""
    B = x.shape[0]
    x2d = x.reshape(B, -1)
    assert x2d.shape[1] == D_IN
    x_bf = x2d.astype(jnp.bfloat16)     # tiny per-call cast (x changes per call)

    (w1, g1, be1, w2, g2, be2, w3, g3, be3, w4, b4) = kparams

    def resident(shape):
        # Constant block index -> fetched once, stays resident in VMEM.
        return pl.BlockSpec(shape, lambda j0, j1: (0, 0))

    def tiled(shape):
        # Global fc4-output tile index = j0 * HALF + j1.
        return pl.BlockSpec(shape, lambda j0, j1: (0, j0 * HALF + j1))

    flops = 2 * B * (D_IN * D1 + D1 * D2 + D2 * D3 + D3 * D_OUT)
    transcendentals = B * D_OUT + 3 * (D1 + D2 + D3)
    bytes_accessed = (
        2 * (D_IN * D1 + D1 * D2 + D2 * D3 + D3 * D_OUT)   # bf16 weights
        + 4 * D_OUT                                          # b4 (f32)
        + 4 * 2 * (D1 + D2 + D3)                             # BN gamma/beta
        + 2 * B * D_IN                                       # x (bf16)
        + 4 * B * D_OUT)                                     # output (f32)

    out = pl.pallas_call(
        decoder_kernel,
        out_shape=jax.ShapeDtypeStruct((B, D_OUT), jnp.float32),
        grid=(2, HALF),
        in_specs=[
            resident((B, D_IN)),
            resident((D_IN, D1)), resident((1, D1)), resident((1, D1)),
            resident((D1, D2)), resident((1, D2)), resident((1, D2)),
            resident((D2, D3)), resident((1, D3)), resident((1, D3)),
            tiled((D3, TN)),    # w4 tile
            tiled((1, TN)),     # b4 tile
        ],
        out_specs=tiled((B, TN)),
        scratch_shapes=[pltpu.VMEM((B, D3), jnp.bfloat16)],
        compiler_params=pltpu.CompilerParams(
            dimension_semantics=("parallel", "arbitrary"),
            vmem_limit_bytes=32 << 20,   # legal on v5e/v6e/v7x; footprint ~3 MiB
        ),
        cost_estimate=pl.CostEstimate(
            flops=flops,
            transcendentals=transcendentals,
            bytes_accessed=bytes_accessed,
        ),
    )(x_bf, w1, g1, be1, w2, g2, be2, w3, g3, be3, w4, b4)

    return out.reshape(-1, 3, 2048)


def init_params(key):
    """PyTorch-style init; Linear weights stored transposed as [in, out]."""
    dims = [(D_IN, D1), (D1, D2), (D2, D3), (D3, D_OUT)]
    keys = jax.random.split(key, 2 * len(dims))
    lin = []
    for i, (fan_in, fan_out) in enumerate(dims):
        bound = 1.0 / jnp.sqrt(fan_in)
        w = jax.random.uniform(keys[2 * i], (fan_in, fan_out), jnp.float32,
                               -bound, bound)
        b = jax.random.uniform(keys[2 * i + 1], (1, fan_out), jnp.float32,
                               -bound, bound)
        lin.append((w, b))
    (w1, b1), (w2, b2), (w3, b3), (w4, b4) = lin
    g1, be1 = jnp.ones((1, D1), jnp.float32), jnp.zeros((1, D1), jnp.float32)
    g2, be2 = jnp.ones((1, D2), jnp.float32), jnp.zeros((1, D2), jnp.float32)
    g3, be3 = jnp.ones((1, D3), jnp.float32), jnp.zeros((1, D3), jnp.float32)
    return (w1, b1, g1, be1, w2, b2, g2, be2, w3, b3, g3, be3, w4, b4)


def decoder_reference(x, params, compute_dtype=jnp.float32):
    """Pure-JAX reference mirroring the PyTorch forward (training-mode BN,
    biases b1..b3 included as in the module). compute_dtype=bfloat16 gives a
    dtype-matched reference for the kernel's bf16 matmul path."""
    (w1, b1, g1, be1,
     w2, b2, g2, be2,
     w3, b3, g3, be3,
     w4, b4) = params
    h = x.reshape(x.shape[0], -1).astype(jnp.float32)

    def dot(a, w):
        return jnp.dot(a.astype(compute_dtype), w.astype(compute_dtype),
                       preferred_element_type=jnp.float32)

    def bn_relu(h, g, be):
        m = jnp.mean(h, axis=0, keepdims=True)
        v = jnp.mean((h - m) ** 2, axis=0, keepdims=True)
        return jnp.maximum((h - m) / jnp.sqrt(v + EPS) * g + be, 0.0)

    h = bn_relu(dot(h, w1) + b1, g1, be1)
    h = bn_relu(dot(h, w2) + b2, g2, be2)
    h = bn_relu(dot(h, w3) + b3, g3, be3)
    h = jnp.tanh(dot(h, w4) + b4)
    return h.reshape(-1, 3, 2048)


if __name__ == "__main__":
    key = jax.random.PRNGKey(0)
    pkey, xkey = jax.random.split(key)

    params = init_params(pkey)
    kparams = prepare_params(params)   # one-time bf16 weight conversion

    # Small batch; the forward's view() implies 1024 input features.
    B = 8
    x = jax.random.normal(xkey, (B, D_IN), jnp.float32)

    out = decoder_forward(x, kparams)
    out = jax.block_until_ready(out)
    assert out.shape == (B, 3, 2048), out.shape

    # dtype-matched (bf16 matmul) reference: should agree closely.
    ref_bf16 = decoder_reference(x, params, compute_dtype=jnp.bfloat16)
    err_bf16 = jnp.max(jnp.abs(out - ref_bf16))
    assert err_bf16 < 2e-2, f"max abs error vs bf16-matched ref {err_bf16}"

    # full-f32 reference: looser tolerance (bf16 weight quantization).
    ref_f32 = decoder_reference(x, params, compute_dtype=jnp.float32)
    err_f32 = jnp.max(jnp.abs(out - ref_f32))
    assert err_f32 < 5e-2, f"max abs error vs f32 ref {err_f32}"

    print("KERNEL_OK")
</pallas_src>

<mosaic_0001>
module attributes {stable_mosaic.version = 11 : i64} {
  func.func @decoder_kernel(%arg0: i32, %arg1: i32, %arg2: memref<8x1024xbf16, #tpu.memory_space<vmem>>, %arg3: memref<1024x512xbf16, #tpu.memory_space<vmem>>, %arg4: memref<1x512xf32, #tpu.memory_space<vmem>>, %arg5: memref<1x512xf32, #tpu.memory_space<vmem>>, %arg6: memref<512x256xbf16, #tpu.memory_space<vmem>>, %arg7: memref<1x256xf32, #tpu.memory_space<vmem>>, %arg8: memref<1x256xf32, #tpu.memory_space<vmem>>, %arg9: memref<256x128xbf16, #tpu.memory_space<vmem>>, %arg10: memref<1x128xf32, #tpu.memory_space<vmem>>, %arg11: memref<1x128xf32, #tpu.memory_space<vmem>>, %arg12: memref<128x1536xbf16, #tpu.memory_space<vmem>>, %arg13: memref<1x1536xf32, #tpu.memory_space<vmem>>, %arg14: memref<8x1536xf32, #tpu.memory_space<vmem>>, %arg15: memref<8x128xbf16, #tpu.memory_space<vmem>>) attributes {dimension_semantics = [#tpu.dimension_semantics<parallel>, #tpu.dimension_semantics<arbitrary>], iteration_bounds = array<i64: 2, 2>, scalar_prefetch = 0 : i64, scratch_operands = 1 : i64, tpu.core_type = #tpu.core_type<tc>, window_params = [{pipeline_mode = #tpu.pipeline_mode<synchronous>, transform_indices = @transform_0, window_bounds = array<i64: 8, 1024>}, {pipeline_mode = #tpu.pipeline_mode<synchronous>, transform_indices = @transform_1, window_bounds = array<i64: 1024, 512>}, {pipeline_mode = #tpu.pipeline_mode<synchronous>, transform_indices = @transform_2, window_bounds = array<i64: 1, 512>}, {pipeline_mode = #tpu.pipeline_mode<synchronous>, transform_indices = @transform_3, window_bounds = array<i64: 1, 512>}, {pipeline_mode = #tpu.pipeline_mode<synchronous>, transform_indices = @transform_4, window_bounds = array<i64: 512, 256>}, {pipeline_mode = #tpu.pipeline_mode<synchronous>, transform_indices = @transform_5, window_bounds = array<i64: 1, 256>}, {pipeline_mode = #tpu.pipeline_mode<synchronous>, transform_indices = @transform_6, window_bounds = array<i64: 1, 256>}, {pipeline_mode = #tpu.pipeline_mode<synchronous>, transform_indices = @transform_7, window_bounds = array<i64: 256, 128>}, {pipeline_mode = #tpu.pipeline_mode<synchronous>, transform_indices = @transform_8, window_bounds = array<i64: 1, 128>}, {pipeline_mode = #tpu.pipeline_mode<synchronous>, transform_indices = @transform_9, window_bounds = array<i64: 1, 128>}, {transform_indices = @transform_10, window_bounds = array<i64: 128, 1536>}, {transform_indices = @transform_11, window_bounds = array<i64: 1, 1536>}, {transform_indices = @transform_12, window_bounds = array<i64: 8, 1536>}]} {
    %c0_i32 = arith.constant 0 : i32
    %0 = arith.cmpi eq, %arg1, %c0_i32 : i32
    %1 = arith.extui %0 : i1 to i32
    %c0_i32_0 = arith.constant 0 : i32
    %2 = arith.cmpi ne, %1, %c0_i32_0 : i32
    scf.if %2 {
      %c0_8 = arith.constant 0 : index
      %c0_9 = arith.constant 0 : index
      %11 = vector.load %arg2[%c0_8, %c0_9] : memref<8x1024xbf16, #tpu.memory_space<vmem>>, vector<8x1024xbf16>
      %c0_10 = arith.constant 0 : index
      %c0_11 = arith.constant 0 : index
      %12 = vector.load %arg3[%c0_10, %c0_11] : memref<1024x512xbf16, #tpu.memory_space<vmem>>, vector<1024x512xbf16>
      %cst_12 = arith.constant dense<0.000000e+00> : vector<8x512xf32>
      %13 = tpu.matmul %11, %12, %cst_12 {dimension_numbers = #tpu.dot_dimension_numbers<[1], [0], [0], [1], [0, 0, 1, 1], [], []>} : vector<8x1024xbf16>, vector<1024x512xbf16>, vector<8x512xf32> -> vector<8x512xf32>
      %c0_13 = arith.constant 0 : index
      %c0_14 = arith.constant 0 : index
      %14 = vector.load %arg4[%c0_13, %c0_14] : memref<1x512xf32, #tpu.memory_space<vmem>>, vector<1x512xf32>
      %c0_15 = arith.constant 0 : index
      %c0_16 = arith.constant 0 : index
      %15 = vector.load %arg5[%c0_15, %c0_16] : memref<1x512xf32, #tpu.memory_space<vmem>>, vector<1x512xf32>
      %cst_17 = arith.constant dense<0.000000e+00> : vector<512xf32>
      %16 = vector.multi_reduction <add>, %13, %cst_17 [0] : vector<8x512xf32> to vector<512xf32>
      %17 = vector.shape_cast %16 : vector<512xf32> to vector<1x512xf32>
      %cst_18 = arith.constant 8.000000e+00 : f32
      %18 = vector.broadcast %cst_18 : f32 to vector<1x512xf32>
      %19 = arith.divf %17, %18 : vector<1x512xf32>
      %20 = arith.mulf %13, %13 : vector<8x512xf32>
      %cst_19 = arith.constant dense<0.000000e+00> : vector<512xf32>
      %21 = vector.multi_reduction <add>, %20, %cst_19 [0] : vector<8x512xf32> to vector<512xf32>
      %22 = vector.shape_cast %21 : vector<512xf32> to vector<1x512xf32>
      %cst_20 = arith.constant 8.000000e+00 : f32
      %23 = vector.broadcast %cst_20 : f32 to vector<1x512xf32>
      %24 = arith.divf %22, %23 : vector<1x512xf32>
      %25 = arith.mulf %19, %19 : vector<1x512xf32>
      %26 = arith.subf %24, %25 : vector<1x512xf32>
      %cst_21 = arith.constant 9.99999974E-6 : f32
      %27 = vector.broadcast %cst_21 : f32 to vector<1x512xf32>
      %28 = arith.addf %26, %27 : vector<1x512xf32>
      %29 = math.rsqrt %28 : vector<1x512xf32>
      %30 = arith.mulf %14, %29 : vector<1x512xf32>
      %31 = arith.mulf %19, %30 : vector<1x512xf32>
      %32 = arith.subf %15, %31 : vector<1x512xf32>
      %33 = vector.broadcast %30 : vector<1x512xf32> to vector<8x512xf32>
      %34 = arith.mulf %13, %33 : vector<8x512xf32>
      %35 = vector.broadcast %32 : vector<1x512xf32> to vector<8x512xf32>
      %36 = arith.addf %34, %35 : vector<8x512xf32>
      %cst_22 = arith.constant 0.000000e+00 : f32
      %37 = vector.broadcast %cst_22 : f32 to vector<8x512xf32>
      %38 = arith.maximumf %36, %37 : vector<8x512xf32>
      %39 = arith.truncf %38 : vector<8x512xf32> to vector<8x512xbf16>
      %c0_23 = arith.constant 0 : index
      %c0_24 = arith.constant 0 : index
      %40 = vector.load %arg6[%c0_23, %c0_24] : memref<512x256xbf16, #tpu.memory_space<vmem>>, vector<512x256xbf16>
      %cst_25 = arith.constant dense<0.000000e+00> : vector<8x256xf32>
      %41 = tpu.matmul %39, %40, %cst_25 {dimension_numbers = #tpu.dot_dimension_numbers<[1], [0], [0], [1], [0, 0, 1, 1], [], []>} : vector<8x512xbf16>, vector<512x256xbf16>, vector<8x256xf32> -> vector<8x256xf32>
      %c0_26 = arith.constant 0 : index
      %c0_27 = arith.constant 0 : index
      %42 = vector.load %arg7[%c0_26, %c0_27] : memref<1x256xf32, #tpu.memory_space<vmem>>, vector<1x256xf32>
      %c0_28 = arith.constant 0 : index
      %c0_29 = arith.constant 0 : index
      %43 = vector.load %arg8[%c0_28, %c0_29] : memref<1x256xf32, #tpu.memory_space<vmem>>, vector<1x256xf32>
      %cst_30 = arith.constant dense<0.000000e+00> : vector<256xf32>
      %44 = vector.multi_reduction <add>, %41, %cst_30 [0] : vector<8x256xf32> to vector<256xf32>
      %45 = vector.shape_cast %44 : vector<256xf32> to vector<1x256xf32>
      %cst_31 = arith.constant 8.000000e+00 : f32
      %46 = vector.broadcast %cst_31 : f32 to vector<1x256xf32>
      %47 = arith.divf %45, %46 : vector<1x256xf32>
      %48 = arith.mulf %41, %41 : vector<8x256xf32>
      %cst_32 = arith.constant dense<0.000000e+00> : vector<256xf32>
      %49 = vector.multi_reduction <add>, %48, %cst_32 [0] : vector<8x256xf32> to vector<256xf32>
      %50 = vector.shape_cast %49 : vector<256xf32> to vector<1x256xf32>
      %cst_33 = arith.constant 8.000000e+00 : f32
      %51 = vector.broadcast %cst_33 : f32 to vector<1x256xf32>
      %52 = arith.divf %50, %51 : vector<1x256xf32>
      %53 = arith.mulf %47, %47 : vector<1x256xf32>
      %54 = arith.subf %52, %53 : vector<1x256xf32>
      %cst_34 = arith.constant 9.99999974E-6 : f32
      %55 = vector.broadcast %cst_34 : f32 to vector<1x256xf32>
      %56 = arith.addf %54, %55 : vector<1x256xf32>
      %57 = math.rsqrt %56 : vector<1x256xf32>
      %58 = arith.mulf %42, %57 : vector<1x256xf32>
      %59 = arith.mulf %47, %58 : vector<1x256xf32>
      %60 = arith.subf %43, %59 : vector<1x256xf32>
      %61 = vector.broadcast %58 : vector<1x256xf32> to vector<8x256xf32>
      %62 = arith.mulf %41, %61 : vector<8x256xf32>
      %63 = vector.broadcast %60 : vector<1x256xf32> to vector<8x256xf32>
      %64 = arith.addf %62, %63 : vector<8x256xf32>
      %cst_35 = arith.constant 0.000000e+00 : f32
      %65 = vector.broadcast %cst_35 : f32 to vector<8x256xf32>
      %66 = arith.maximumf %64, %65 : vector<8x256xf32>
      %67 = arith.truncf %66 : vector<8x256xf32> to vector<8x256xbf16>
      %c0_36 = arith.constant 0 : index
      %c0_37 = arith.constant 0 : index
      %68 = vector.load %arg9[%c0_36, %c0_37] : memref<256x128xbf16, #tpu.memory_space<vmem>>, vector<256x128xbf16>
      %cst_38 = arith.constant dense<0.000000e+00> : vector<8x128xf32>
      %69 = tpu.matmul %67, %68, %cst_38 {dimension_numbers = #tpu.dot_dimension_numbers<[1], [0], [0], [1], [0, 0, 1, 1], [], []>} : vector<8x256xbf16>, vector<256x128xbf16>, vector<8x128xf32> -> vector<8x128xf32>
      %c0_39 = arith.constant 0 : index
      %c0_40 = arith.constant 0 : index
      %70 = vector.load %arg10[%c0_39, %c0_40] : memref<1x128xf32, #tpu.memory_space<vmem>>, vector<1x128xf32>
      %c0_41 = arith.constant 0 : index
      %c0_42 = arith.constant 0 : index
      %71 = vector.load %arg11[%c0_41, %c0_42] : memref<1x128xf32, #tpu.memory_space<vmem>>, vector<1x128xf32>
      %cst_43 = arith.constant dense<0.000000e+00> : vector<128xf32>
      %72 = vector.multi_reduction <add>, %69, %cst_43 [0] : vector<8x128xf32> to vector<128xf32>
      %73 = vector.shape_cast %72 : vector<128xf32> to vector<1x128xf32>
      %cst_44 = arith.constant 8.000000e+00 : f32
      %74 = vector.broadcast %cst_44 : f32 to vector<1x128xf32>
      %75 = arith.divf %73, %74 : vector<1x128xf32>
      %76 = arith.mulf %69, %69 : vector<8x128xf32>
      %cst_45 = arith.constant dense<0.000000e+00> : vector<128xf32>
      %77 = vector.multi_reduction <add>, %76, %cst_45 [0] : vector<8x128xf32> to vector<128xf32>
      %78 = vector.shape_cast %77 : vector<128xf32> to vector<1x128xf32>
      %cst_46 = arith.constant 8.000000e+00 : f32
      %79 = vector.broadcast %cst_46 : f32 to vector<1x128xf32>
      %80 = arith.divf %78, %79 : vector<1x128xf32>
      %81 = arith.mulf %75, %75 : vector<1x128xf32>
      %82 = arith.subf %80, %81 : vector<1x128xf32>
      %cst_47 = arith.constant 9.99999974E-6 : f32
      %83 = vector.broadcast %cst_47 : f32 to vector<1x128xf32>
      %84 = arith.addf %82, %83 : vector<1x128xf32>
      %85 = math.rsqrt %84 : vector<1x128xf32>
      %86 = arith.mulf %70, %85 : vector<1x128xf32>
      %87 = arith.mulf %75, %86 : vector<1x128xf32>
      %88 = arith.subf %71, %87 : vector<1x128xf32>
      %89 = vector.broadcast %86 : vector<1x128xf32> to vector<8x128xf32>
      %90 = arith.mulf %69, %89 : vector<8x128xf32>
      %91 = vector.broadcast %88 : vector<1x128xf32> to vector<8x128xf32>
      %92 = arith.addf %90, %91 : vector<8x128xf32>
      %cst_48 = arith.constant 0.000000e+00 : f32
      %93 = vector.broadcast %cst_48 : f32 to vector<8x128xf32>
      %94 = arith.maximumf %92, %93 : vector<8x128xf32>
      %95 = arith.truncf %94 : vector<8x128xf32> to vector<8x128xbf16>
      %c0_49 = arith.constant 0 : index
      %c0_50 = arith.constant 0 : index
      %96 = vector.load %arg15[%c0_49, %c0_50] : memref<8x128xbf16, #tpu.memory_space<vmem>>, vector<8x128xbf16>
      tpu.vector_store %arg15[%c0_49, %c0_50], %95 {strides = array<i32>} : memref<8x128xbf16, #tpu.memory_space<vmem>>, vector<8x128xbf16>,
    } else {
    }
    %c0 = arith.constant 0 : index
    %c0_1 = arith.constant 0 : index
    %3 = vector.load %arg15[%c0, %c0_1] : memref<8x128xbf16, #tpu.memory_space<vmem>>, vector<8x128xbf16>
    %c0_2 = arith.constant 0 : index
    %c0_3 = arith.constant 0 : index
    %4 = vector.load %arg12[%c0_2, %c0_3] : memref<128x1536xbf16, #tpu.memory_space<vmem>>, vector<128x1536xbf16>
    %cst = arith.constant dense<0.000000e+00> : vector<8x1536xf32>
    %5 = tpu.matmul %3, %4, %cst {dimension_numbers = #tpu.dot_dimension_numbers<[1], [0], [0], [1], [0, 0, 1, 1], [], []>} : vector<8x128xbf16>, vector<128x1536xbf16>, vector<8x1536xf32> -> vector<8x1536xf32>
    %c0_4 = arith.constant 0 : index
    %c0_5 = arith.constant 0 : index
    %6 = vector.load %arg13[%c0_4, %c0_5] : memref<1x1536xf32, #tpu.memory_space<vmem>>, vector<1x1536xf32>
    %7 = vector.broadcast %6 : vector<1x1536xf32> to vector<8x1536xf32>
    %8 = arith.addf %5, %7 : vector<8x1536xf32>
    %9 = math.tanh %8 : vector<8x1536xf32>
    %c0_6 = arith.constant 0 : index
    %c0_7 = arith.constant 0 : index
    %10 = vector.load %arg14[%c0_6, %c0_7] : memref<8x1536xf32, #tpu.memory_space<vmem>>, vector<8x1536xf32>
    tpu.vector_store %arg14[%c0_6, %c0_7], %9 {strides = array<i32>} : memref<8x1536xf32, #tpu.memory_space<vmem>>, vector<8x1536xf32>,
    return
  }
  func.func @transform_0(%arg0: i32, %arg1: i32) -> (i32, i32) {
    %c0_i32 = arith.constant 0 : i32
    %c0_i32_0 = arith.constant 0 : i32
    %c0_i32_1 = arith.constant 0 : i32
    return %c0_i32, %c0_i32_0 : i32, i32
  }
  func.func @transform_1(%arg0: i32, %arg1: i32) -> (i32, i32) {
    %c0_i32 = arith.constant 0 : i32
    %c0_i32_0 = arith.constant 0 : i32
    %c0_i32_1 = arith.constant 0 : i32
    return %c0_i32, %c0_i32_0 : i32, i32
  }
  func.func @transform_2(%arg0: i32, %arg1: i32) -> (i32, i32) {
    %c0_i32 = arith.constant 0 : i32
    %c0_i32_0 = arith.constant 0 : i32
    %c0_i32_1 = arith.constant 0 : i32
    return %c0_i32, %c0_i32_0 : i32, i32
  }
  func.func @transform_3(%arg0: i32, %arg1: i32) -> (i32, i32) {
    %c0_i32 = arith.constant 0 : i32
    %c0_i32_0 = arith.constant 0 : i32
    %c0_i32_1 = arith.constant 0 : i32
    return %c0_i32, %c0_i32_0 : i32, i32
  }
  func.func @transform_4(%arg0: i32, %arg1: i32) -> (i32, i32) {
    %c0_i32 = arith.constant 0 : i32
    %c0_i32_0 = arith.constant 0 : i32
    %c0_i32_1 = arith.constant 0 : i32
    return %c0_i32, %c0_i32_0 : i32, i32
  }
  func.func @transform_5(%arg0: i32, %arg1: i32) -> (i32, i32) {
    %c0_i32 = arith.constant 0 : i32
    %c0_i32_0 = arith.constant 0 : i32
    %c0_i32_1 = arith.constant 0 : i32
    return %c0_i32, %c0_i32_0 : i32, i32
  }
  func.func @transform_6(%arg0: i32, %arg1: i32) -> (i32, i32) {
    %c0_i32 = arith.constant 0 : i32
    %c0_i32_0 = arith.constant 0 : i32
    %c0_i32_1 = arith.constant 0 : i32
    return %c0_i32, %c0_i32_0 : i32, i32
  }
  func.func @transform_7(%arg0: i32, %arg1: i32) -> (i32, i32) {
    %c0_i32 = arith.constant 0 : i32
    %c0_i32_0 = arith.constant 0 : i32
    %c0_i32_1 = arith.constant 0 : i32
    return %c0_i32, %c0_i32_0 : i32, i32
  }
  func.func @transform_8(%arg0: i32, %arg1: i32) -> (i32, i32) {
    %c0_i32 = arith.constant 0 : i32
    %c0_i32_0 = arith.constant 0 : i32
    %c0_i32_1 = arith.constant 0 : i32
    return %c0_i32, %c0_i32_0 : i32, i32
  }
  func.func @transform_9(%arg0: i32, %arg1: i32) -> (i32, i32) {
    %c0_i32 = arith.constant 0 : i32
    %c0_i32_0 = arith.constant 0 : i32
    %c0_i32_1 = arith.constant 0 : i32
    return %c0_i32, %c0_i32_0 : i32, i32
  }
  func.func @transform_10(%arg0: i32, %arg1: i32) -> (i32, i32) {
    %c2_i32 = arith.constant 2 : i32
    %0 = arith.muli %arg0, %c2_i32 : i32
    %1 = arith.addi %0, %arg1 : i32
    %c0_i32 = arith.constant 0 : i32
    %c0_i32_0 = arith.constant 0 : i32
    return %c0_i32, %1 : i32, i32
  }
  func.func @transform_11(%arg0: i32, %arg1: i32) -> (i32, i32) {
    %c2_i32 = arith.constant 2 : i32
    %0 = arith.muli %arg0, %c2_i32 : i32
    %1 = arith.addi %0, %arg1 : i32
    %c0_i32 = arith.constant 0 : i32
    %c0_i32_0 = arith.constant 0 : i32
    return %c0_i32, %1 : i32, i32
  }
  func.func @transform_12(%arg0: i32, %arg1: i32) -> (i32, i32) {
    %c2_i32 = arith.constant 2 : i32
    %0 = arith.muli %arg0, %c2_i32 : i32
    %1 = arith.addi %0, %arg1 : i32
    %c0_i32 = arith.constant 0 : i32
    %c0_i32_0 = arith.constant 0 : i32
    return %c0_i32, %1 : i32, i32
  }
}

</mosaic_0001>

<bundles_post_ra>
// kernel: decoder_forward.1
= control target key start
LH: loop header
LB: loop body
LE: loop exit
PB: predicated region body
PF: predicated region fallthrough
CT: control target
= control target key end

     0   :  { %s7298_s0 = inlined_call_operand.vmem [shape: bf16[8,1024], index: 0, kind: input, shape index: {}]   ;;  %s7299_s1 = inlined_call_operand.hbm [shape: bf16[1024,512], index: 1, kind: input, shape index: {}]   ;;  %s7300_s2 = inlined_call_operand.hbm [shape: f32[1,512], index: 2, kind: input, shape index: {}]   ;;  %s7301_s3 = inlined_call_operand.hbm [shape: f32[1,512], index: 3, kind: input, shape index: {}]   ;;  %s7302_s4 = inlined_call_operand.hbm [shape: bf16[512,256], index: 4, kind: input, shape index: {}]   ;;  %s7303_s5 = inlined_call_operand.hbm [shape: f32[1,256], index: 5, kind: input, shape index: {}]   ;;  %s7304_s6 = inlined_call_operand.hbm [shape: f32[1,256], index: 6, kind: input, shape index: {}]   ;;  %s7305_s7 = inlined_call_operand.hbm [shape: bf16[256,128], index: 7, kind: input, shape index: {}]   ;;  %s7306_s8 = inlined_call_operand.hbm [shape: f32[1,128], index: 8, kind: input, shape index: {}]   ;;  %s7307_s9 = inlined_call_operand.hbm [shape: f32[1,128], index: 9, kind: input, shape index: {}]   ;;  %s7308_s10 = inlined_call_operand.hbm [shape: bf16[128,6144], index: 10, kind: input, shape index: {}]   ;;  %s7309_s11 = inlined_call_operand.hbm [shape: f32[1,6144], index: 11, kind: input, shape index: {}]   ;;  %s7310_s12 = inlined_call_operand.hbm [shape: f32[8,6144], index: 12, kind: output, shape index: {}]  }
   0x1   :  { %7333 = sst [smem:[#allocation40_spill]] %s7298_s0 }
   0x2   :  { %7334 = sst [smem:[#allocation41_spill]] %s7300_s2 }
   0x3   :  { %7335 = sst [smem:[#allocation42_spill]] %s7302_s4 }
   0x4   :  { %7336 = sst [smem:[#allocation43_spill]] %s7304_s6 }
   0x5   :  { %7337 = sst [smem:[#allocation44_spill]] %s7306_s8 }
   0x6   :  { %7338 = sst [smem:[#allocation45_spill]] %s7308_s10 }
   0x7   :  { %7339 = sst [smem:[#allocation46_spill]] %s7309_s11 }
   0x8   :  { %7340 = sst [smem:[#allocation47_spill]] %s7310_s12 }
   0x9   :  { %17 = vsyncpa [#allocation4], 0 }
   0xa   :  { %18 = vsyncpa [#allocation7], 0 }
   0xb   :  { %19 = vsyncpa [#allocation10], 0 }
   0xc   :  { %20 = vsyncpa [#allocation13], 0 }
   0xd   :  { %21 = vsyncpa [#allocation16], 0 }
   0xe   :  { %22 = vsyncpa [#allocation19], 0 }
   0xf   :  { %24 = vsyncpa [#allocation19 + $0x1], 0 }
  0x10   :  { %25 = vsyncpa [#allocation5], 0 }
  0x11   :  { %27 = vsyncpa [#allocation5 + $0x1], 0  ;;  %s6558_s21 = smov 0   ;;  %s6560_s22 = smov 0  }
  0x12   :  { %s6562_s23 = smov 0   ;;  %s6564_s24 = smov 0  }
  0x13   :  { %s6566_s25 = smov 0   ;;  %s6568_s26 = smov 0  }
  0x14   :  { %s6570_s27 = smov 0   ;;  %s6572_s28 = smov 0  }
  0x15 LB: > { %7341 = sst [smem:[#allocation29_spill]] %s6440_s21  ;;  %s6470_s29 = smov [#allocation6]   ;;  %s6468_s28 = sphi %s6572_s28, %s33_s28   ;;  %s6464_s27 = sphi %s6570_s27, %s7401_s27   ;;  %s6460_s26 = sphi %s6568_s26, %s7400_s26   ;;  %s6456_s25 = sphi %s6566_s25, %s7399_s25   ;;  %s6452_s24 = sphi %s6564_s24, %s7398_s24   ;;  %s6448_s23 = sphi %s6562_s23, %s7404_s23   ;;  %s6444_s22 = sphi %s6560_s22, %s7403_s22   ;;  %s6440_s21 = sphi %s6558_s21, %s7402_s21  }
  0x16   : > { %7342 = sst [smem:[#allocation30_spill]] %s6452_s24  ;;  %s379_s30 = sshll.u32 %s6470_s29, 4  ;;  %s380_s30 = int_to_ptr.vmem [resolvable:$true] %s379_s30 }
  0x17   : > { %7343 = sst [smem:[#allocation31_spill]] %s6456_s25  ;;  %s6599_s13 = sadd.s32 4294967295, %s6468_s28  }
  0x18   : > { %7344 = sst [smem:[#allocation32_spill]] %s6460_s26  ;;  %p4641_p0 = scmp.ge.s32.totalorder %s6468_s28, 1 }
  0x19   : > { %7345 = sst [smem:[#allocation33_spill]] %s6464_s27  ;;  %p7313_p1 = scmp.eq.s32.totalorder %s6599_s13, 0 }
  0x1a   : > { %7346 = sst [smem:[#allocation34_spill]] %s6468_s28  ;;  %p350_p2 = scmp.lt.s32.totalorder %s6468_s28, 5 }
  0x1b   : > { %s6471_s15 = smov [#allocation9]   ;;  %s6472_s18 = smov [#allocation12]  }
  0x1c   : > { %p6604_p3 = pnand %p4641_p0, %p350_p2  ;;  %s400_s16 = sshll.u32 %s6471_s15, 4  ;;  %s6610_s16 = int_to_ptr.vmem [resolvable:$true] %s400_s16 }
  0x1d   : > { %s425_s19 = sshll.u32 %s6472_s18, 4  ;;  %s7350_s2 = sld [smem:[#allocation41_spill]]  ;;  %s6618_s19 = int_to_ptr.vmem [resolvable:$true] %s425_s19 }
  0x1e   : > { %s7347_s14 = scalar_select %p6604_p3, 1, 0 }
  0x1f   : > { %p5209_p4 = pneg %p6604_p3 }
  0x20   : > { %7348 = sst [smem:[#allocation35_spill]] %s7347_s14 }
  0x21   : > { %p6614_p5 = pnand %p5209_p4, %p7313_p1 }
  0x23   : > { %s7349_s17 = scalar_select %p6614_p5, 1, 0 }
  0x24   : > { %s6038_s12 = scalar_lea.hbm %s7350_s2, 64  ;;  %p6628_p7 = pneg %p6614_p5 }
  0x25   : > { %p6039_p6 = scmp.ne.s32.totalorder %s7350_s2, %s6038_s12  ;;  %p6045_p10 = scmp.lt.u32.totalorder %s6038_s12, %s7350_s2 }
  0x27   : > { %p6041_p8 = pnand %p6628_p7, %p6039_p6 }
  0x29   : > { %p6042_p9 = pneg %p6041_p8 }
  0x2b   : > { %p6047_p11 = pnand %p6045_p10, %p6042_p9 }
  0x2d   : > { %6050 = shalt.err (!%p6047_p11)
}
  0x2e   : > { %s6051_s20 = scalar_lea.vmem %s380_s30, 64  ;;  %p6059_p2 = scmp.lt.s32.totalorder %s380_s30, %s380_s30 }
  0x2f   : > { %p6052_p12 = scmp.ne.s32.totalorder %s380_s30, %s6051_s20  ;;  %p6060_p4 = scmp.lt.s32.totalorder %s6051_s20, %s6051_s20 }
  0x31   : > { %p6054_p13 = pnand %p6052_p12, %p6628_p7  ;;  %p6061_p1 = por %p6060_p4, %p6059_p2 }
  0x33   : > { %p6055_p0 = pneg %p6054_p13 }
  0x35   : > { %p6062_p3 = pnand %p6061_p1, %p6055_p0 }
  0x37   : > { %6065 = shalt.err (!%p6062_p3)
}
  0x38   : > { %5215 = dma.hbm_to_vmem [thread:$0]  (!%p6614_p5), %s7350_s2, 64, %s380_s30, [#allocation7]  }
  0x39   : > { %s7352_s4 = sld [smem:[#allocation42_spill]] }
  0x3f   : > { %s6066_s29 = scalar_lea.hbm %s7352_s4, 8192 }
  0x40   : > { %p6067_p6 = scmp.ne.s32.totalorder %s7352_s4, %s6066_s29  ;;  %p6073_p1 = scmp.lt.u32.totalorder %s6066_s29, %s7352_s4 }
  0x42   : > { %p6069_p8 = pnand %p6067_p6, %p6628_p7 }
  0x44   : > { %p6070_p9 = pneg %p6069_p8 }
  0x46   : > { %p6075_p3 = pnand %p6073_p1, %p6070_p9 }
  0x48   : > { %6078 = shalt.err (!%p6075_p3)
}
  0x49   : > { %s6079_s30 = scalar_lea.vmem %s6610_s16, 8192  ;;  %p6087_p13 = scmp.lt.s32.totalorder %s6610_s16, %s6610_s16 }
  0x4a   : > { %p6080_p10 = scmp.ne.s32.totalorder %s6610_s16, %s6079_s30  ;;  %p6088_p0 = scmp.lt.s32.totalorder %s6079_s30, %s6079_s30 }
  0x4c   : > { %p6082_p11 = pnand %p6080_p10, %p6628_p7  ;;  %p6089_p2 = por %p6088_p0, %p6087_p13 }
  0x4e   : > { %p6083_p12 = pneg %p6082_p11 }
  0x50   : > { %p6090_p4 = pnand %p6089_p2, %p6083_p12 }
  0x52   : > { %6093 = shalt.err (!%p6090_p4)
}
  0x53   : > { %s6473_s14 = smov 128   ;;  %s6474_s11 = smov 8  }
  0x54   : > { %5221 = dma.hbm_to_vmem [thread:$0]  (!%p6614_p5), %s7352_s4, 8192, %s6610_s16, [#allocation10], %s6473_s14, %s6473_s14, %s6474_s11  }
  0x55   : > { %s7353_s6 = sld [smem:[#allocation43_spill]] }
  0x5b   : > { %s6094_s29 = scalar_lea.hbm %s7353_s6, 32 }
  0x5c   : > { %p6095_p6 = scmp.ne.s32.totalorder %s7353_s6, %s6094_s29  ;;  %p6101_p1 = scmp.lt.u32.totalorder %s6094_s29, %s7353_s6 }
  0x5e   : > { %p6097_p8 = pnand %p6095_p6, %p6628_p7 }
  0x60   : > { %p6098_p9 = pneg %p6097_p8 }
  0x62   : > { %p6103_p3 = pnand %p6101_p1, %p6098_p9 }
  0x64   : > { %6106 = shalt.err (!%p6103_p3)
}
  0x65   : > { %s6107_s16 = scalar_lea.vmem %s6618_s19, 32  ;;  %p6115_p13 = scmp.lt.s32.totalorder %s6618_s19, %s6618_s19 }
  0x66   : > { %p6108_p10 = scmp.ne.s32.totalorder %s6618_s19, %s6107_s16  ;;  %p6116_p0 = scmp.lt.s32.totalorder %s6107_s16, %s6107_s16 }
  0x68   : > { %p6110_p11 = pnand %p6108_p10, %p6628_p7  ;;  %p6117_p2 = por %p6116_p0, %p6115_p13 }
  0x6a   : > { %p6111_p12 = pneg %p6110_p11 }
  0x6c   : > { %p6118_p4 = pnand %p6117_p2, %p6111_p12 }
  0x6e   : > { %6121 = shalt.err (!%p6118_p4)
}
  0x6f   : > { %5227 = dma.hbm_to_vmem [thread:$0]  (!%p6614_p5), %s7353_s6, 32, %s6618_s19, [#allocation13]  }
  0x70   : > { %s6475_s11 = smov [#allocation15]   ;;  %s7354_s8 = sld [smem:[#allocation44_spill]] }
  0x71   : > { %s449_s0 = sshll.u32 %s6475_s11, 4  ;;  %s450_s0 = int_to_ptr.vmem [resolvable:$true] %s449_s0 }
  0x76   : > { %s6122_s24 = scalar_lea.hbm %s7354_s8, 16 }
  0x77   : > { %p6123_p6 = scmp.ne.s32.totalorder %s7354_s8, %s6122_s24  ;;  %p6129_p1 = scmp.lt.u32.totalorder %s6122_s24, %s7354_s8 }
  0x79   : > { %p6125_p8 = pnand %p6123_p6, %p6628_p7 }
  0x7b   : > { %p6126_p9 = pneg %p6125_p8 }
  0x7d   : > { %p6131_p3 = pnand %p6129_p1, %p6126_p9 }
  0x7f   : > { %6134 = shalt.err (!%p6131_p3)
}
  0x80   : > { %s6135_s19 = scalar_lea.vmem %s450_s0, 16  ;;  %s6142_s16 = scalar_lea.vmem %s450_s0, 32 }
  0x81   : > { %p6136_p10 = scmp.ne.s32.totalorder %s450_s0, %s6135_s19  ;;  %p6143_p13 = scmp.lt.s32.totalorder %s450_s0, %s450_s0 }
  0x82   : > { %p6144_p0 = scmp.lt.s32.totalorder %s6142_s16, %s6135_s19 }
  0x83   : > { %p6138_p11 = pnand %p6136_p10, %p6628_p7 }
  0x84   : > { %p6145_p2 = por %p6144_p0, %p6143_p13 }
  0x85   : > { %p6139_p12 = pneg %p6138_p11 }
  0x87   : > { %p6146_p4 = pnand %p6145_p2, %p6139_p12 }
  0x89   : > { %6149 = shalt.err (!%p6146_p4)
}
  0x8a   : > { %5233 = dma.hbm_to_vmem [thread:$0]  (!%p6614_p5), %s7354_s8, 16, %s450_s0, [#allocation16]  }
  0x8b   : > { %s4634_s11 = sadd.s32 4294967294, %s6468_s28   ;;  %s42_s25 = sadd.s32 1, %s6460_s26 }
  0x8c   : > { %p43_p6 = scmp.ge.s32.totalorder %s42_s25, 2  ;;  %s45_s12 = sadd.s32 1, %s6464_s27 }
  0x8d   : > { %s4635_s24 = sshll.u32 %s6464_s27, 1  ;;  %s266_s29 = sadd.s32 1, %s6448_s23 }
  0x8e   : > { %s7406_s25 = smov (%p43_p6, %s42_s25), 0  ;;  %s7408_s12 = smov (!%p43_p6, %s45_s12), %s6464_s27 }
  0x8f   : > { %7355 = sst [smem:[#allocation36_spill]] %s7406_s25  ;;  %s6717_s18 = sadd.s32 %s6460_s26, %s4635_s24 }
  0x90   : > { %p273_p8 = scmp.ne.s32.totalorder %s6448_s23, %s6444_s22  ;;  %p47_p9 = scmp.ge.s32.totalorder %s7408_s12, 2 }
  0x91   : > { %p274_p1 = scmp.eq.s32.totalorder %s6468_s28, 0  ;;  %p279_p3 = scmp.ne.s32.totalorder %s6444_s22, %s6440_s21 }
  0x92   : > { %p337_p10 = scmp.eq.s32.totalorder %s6599_s13, 3  ;;  %s7410_s12 = smov (%p47_p9, %s7408_s12), 0 }
  0x93   : > { %7356 = sst [smem:[#allocation37_spill]] %s7410_s12  ;;  %p6727_p11 = por %p274_p1, %p273_p8 }
  0x94   : > { %p7358_p12 = scmp.eq.s32.totalorder %s6599_s13, 0  ;;  %s4636_s30 = sshll.u32 %s7410_s12, 1 }
  0x95   : > { %p6738_p0 = por %p337_p10, %p273_p8  ;;  %s262_s16 = sadd.s32 %s4636_s30, %s7406_s25 }
  0x96   : > { %p6733_p13 = por %p7358_p12, %p279_p3  ;;  %p343_p2 = scmp.eq.s32.totalorder %s4634_s11, 3 }
  0x97   : > { %s7360_s19 = scalar_select %p6738_p0, 1, 0 }
  0x98   : > { %s7359_s20 = scalar_select %p6733_p13, 1, 0 }
  0x99   : > { %s263_s2 = ssub.s32 %s6717_s18, %s262_s16  ;;  %p5257_p4 = scmp.lt.s32.totalorder %s6468_s28, 4 }
  0x9a   : > { %p264_p6 = scmp.eq.s32.totalorder %s263_s2, 0  ;;  %p6745_p9 = por %p343_p2, %p279_p3 }
  0x9b   : > { %s471_s24 = sand.u32 1, %s6468_s28   ;;  %s7319_s4 = sand.u32 1, %s6448_s23  }
  0x9c   : > { %s7361_s14 = scalar_select %p6745_p9, 1, 0 }
  0x9d   : > { %s6752_s6 = scalar_select %p264_p6, %s6448_s23, %s266_s29  }
  0x9e   : > { %7362 = sst [smem:[#allocation38_spill]] %s7361_s14  ;;  %s5162_s8 = smul.u32 768, %s7319_s4 }
  0x9f   : > { %7363 = sst [smem:[#allocation39_spill]] %s6752_s6  ;;  %s5111_s12 = smul.u32 768, %s6717_s18 }
  0xa0   : > { %p6759_p8 = pnand %p5257_p4, %p6727_p11  ;;  %s7365_s10 = sld [smem:[#allocation45_spill]] }
  0xa1   : > { %s475_s29 = scalar_lea.vmem [#allocation18], %s5162_s8  ;;  %s6770_s0 = scalar_lea.sflag [#allocation19], %s471_s24 }
  0xa2   : > { %s7364_s27 = scalar_select %p6759_p8, 1, 0 }
  0xa3   : > { %s484_s2 = sshll.u32 %s475_s29, 4  ;;  %p7327_p3 = pneg %p6759_p8  ;;  %s6768_s2 = int_to_ptr.vmem [resolvable:$true] %s484_s2 }
  0xa6   : > { %s6766_s16 = scalar_lea.hbm %s7365_s10, %s5111_s12  ;;  %s6155_s30 = scalar_lea.hbm %s7365_s10, 49152 }
  0xa7   : > { %s6150_s4 = scalar_lea.hbm %s6766_s16, 12288  ;;  %p6156_p12 = scmp.lt.u32.totalorder %s6766_s16, %s7365_s10 }
  0xa8   : > { %p6151_p1 = scmp.ne.s32.totalorder %s6766_s16, %s6150_s4  ;;  %p6157_p2 = scmp.lt.u32.totalorder %s6155_s30, %s6150_s4 }
  0xa9   : > { %p6159_p6 = scmp.lt.u32.totalorder %s6150_s4, %s6766_s16 }
  0xaa   : > { %p6153_p10 = pnand %p7327_p3, %p6151_p1  ;;  %p6158_p4 = por %p6157_p2, %p6156_p12 }
  0xac   : > { %p6154_p11 = pneg %p6153_p10  ;;  %p6160_p9 = por %p6159_p6, %p6158_p4 }
  0xae   : > { %p6161_p0 = pnand %p6160_p9, %p6154_p11 }
  0xb0   : > { %6164 = shalt.err (!%p6161_p0)
}
  0xb1   : > { %s6165_s8 = scalar_lea.vmem %s6768_s2, 12288  ;;  %s6476_s24 = smov [#allocation18]  }
  0xb2   : > { %p6166_p1 = scmp.ne.s32.totalorder %s6768_s2, %s6165_s8  ;;  %s6170_s29 = sshll.u32 %s6476_s24, 4  ;;  %s6171_s29 = int_to_ptr.vmem [resolvable:$false] %s6170_s29 }
  0xb3   : > { %s6172_s26 = scalar_lea.vmem %s6171_s29, 24576  ;;  %p6173_p5 = scmp.lt.s32.totalorder %s6768_s2, %s6171_s29 }
  0xb4   : > { %p6168_p10 = pnand %p6166_p1, %p7327_p3  ;;  %p6174_p12 = scmp.lt.s32.totalorder %s6172_s26, %s6165_s8 }
  0xb6   : > { %p6169_p13 = pneg %p6168_p10  ;;  %p6175_p2 = por %p6174_p12, %p6173_p5 }
  0xb8   : > { %p6176_p4 = pnand %p6175_p2, %p6169_p13 }
  0xba   : > { %6179 = shalt.err (!%p6176_p4)
}
  0xbb   : > { %s6477_s4 = smov 3072   ;;  %s6478_s25 = smov 768  }
  0xbc   : > { %s6479_s12 = smov 48   ;;  %s6480_s11 = smov [#allocation3]  }
  0xbd   : > { %5240 = dma.hbm_to_vmem [thread:$0]  (!%p6759_p8), %s6766_s16, 12288, %s6768_s2, %s6770_s0, %s6477_s4, %s6478_s25, %s6479_s12  }
  0xbe   : > { %s365_s30 = sshll.u32 %s6480_s11, 4  ;;  %s6180_s8 = scalar_lea.hbm %s7299_s1, 32768  ;;  %s366_s30 = int_to_ptr.vmem [resolvable:$true] %s365_s30 }
  0xbf   : > { %p6181_p5 = scmp.ne.s32.totalorder %s7299_s1, %s6180_s8  ;;  %p6187_p9 = scmp.lt.u32.totalorder %s6180_s8, %s7299_s1 }
  0xc1   : > { %p6183_p13 = pnand %p6181_p5, %p6628_p7 }
  0xc3   : > { %p6184_p0 = pneg %p6183_p13 }
  0xc5   : > { %p6189_p11 = pnand %p6187_p9, %p6184_p0 }
  0xc7   : > { %6192 = shalt.err (!%p6189_p11)
}
  0xc8   : > { %s6193_s16 = scalar_lea.vmem %s366_s30, 32768  ;;  %p6201_p12 = scmp.lt.s32.totalorder %s366_s30, %s366_s30 }
  0xc9   : > { %p6194_p6 = scmp.ne.s32.totalorder %s366_s30, %s6193_s16  ;;  %p6202_p2 = scmp.lt.s32.totalorder %s6193_s16, %s6193_s16 }
  0xcb   : > { %p6196_p1 = pnand %p6194_p6, %p6628_p7  ;;  %p6203_p4 = por %p6202_p2, %p6201_p12 }
  0xcd   : > { %p6197_p10 = pneg %p6196_p1 }
  0xcf   : > { %p6204_p3 = pnand %p6203_p4, %p6197_p10 }
  0xd1   : > { %6207 = shalt.err (!%p6204_p3)
}
  0xd2   : > { %s6481_s10 = smov 256   ;;  %s6482_s2 = smov 16  }
  0xd3   : > { %p7366_p5 = scmp.ne.s32.totalorder %s7349_s17, 0  ;;  %s6483_s4 = smov [#allocation8]  }
  0xd4   : > { %s390_s25 = sshll.u32 %s6483_s4, 4  ;;  %s6484_s12 = smov [#allocation11]   ;;  %s391_s25 = int_to_ptr.vmem [resolvable:$true] %s390_s25 }
  0xd5   : > { %5212 = dma.hbm_to_vmem [thread:$0]  (!%p7366_p5), %s7299_s1, 32768, %s366_s30, [#allocation4], %s6481_s10, %s6481_s10, %s6482_s2  }
  0xd6   : > { %s414_s11 = sshll.u32 %s6484_s12, 4  ;;  %s6208_s29 = scalar_lea.hbm %s7301_s3, 64  ;;  %s415_s11 = int_to_ptr.vmem [resolvable:$true] %s414_s11 }
  0xd7   : > { %p6209_p3 = scmp.ne.s32.totalorder %s7301_s3, %s6208_s29  ;;  %p6215_p9 = scmp.lt.u32.totalorder %s6208_s29, %s7301_s3 }
  0xd9   : > { %p6211_p13 = pnand %p6209_p3, %p6628_p7 }
  0xdb   : > { %p6212_p0 = pneg %p6211_p13 }
  0xdd   : > { %p6217_p11 = pnand %p6215_p9, %p6212_p0 }
  0xdf   : > { %6220 = shalt.err (!%p6217_p11)
}
  0xe0   : > { %s6221_s30 = scalar_lea.vmem %s391_s25, 64  ;;  %p6229_p12 = scmp.lt.s32.totalorder %s391_s25, %s391_s25 }
  0xe1   : > { %p6222_p6 = scmp.ne.s32.totalorder %s391_s25, %s6221_s30  ;;  %p6230_p2 = scmp.lt.s32.totalorder %s6221_s30, %s6221_s30 }
  0xe3   : > { %p6224_p1 = pnand %p6222_p6, %p6628_p7  ;;  %p6231_p4 = por %p6230_p2, %p6229_p12 }
  0xe5   : > { %p6225_p10 = pneg %p6224_p1 }
  0xe7   : > { %p6232_p8 = pnand %p6231_p4, %p6225_p10 }
  0xe9   : > { %6235 = shalt.err (!%p6232_p8)
}
  0xea   : > { %5218 = dma.hbm_to_vmem [thread:$0]  (!%p7366_p5), %s7301_s3, 64, %s391_s25, [#allocation7]  }
  0xeb   : > { %s6236_s6 = scalar_lea.hbm %s7303_s5, 32 }
  0xec   : > { %p6237_p3 = scmp.ne.s32.totalorder %s7303_s5, %s6236_s6  ;;  %p6243_p8 = scmp.lt.u32.totalorder %s6236_s6, %s7303_s5 }
  0xee   : > { %p6239_p13 = pnand %p6237_p3, %p6628_p7 }
  0xf0   : > { %p6240_p0 = pneg %p6239_p13 }
  0xf2   : > { %p6245_p9 = pnand %p6243_p8, %p6240_p0 }
  0xf4   : > { %6248 = shalt.err (!%p6245_p9)
}
  0xf5   : > { %s6249_s8 = scalar_lea.vmem %s415_s11, 32  ;;  %p6257_p10 = scmp.lt.s32.totalorder %s415_s11, %s415_s11 }
  0xf6   : > { %p6250_p11 = scmp.ne.s32.totalorder %s415_s11, %s6249_s8  ;;  %p6258_p12 = scmp.lt.s32.totalorder %s6249_s8, %s6249_s8 }
  0xf8   : > { %p6252_p6 = pnand %p6250_p11, %p6628_p7  ;;  %p6259_p2 = por %p6258_p12, %p6257_p10 }
  0xfa   : > { %p6253_p1 = pneg %p6252_p6 }
  0xfc   : > { %p6260_p4 = pnand %p6259_p2, %p6253_p1 }
  0xfe   : > { %6263 = shalt.err (!%p6260_p4)
}
  0xff   : > { %5224 = dma.hbm_to_vmem [thread:$0]  (!%p7366_p5), %s7303_s5, 32, %s415_s11, [#allocation10]  }
 0x100   : > { %s6485_s26 = smov [#allocation14]   ;;  %s6264_s2 = scalar_lea.hbm %s7305_s7, 2048 }
 0x101   : > { %s435_s16 = sshll.u32 %s6485_s26, 4  ;;  %p6265_p3 = scmp.ne.s32.totalorder %s7305_s7, %s6264_s2  ;;  %s436_s16 = int_to_ptr.vmem [resolvable:$true] %s435_s16 }
 0x102   : > { %p6271_p8 = scmp.lt.u32.totalorder %s6264_s2, %s7305_s7 }
 0x103   : > { %p6267_p13 = pnand %p6265_p3, %p6628_p7 }
 0x105   : > { %p6268_p0 = pneg %p6267_p13 }
 0x107   : > { %p6273_p9 = pnand %p6271_p8, %p6268_p0 }
 0x109   : > { %6276 = shalt.err (!%p6273_p9)
}
 0x10a   : > { %s6277_s11 = scalar_lea.vmem %s436_s16, 2048  ;;  %p6285_p10 = scmp.lt.s32.totalorder %s436_s16, %s436_s16 }
 0x10b   : > { %p6278_p11 = scmp.ne.s32.totalorder %s436_s16, %s6277_s11  ;;  %p6286_p12 = scmp.lt.s32.totalorder %s6277_s11, %s6277_s11 }
 0x10d   : > { %p6280_p6 = pnand %p6278_p11, %p6628_p7  ;;  %p6287_p2 = por %p6286_p12, %p6285_p10 }
 0x10f   : > { %p6281_p1 = pneg %p6280_p6 }
 0x111   : > { %p6288_p4 = pnand %p6287_p2, %p6281_p1 }
 0x113   : > { %6291 = shalt.err (!%p6288_p4)
}
 0x114   : > { %s6486_s4 = smov 64   ;;  %s6487_s12 = smov 4  }
 0x115   : > { %5230 = dma.hbm_to_vmem [thread:$0]  (!%p7366_p5), %s7305_s7, 2048, %s436_s16, [#allocation13], %s6486_s4, %s6486_s4, %s6487_s12  }
 0x116   : > { %s7367_s25 = sand.u32 1, %s6448_s23   ;;  %s6488_s26 = smov [#allocation17]  }
 0x117   : > { %s5163_s29 = smul.u32 12, %s7367_s25  ;;  %s460_s30 = sshll.u32 %s6488_s26, 4  ;;  %s461_s30 = int_to_ptr.vmem [resolvable:$true] %s460_s30 }
 0x118   : > { %s5112_s10 = smul.u32 192, %s6717_s18  ;;  %s6292_s28 = scalar_lea.hbm %s7307_s9, 16 }
 0x119   : > { %p6293_p3 = scmp.ne.s32.totalorder %s7307_s9, %s6292_s28  ;;  %p6299_p8 = scmp.lt.u32.totalorder %s6292_s28, %s7307_s9 }
 0x11b   : > { %p6295_p13 = pnand %p6293_p3, %p6628_p7 }
 0x11d   : > { %p6296_p0 = pneg %p6295_p13 }
 0x11f   : > { %p6301_p9 = pnand %p6299_p8, %p6296_p0 }
 0x121   : > { %6304 = shalt.err (!%p6301_p9)
}
 0x122   : > { %s6305_s16 = scalar_lea.vmem %s461_s30, 16  ;;  %s6312_s18 = scalar_lea.vmem %s461_s30, 32 }
 0x123   : > { %p6306_p11 = scmp.ne.s32.totalorder %s461_s30, %s6305_s16  ;;  %p6313_p10 = scmp.lt.s32.totalorder %s461_s30, %s461_s30 }
 0x124   : > { %p6314_p12 = scmp.lt.s32.totalorder %s6312_s18, %s6305_s16 }
 0x125   : > { %p6308_p6 = pnand %p6306_p11, %p6628_p7 }
 0x126   : > { %p6315_p2 = por %p6314_p12, %p6313_p10 }
 0x127   : > { %p6309_p1 = pneg %p6308_p6 }
 0x129   : > { %p6316_p4 = pnand %p6315_p2, %p6309_p1 }
 0x12b   : > { %6319 = shalt.err (!%p6316_p4)
}
 0x12c   : > { %5236 = dma.hbm_to_vmem [thread:$0]  (!%p7366_p5), %s7307_s9, 16, %s461_s30, [#allocation16]  }
 0x12d   : > { %s7368_s26 = sld [smem:[#allocation46_spill]]  ;;  %s498_s15 = scalar_lea.vmem [#allocation20], %s5163_s29 }
 0x12e   : > { %s508_s28 = sshll.u32 %s498_s15, 4  ;;  %p7370_p3 = scmp.ne.s32.totalorder %s7364_s27, 0  ;;  %s509_s28 = int_to_ptr.vmem [resolvable:$true] %s508_s28 }
 0x130   : > { %p7371_p13 = pneg %p7370_p3 }
 0x133   : > { %s7369_s2 = smov %s7368_s26  ;;  %s6894_s21 = scalar_lea.hbm %s7368_s26, %s5112_s10 }
 0x134   : > { %s6320_s6 = scalar_lea.hbm %s6894_s21, 192  ;;  %s6325_s14 = scalar_lea.hbm %s7369_s2, 768 }
 0x135   : > { %p6321_p7 = scmp.ne.s32.totalorder %s6894_s21, %s6320_s6  ;;  %p6326_p5 = scmp.lt.u32.totalorder %s6894_s21, %s7369_s2 }
 0x136   : > { %p6327_p9 = scmp.lt.u32.totalorder %s6325_s14, %s6320_s6  ;;  %p6329_p6 = scmp.lt.u32.totalorder %s6320_s6, %s6894_s21 }
 0x137   : > { %p6323_p0 = pnand %p6321_p7, %p7371_p13 }
 0x138   : > { %p6328_p11 = por %p6327_p9, %p6326_p5 }
 0x139   : > { %p6324_p8 = pneg %p6323_p0 }
 0x13a   : > { %p6330_p1 = por %p6329_p6, %p6328_p11 }
 0x13c   : > { %p6331_p10 = pnand %p6330_p1, %p6324_p8 }
 0x13e   : > { %6334 = shalt.err (!%p6331_p10)
}
 0x13f   : > { %s6335_s29 = scalar_lea.vmem %s509_s28, 192  ;;  %p7372_p2 = pmov %p7371_p13 }
 0x140   : > { %p6336_p12 = scmp.ne.s32.totalorder %s509_s28, %s6335_s29  ;;  %s6489_s24 = smov [#allocation20]  }
 0x141   : > { %s6340_s16 = sshll.u32 %s6489_s24, 4  ;;  %s6341_s16 = int_to_ptr.vmem [resolvable:$false] %s6340_s16 }
 0x142   : > { %p6338_p4 = pnand %p6336_p12, %p7372_p2  ;;  %s6342_s18 = scalar_lea.vmem %s6341_s16, 384 }
 0x143   : > { %p6343_p13 = scmp.lt.s32.totalorder %s509_s28, %s6341_s16  ;;  %p6344_p0 = scmp.lt.s32.totalorder %s6342_s18, %s6335_s29 }
 0x144   : > { %p6339_p7 = pneg %p6338_p4 }
 0x145   : > { %p6345_p5 = por %p6344_p0, %p6343_p13 }
 0x147   : > { %p6346_p9 = pnand %p6345_p5, %p6339_p7 }
 0x149   : > { %6349 = shalt.err (!%p6346_p9)
}
 0x14a   : > { %5243 = dma.hbm_to_vmem [thread:$0]  (!%p7370_p3), %s6894_s21, 192, %s509_s28, %s6770_s0  }
 0x14b   : > { %s7373_s4 = sld [smem:[#allocation35_spill]] }
 0x151   : > { %p7374_p8 = scmp.ne.s32.totalorder %s7373_s4, 0 }
 0x152   : > { %p7375_p11 = scmp.eq.s32.totalorder (!%p7374_p8), %s6599_s13, 0 }
 0x153   : > { %517 = sbr.rel (%p7374_p8) target bundleno = 1909 (0x775), region = 68 }
 0x15a   : > { %6411 = dma.done.wait (%p7375_p11), [#allocation4], 32768   ;;  %p7376_p6 = pmov %p7375_p11 }
 0x15c   : > { %6413 = vsyncadd (%p7376_p6), [#allocation4], 4294934528  ;;  %p7377_p1 = pmov %p7376_p6 }
 0x15e   : > { %6415 = dma.done.wait (%p7377_p1), [#allocation7], 128   ;;  %p7378_p10 = pmov %p7377_p1 }
 0x15f   : > { %p7379_p12 = pmov %p7377_p1 }
 0x160   : > { %6417 = vsyncadd (%p7378_p10), [#allocation7], 4294967168 }
 0x161   : > { %6419 = dma.done.wait (%p7379_p12), [#allocation10], 8224   ;;  %p7380_p3 = pmov %p7377_p1 }
 0x162   : > { %p7381_p2 = pmov %p7377_p1 }
 0x163   : > { %6421 = vsyncadd (%p7380_p3), [#allocation10], 4294959072 }
 0x164   : > { %6423 = dma.done.wait (%p7381_p2), [#allocation13], 2080   ;;  %p7382_p4 = pmov %p7377_p1 }
 0x165   : > { %p7383_p7 = pmov %p7377_p1 }
 0x166   : > { %6425 = vsyncadd (%p7382_p4), [#allocation13], 4294965216 }
 0x167   : > { %6427 = dma.done.wait (%p7383_p7), [#allocation16], 32   ;;  %p7384_p13 = pmov %p7377_p1 }
 0x168   : > { %s555_s27 = sand.u32 1, %s6599_s13   ;;  %s6940_s0 = sand.u32 1, %s6444_s22  }
 0x169   : > { %6429 = vsyncadd (%p7384_p13), [#allocation16], 4294967264  ;;  %s5164_s12 = smul.u32 768, %s6940_s0  ;;  %s556_s8 = scalar_lea.sflag [#allocation19], %s555_s27 }
 0x16a   : > { %p7385_p0 = scmp.ne.s32.totalorder %s7359_s20, 0 }
 0x16b   : > { %s6943_s25 = scalar_lea.vmem [#allocation18], %s5164_s12 }
 0x16c   : > { %6431 = dma.done.wait (%p7385_p0), %s556_s8, 12480  }
 0x16d   : > { %6433 = vsyncadd (%p7385_p0), %s556_s8, 4294954816  ;;  %s5165_s26 = smul.u32 12, %s6940_s0  ;;  %s7386_s13 = sld [smem:[#allocation30_spill]] }
 0x16e   : > { %s5166_s21 = smul.u32 96, %s6940_s0 }
 0x16f   : > { %s6951_s15 = scalar_lea.vmem [#allocation20], %s5165_s26 }
 0x170   : > { %s6953_s28 = scalar_lea.vmem [#allocation21], %s5166_s21 }
 0x173   : > { %p4666_p5 = scmp.ne.s32.totalorder %s7386_s13, 0 }
 0x174   : > { %v5352_v0 = vld [vmem:[#allocation3 + $0x4] ss:$16 sps:$4 sm:$0xff] (!%p4666_p5)   ;;  %v5356_v2 = vld [vmem:[#allocation3] ss:$16 sps:$4 sm:$0xff] (!%p4666_p5)   ;;  %s7387_s17 = sld [smem:[#allocation40_spill]] (!%p4666_p5) }
 0x175   : > { %627 = sbr.rel (%p4666_p5) target bundleno = 1569 (0x621), region = 116  ;;  %v5354_v1 = vld [vmem:[#allocation3 + $0x204] ss:$16 sps:$4 sm:$0xff] (!%p4666_p5)   ;;  %2196 = vmatprep.subr.bf16.mxu1 (!%p4666_p5), %v5352_v0  ;;  %v5357_v3 = vld [vmem:[#allocation3 + $0x200] ss:$16 sps:$4 sm:$0xff] (!%p4666_p5)  }
 0x176   : > { %2237 = vmatprep.subr.bf16.mxu0 (!%p4666_p5), %v5354_v1  ;;  %v5358_v4 = vld [vmem:[#allocation3 + $0x24] ss:$16 sps:$4 sm:$0xff] (!%p4666_p5)   ;;  %2197 = vmatpush1.bf16.msra.mxu1 (!%p4666_p5), %v5356_v2  ;;  %v5362_v6 = vld [vmem:[#allocation3 + $0x20] ss:$16 sps:$4 sm:$0xff] (!%p4666_p5)  }
 0x177   : > { %2238 = vmatpush1.bf16.msra.mxu0 (!%p4666_p5), %v5357_v3  ;;  %v5360_v5 = vld [vmem:[#allocation3 + $0x224] ss:$16 sps:$4 sm:$0xff] (!%p4666_p5)   ;;  %2198 = vmatprep.subr.bf16.mxu1 (!%p4666_p5), %v5358_v4  ;;  %v5363_v7 = vld [vmem:[#allocation3 + $0x220] ss:$16 sps:$4 sm:$0xff] (!%p4666_p5)  }
 0x178   : > { %2239 = vmatprep.subr.bf16.mxu0 (!%p4666_p5), %v5360_v5  ;;  %v5364_v8 = vld [vmem:[#allocation3 + $0x44] ss:$16 sps:$4 sm:$0xff] (!%p4666_p5)   ;;  %v5368_v10 = vld [vmem:[#allocation3 + $0x40] ss:$16 sps:$4 sm:$0xff] (!%p4666_p5)   ;;  %v5457_v5 = vld [vmem:[#allocation3 + $0xc] ss:$16 sps:$4 sm:$0xff] (!%p4666_p5)  }
 0x179   : > { %v5366_v9 = vld [vmem:[#allocation3 + $0x244] ss:$16 sps:$4 sm:$0xff] (!%p4666_p5)   ;;  %v5369_v11 = vld [vmem:[#allocation3 + $0x240] ss:$16 sps:$4 sm:$0xff] (!%p4666_p5)  }
 0x17a   : > { %2199 = vmatpush1.bf16.msra.mxu1 (!%p4666_p5), %v5362_v6  ;;  %v5370_v12 = vld [vmem:[#allocation3 + $0x64] ss:$16 sps:$4 sm:$0xff] (!%p4666_p5)   ;;  %v5374_v14 = vld [vmem:[#allocation3 + $0x60] ss:$16 sps:$4 sm:$0xff] (!%p4666_p5)  }
 0x17b   : > { %2240 = vmatpush1.bf16.msra.mxu0 (!%p4666_p5), %v5363_v7  ;;  %2200 = vmatprep.subr.bf16.mxu1 (!%p4666_p5), %v5364_v8  ;;  %v5372_v13 = vld [vmem:[#allocation3 + $0x264] ss:$16 sps:$4 sm:$0xff] (!%p4666_p5)   ;;  %v5375_v15 = vld [vmem:[#allocation3 + $0x260] ss:$16 sps:$4 sm:$0xff] (!%p4666_p5)  }
 0x17c   : > { %2241 = vmatprep.subr.bf16.mxu0 %v5366_v9  ;;  %v5376_v16 = vld [vmem:[#allocation3 + $0x84] ss:$16 sps:$4 sm:$0xff]   ;;  %v5380_v18 = vld [vmem:[#allocation3 + $0x80] ss:$16 sps:$4 sm:$0xff]   ;;  %v5455_v9 = vld [vmem:[#allocation3 + $0x8] ss:$16 sps:$4 sm:$0xff]  }
 0x17d   : > { %v5378_v17 = vld [vmem:[#allocation3 + $0x284] ss:$16 sps:$4 sm:$0xff]   ;;  %v5381_v19 = vld [vmem:[#allocation3 + $0x280] ss:$16 sps:$4 sm:$0xff]  }
 0x17e   : > { %2201 = vmatpush1.bf16.msra.mxu1 %v5368_v10  ;;  %v5382_v20 = vld [vmem:[#allocation3 + $0xa4] ss:$16 sps:$4 sm:$0xff]   ;;  %v5386_v22 = vld [vmem:[#allocation3 + $0xa0] ss:$16 sps:$4 sm:$0xff]  }
 0x17f   : > { %2242 = vmatpush1.bf16.msra.mxu0 %v5369_v11  ;;  %2202 = vmatprep.subr.bf16.mxu1 %v5370_v12  ;;  %v5384_v21 = vld [vmem:[#allocation3 + $0x2a4] ss:$16 sps:$4 sm:$0xff]   ;;  %v5387_v23 = vld [vmem:[#allocation3 + $0x2a0] ss:$16 sps:$4 sm:$0xff]   ;;  %v5463_v11 = vld [vmem:[#allocation3 + $0x2c] ss:$16 sps:$4 sm:$0xff]  }
 0x180   : > { %2243 = vmatprep.subr.bf16.mxu0 %v5372_v13  ;;  %v5388_v24 = vld [vmem:[#allocation3 + $0xc4] ss:$16 sps:$4 sm:$0xff]   ;;  %v5392_v26 = vld [vmem:[#allocation3 + $0xc0] ss:$16 sps:$4 sm:$0xff]   ;;  %v5461_v13 = vld [vmem:[#allocation3 + $0x28] ss:$16 sps:$4 sm:$0xff]  }
 0x181   : > { %v5390_v25 = vld [vmem:[#allocation3 + $0x2c4] ss:$16 sps:$4 sm:$0xff]   ;;  %v5393_v27 = vld [vmem:[#allocation3 + $0x2c0] ss:$16 sps:$4 sm:$0xff]  }
 0x182   : > { %2203 = vmatpush1.bf16.msra.mxu1 %v5374_v14  ;;  %v5394_v28 = vld [vmem:[#allocation3 + $0xe4] ss:$16 sps:$4 sm:$0xff]   ;;  %v5398_v30 = vld [vmem:[#allocation3 + $0xe0] ss:$16 sps:$4 sm:$0xff]  }
 0x183   : > { %2244 = vmatpush1.bf16.msra.mxu0 %v5375_v15  ;;  %2204 = vmatprep.subr.bf16.mxu1 %v5376_v16  ;;  %v5396_v29 = vld [vmem:[#allocation3 + $0x2e4] ss:$16 sps:$4 sm:$0xff]   ;;  %v5399_v31 = vld [vmem:[#allocation3 + $0x2e0] ss:$16 sps:$4 sm:$0xff]   ;;  %v5469_v15 = vld [vmem:[#allocation3 + $0x4c] ss:$16 sps:$4 sm:$0xff]  }
 0x184   : > { %2245 = vmatprep.subr.bf16.mxu0 %v5378_v17  ;;  %v5400_v32 = vld [vmem:[#allocation3 + $0x104] ss:$16 sps:$4 sm:$0xff]   ;;  %v5404_v34 = vld [vmem:[#allocation3 + $0x100] ss:$16 sps:$4 sm:$0xff]   ;;  %v5467_v17 = vld [vmem:[#allocation3 + $0x48] ss:$16 sps:$4 sm:$0xff]  }
 0x185   : > { %v5402_v33 = vld [vmem:[#allocation3 + $0x304] ss:$16 sps:$4 sm:$0xff]   ;;  %v5405_v35 = vld [vmem:[#allocation3 + $0x300] ss:$16 sps:$4 sm:$0xff]  }
 0x186   : > { %2205 = vmatpush1.bf16.msra.mxu1 %v5380_v18  ;;  %v5406_v36 = vld [vmem:[#allocation3 + $0x124] ss:$16 sps:$4 sm:$0xff]   ;;  %v5410_v38 = vld [vmem:[#allocation3 + $0x120] ss:$16 sps:$4 sm:$0xff]  }
 0x187   : > { %2246 = vmatpush1.bf16.msra.mxu0 %v5381_v19  ;;  %2206 = vmatprep.subr.bf16.mxu1 %v5382_v20  ;;  %v5408_v37 = vld [vmem:[#allocation3 + $0x324] ss:$16 sps:$4 sm:$0xff]   ;;  %v5411_v39 = vld [vmem:[#allocation3 + $0x320] ss:$16 sps:$4 sm:$0xff]   ;;  %v5475_v19 = vld [vmem:[#allocation3 + $0x6c] ss:$16 sps:$4 sm:$0xff]  }
 0x188   : > { %2247 = vmatprep.subr.bf16.mxu0 %v5384_v21  ;;  %v5412_v40 = vld [vmem:[#allocation3 + $0x144] ss:$16 sps:$4 sm:$0xff]   ;;  %v5416_v42 = vld [vmem:[#allocation3 + $0x140] ss:$16 sps:$4 sm:$0xff]   ;;  %v5473_v21 = vld [vmem:[#allocation3 + $0x68] ss:$16 sps:$4 sm:$0xff]  }
 0x189   : > { %v5414_v41 = vld [vmem:[#allocation3 + $0x344] ss:$16 sps:$4 sm:$0xff]   ;;  %v5417_v43 = vld [vmem:[#allocation3 + $0x340] ss:$16 sps:$4 sm:$0xff]  }
 0x18a   : > { %2207 = vmatpush1.bf16.msra.mxu1 %v5386_v22  ;;  %v5418_v44 = vld [vmem:[#allocation3 + $0x164] ss:$16 sps:$4 sm:$0xff]   ;;  %v628_v46 = vld [vmem:[%s7387_s17] sm:$0xff] }
 0x18b   : > { %2248 = vmatpush1.bf16.msra.mxu0 %v5387_v23  ;;  %2208 = vmatprep.subr.bf16.mxu1 %v5388_v24  ;;  %v5420_v45 = vld [vmem:[#allocation3 + $0x364] ss:$16 sps:$4 sm:$0xff]   ;;  %v6959_v47 = vcombine.high %v628_v46, %v628_v46  ;;  %v5422_v49 = vld [vmem:[#allocation3 + $0x160] ss:$16 sps:$4 sm:$0xff]   ;;  %v6968_v6 = vcombine.low %v628_v46, %v628_v46  ;;  %v5481_v23 = vld [vmem:[#allocation3 + $0x8c] ss:$16 sps:$4 sm:$0xff]  }
 0x18c   : > { %2249 = vmatprep.subr.bf16.mxu0 %v5390_v25  ;;  %v629_v48 = vld [vmem:[%s7387_s17 + $0x8] sm:$0xff]  ;;  %v5423_v50 = vld [vmem:[#allocation3 + $0x360] ss:$16 sps:$4 sm:$0xff]  }
 0x18d   : > { %v6964_v51 = vcombine.high %v629_v48, %v629_v48  ;;  %v5424_v52 = vld [vmem:[#allocation3 + $0x184] ss:$16 sps:$4 sm:$0xff]   ;;  %2228 = vmatprep.mubr.bf16.mxu1 %v6959_v47  ;;  %v5428_v54 = vld [vmem:[#allocation3 + $0x180] ss:$16 sps:$4 sm:$0xff]   ;;  %v6970_v7 = vcombine.low %v629_v48, %v629_v48  ;;  %v5479_v25 = vld [vmem:[#allocation3 + $0x88] ss:$16 sps:$4 sm:$0xff]  }
 0x18e   : > { %2209 = vmatpush1.bf16.msra.mxu1 %v5392_v26  ;;  %v5426_v53 = vld [vmem:[#allocation3 + $0x384] ss:$16 sps:$4 sm:$0xff]   ;;  %v5429_v55 = vld [vmem:[#allocation3 + $0x380] ss:$16 sps:$4 sm:$0xff]  }
 0x18f   : > { %2250 = vmatpush1.bf16.msra.mxu0 %v5393_v27  ;;  %2210 = vmatprep.subr.bf16.mxu1 %v5394_v28  ;;  %v5430_v56 = vld [vmem:[#allocation3 + $0x1a4] ss:$16 sps:$4 sm:$0xff]   ;;  %v5434_v58 = vld [vmem:[#allocation3 + $0x1a0] ss:$16 sps:$4 sm:$0xff]   ;;  %v5487_v27 = vld [vmem:[#allocation3 + $0xac] ss:$16 sps:$4 sm:$0xff]  }
 0x190   : > { %2251 = vmatprep.subr.bf16.mxu0 %v5396_v29  ;;  %2269 = vmatprep.mubr.bf16.mxu0 %v6964_v51  ;;  %v5432_v57 = vld [vmem:[#allocation3 + $0x3a4] ss:$16 sps:$4 sm:$0xff]   ;;  %v5435_v59 = vld [vmem:[#allocation3 + $0x3a0] ss:$16 sps:$4 sm:$0xff]   ;;  %v5485_v29 = vld [vmem:[#allocation3 + $0xa8] ss:$16 sps:$4 sm:$0xff]  }
 0x191   : > { %v5436_v60 = vld [vmem:[#allocation3 + $0x1c4] ss:$16 sps:$4 sm:$0xff]   ;;  %v5440_v62 = vld [vmem:[#allocation3 + $0x1c0] ss:$16 sps:$4 sm:$0xff]  }
 0x192   : > { %2211 = vmatpush1.bf16.msra.mxu1 %v5398_v30  ;;  %v5438_v61 = vld [vmem:[#allocation3 + $0x3c4] ss:$16 sps:$4 sm:$0xff]   ;;  %v5441_v63 = vld [vmem:[#allocation3 + $0x3c0] ss:$16 sps:$4 sm:$0xff]  }
 0x193   : > { %2252 = vmatpush1.bf16.msra.mxu0 %v5399_v31  ;;  %2212 = vmatprep.subr.bf16.mxu1 %v5400_v32  ;;  %v5442_v0 = vld [vmem:[#allocation3 + $0x1e4] ss:$16 sps:$4 sm:$0xff]   ;;  %v5446_v2 = vld [vmem:[#allocation3 + $0x1e0] ss:$16 sps:$4 sm:$0xff]   ;;  %v5493_v31 = vld [vmem:[#allocation3 + $0xcc] ss:$16 sps:$4 sm:$0xff]  }
 0x194   : > { %2253 = vmatprep.subr.bf16.mxu0 %v5402_v33  ;;  %v5444_v1 = vld [vmem:[#allocation3 + $0x3e4] ss:$16 sps:$4 sm:$0xff]   ;;  %v5447_v3 = vld [vmem:[#allocation3 + $0x3e0] ss:$16 sps:$4 sm:$0xff]  }
 0x195   : > { %v5454_v4 = vld [vmem:[#allocation3 + $0x404] ss:$16 sps:$4 sm:$0xff]   ;;  %v5452_v8 = vld [vmem:[#allocation3 + $0x400] ss:$16 sps:$4 sm:$0xff]  }
 0x196   : > { %2213 = vmatpush1.bf16.msra.mxu1 %v5404_v34  ;;  %v5460_v10 = vld [vmem:[#allocation3 + $0x424] ss:$16 sps:$4 sm:$0xff]   ;;  %v5458_v12 = vld [vmem:[#allocation3 + $0x420] ss:$16 sps:$4 sm:$0xff]  }
 0x197   : > { %2254 = vmatpush1.bf16.msra.mxu0 %v5405_v35  ;;  %2214 = vmatprep.subr.bf16.mxu1 %v5406_v36  ;;  %v5466_v14 = vld [vmem:[#allocation3 + $0x444] ss:$16 sps:$4 sm:$0xff]   ;;  %v5464_v16 = vld [vmem:[#allocation3 + $0x440] ss:$16 sps:$4 sm:$0xff]   ;;  %v5491_v35 = vld [vmem:[#allocation3 + $0xc8] ss:$16 sps:$4 sm:$0xff]  }
 0x198   : > { %2255 = vmatprep.subr.bf16.mxu0 %v5408_v37  ;;  %v5472_v18 = vld [vmem:[#allocation3 + $0x464] ss:$16 sps:$4 sm:$0xff]   ;;  %v5470_v20 = vld [vmem:[#allocation3 + $0x460] ss:$16 sps:$4 sm:$0xff]   ;;  %v5499_v37 = vld [vmem:[#allocation3 + $0xec] ss:$16 sps:$4 sm:$0xff]  }
 0x199   : > { %v5478_v22 = vld [vmem:[#allocation3 + $0x484] ss:$16 sps:$4 sm:$0xff]   ;;  %v5476_v24 = vld [vmem:[#allocation3 + $0x480] ss:$16 sps:$4 sm:$0xff]  }
 0x19a   : > { %2215 = vmatpush1.bf16.msra.mxu1 %v5410_v38  ;;  %v5484_v26 = vld [vmem:[#allocation3 + $0x4a4] ss:$16 sps:$4 sm:$0xff]   ;;  %v5482_v28 = vld [vmem:[#allocation3 + $0x4a0] ss:$16 sps:$4 sm:$0xff]  }
 0x19b   : > { %2256 = vmatpush1.bf16.msra.mxu0 %v5411_v39  ;;  %2216 = vmatprep.subr.bf16.mxu1 %v5412_v40  ;;  %v5490_v30 = vld [vmem:[#allocation3 + $0x4c4] ss:$16 sps:$4 sm:$0xff]   ;;  %v6978_v32 = vld [vmem:[%s7387_s17 + $0x10] sm:$0xff]  ;;  %v5497_v39 = vld [vmem:[#allocation3 + $0xe8] ss:$16 sps:$4 sm:$0xff]  }
 0x19c   : > { %2257 = vmatprep.subr.bf16.mxu0 %v5414_v41  ;;  %v5488_v33 = vld [vmem:[#allocation3 + $0x4c0] ss:$16 sps:$4 sm:$0xff]   ;;  %v6982_v34 = vcombine.high %v6978_v32, %v6978_v32  ;;  %v5496_v36 = vld [vmem:[#allocation3 + $0x4e4] ss:$16 sps:$4 sm:$0xff]   ;;  %v5505_v41 = vld [vmem:[#allocation3 + $0x10c] ss:$16 sps:$4 sm:$0xff]  }
 0x19d   : > { %v5494_v38 = vld [vmem:[#allocation3 + $0x4e0] ss:$16 sps:$4 sm:$0xff]   ;;  %v5502_v40 = vld [vmem:[#allocation3 + $0x504] ss:$16 sps:$4 sm:$0xff]  }
 0x19e   : > { %2217 = vmatpush1.bf16.msra.mxu1 %v5416_v42  ;;  %v5500_v42 = vld [vmem:[#allocation3 + $0x500] ss:$16 sps:$4 sm:$0xff]   ;;  %v5514_v48 = vld [vmem:[#allocation3 + $0x544] ss:$16 sps:$4 sm:$0xff]  }
 0x19f   : > { %2258 = vmatpush1.bf16.msra.mxu0 %v5417_v43  ;;  %2218 = vmatprep.subr.bf16.mxu1 %v5418_v44  ;;  %v5503_v43 = vld [vmem:[#allocation3 + $0x108] ss:$16 sps:$4 sm:$0xff]   ;;  %v5508_v44 = vld [vmem:[#allocation3 + $0x524] ss:$16 sps:$4 sm:$0xff]   ;;  %v5506_v46 = vld [vmem:[#allocation3 + $0x520] ss:$16 sps:$4 sm:$0xff]  }
 0x1a0   : > { %2259 = vmatprep.subr.bf16.mxu0 %v5420_v45  ;;  %v5511_v45 = vld [vmem:[#allocation3 + $0x12c] ss:$16 sps:$4 sm:$0xff]  }
 0x1a2   : > { %2219 = vmatpush1.bf16.msra.mxu1 %v5422_v49  ;;  %v5517_v49 = vld [vmem:[#allocation3 + $0x14c] ss:$16 sps:$4 sm:$0xff]  }
 0x1a3   : > { %2260 = vmatpush1.bf16.msra.mxu0 %v5423_v50  ;;  %2220 = vmatprep.subr.bf16.mxu1 %v5424_v52  ;;  %v5512_v50 = vld [vmem:[#allocation3 + $0x540] ss:$16 sps:$4 sm:$0xff]   ;;  %v5515_v52 = vld [vmem:[#allocation3 + $0x148] ss:$16 sps:$4 sm:$0xff]  }
 0x1a4   : > { %2261 = vmatprep.subr.bf16.mxu0 %v5426_v53  ;;  %v5520_v53 = vld [vmem:[#allocation3 + $0x564] ss:$16 sps:$4 sm:$0xff]  }
 0x1a6   : > { %2221 = vmatpush1.bf16.msra.mxu1 %v5428_v54  ;;  %v5523_v54 = vld [vmem:[#allocation3 + $0x16c] ss:$16 sps:$4 sm:$0xff]  }
 0x1a7   : > { %2262 = vmatpush1.bf16.msra.mxu0 %v5429_v55  ;;  %2222 = vmatprep.subr.bf16.mxu1 %v5430_v56  ;;  %v5518_v55 = vld [vmem:[#allocation3 + $0x560] ss:$16 sps:$4 sm:$0xff]   ;;  %v5521_v56 = vld [vmem:[#allocation3 + $0x168] ss:$16 sps:$4 sm:$0xff]  }
 0x1a8   : > { %2263 = vmatprep.subr.bf16.mxu0 %v5432_v57  ;;  %v5526_v57 = vld [vmem:[#allocation3 + $0x584] ss:$16 sps:$4 sm:$0xff]  }
 0x1aa   : > { %2223 = vmatpush1.bf16.msra.mxu1 %v5434_v58  ;;  %v5529_v58 = vld [vmem:[#allocation3 + $0x18c] ss:$16 sps:$4 sm:$0xff]  }
 0x1ab   : > { %2264 = vmatpush1.bf16.msra.mxu0 %v5435_v59  ;;  %2224 = vmatprep.subr.bf16.mxu1 %v5436_v60  ;;  %v5524_v59 = vld [vmem:[#allocation3 + $0x580] ss:$16 sps:$4 sm:$0xff]   ;;  %v5527_v60 = vld [vmem:[#allocation3 + $0x188] ss:$16 sps:$4 sm:$0xff]  }
 0x1ac   : > { %2265 = vmatprep.subr.bf16.mxu0 %v5438_v61  ;;  %v5532_v61 = vld [vmem:[#allocation3 + $0x5a4] ss:$16 sps:$4 sm:$0xff]  }
 0x1ae   : > { %2225 = vmatpush1.bf16.msra.mxu1 %v5440_v62  ;;  %v5535_v62 = vld [vmem:[#allocation3 + $0x1ac] ss:$16 sps:$4 sm:$0xff]  }
 0x1af   : > { %2266 = vmatpush1.bf16.msra.mxu0 %v5441_v63  ;;  %2226 = vmatprep.subr.bf16.mxu1 %v5442_v0  ;;  %v5530_v63 = vld [vmem:[#allocation3 + $0x5a0] ss:$16 sps:$4 sm:$0xff]   ;;  %v5533_v0 = vld [vmem:[#allocation3 + $0x1a8] ss:$16 sps:$4 sm:$0xff]  }
 0x1b0   : > { %2267 = vmatprep.subr.bf16.mxu0 %v5444_v1  ;;  %v5538_v1 = vld [vmem:[#allocation3 + $0x5c4] ss:$16 sps:$4 sm:$0xff]  }
 0x1b2   : > { %2227 = vmatpush1.bf16.msra.mxu1 %v5446_v2  ;;  %v5541_v2 = vld [vmem:[#allocation3 + $0x1cc] ss:$16 sps:$4 sm:$0xff]  }
 0x1b3   : > { %2268 = vmatpush1.bf16.msra.mxu0 %v5447_v3  ;;  %2360 = vmatprep.subr.bf16.mxu1 %v5457_v5  ;;  %v5536_v3 = vld [vmem:[#allocation3 + $0x5c0] ss:$16 sps:$4 sm:$0xff]   ;;  %v5544_v5 = vld [vmem:[#allocation3 + $0x5e4] ss:$16 sps:$4 sm:$0xff]  }
 0x1b4   : > { %2278 = vmatprep.subr.bf16.mxu0 %v5454_v4  ;;  %v5539_v4 = vld [vmem:[#allocation3 + $0x1c8] ss:$16 sps:$4 sm:$0xff]  }
 0x1b5   : > { %2229 = vmatmul.mubr.bf16.vlgmr.msra.gmra.mrb[0].mxu1 %v6968_v6 }
 0x1b6   : > { %2270 = vmatmul.mubr.bf16.vlgmr.msra.gmra.mrb[0].mxu0 %v6970_v7  ;;  %2361 = vmatpush1.bf16.msra.mxu1 %v5455_v9  ;;  %v5542_v9 = vld [vmem:[#allocation3 + $0x5e0] ss:$16 sps:$4 sm:$0xff]  }
 0x1b7   : > { %2279 = vmatpush1.bf16.msra.mxu0 %v5452_v8  ;;  %2362 = vmatprep.subr.bf16.mxu1 %v5463_v11  ;;  %v5547_v8 = vld [vmem:[#allocation3 + $0x1ec] ss:$16 sps:$4 sm:$0xff]   ;;  %v5552_v11 = vld [vmem:[#allocation3 + $0x604] ss:$16 sps:$4 sm:$0xff]  }
 0x1b8   : > { %2280 = vmatprep.subr.bf16.mxu0 %v5460_v10  ;;  %2392 = vmatprep.mubr.bf16.mxu1 %v6959_v47  ;;  %v5509_v47 = vld [vmem:[#allocation3 + $0x128] ss:$16 sps:$4 sm:$0xff]  }
 0x1b9   : > { %2310 = vmatprep.mubr.bf16.mxu0 %v6982_v34  ;;  %v5545_v10 = vld [vmem:[#allocation3 + $0x1e8] ss:$16 sps:$4 sm:$0xff]  }
 0x1ba   : > { %2363 = vmatpush1.bf16.msra.mxu1 %v5461_v13  ;;  %v6987_v13 = vcombine.low %v6978_v32, %v6978_v32  ;;  %v5577_v32 = vld [vmem:[#allocation3 + $0x288] ss:$16 sps:$4 sm:$0xff]  }
 0x1bb   : > { %2281 = vmatpush1.bf16.msra.mxu0 %v5458_v12  ;;  %2364 = vmatprep.subr.bf16.mxu1 %v5469_v15  ;;  %v5555_v12 = vld [vmem:[#allocation3 + $0x20c] ss:$16 sps:$4 sm:$0xff]   ;;  %v5553_v15 = vld [vmem:[#allocation3 + $0x208] ss:$16 sps:$4 sm:$0xff]  }
 0x1bc   : > { %2282 = vmatprep.subr.bf16.mxu0 %v5466_v14  ;;  %v5550_v14 = vld [vmem:[#allocation3 + $0x600] ss:$16 sps:$4 sm:$0xff]  }
 0x1be   : > { %2365 = vmatpush1.bf16.msra.mxu1 %v5467_v17  ;;  %v5561_v17 = vld [vmem:[#allocation3 + $0x22c] ss:$16 sps:$4 sm:$0xff]  }
 0x1bf   : > { %2283 = vmatpush1.bf16.msra.mxu0 %v5464_v16  ;;  %2366 = vmatprep.subr.bf16.mxu1 %v5475_v19  ;;  %v5558_v16 = vld [vmem:[#allocation3 + $0x624] ss:$16 sps:$4 sm:$0xff]  }
 0x1c0   : > { %2284 = vmatprep.subr.bf16.mxu0 %v5472_v18  ;;  %v6992_v18 = vld [vmem:[%s7387_s17 + $0x18] sm:$0xff] }
 0x1c1   : > { %v6996_v19 = vcombine.high %v6992_v18, %v6992_v18 }
 0x1c2   : > { %2367 = vmatpush1.bf16.msra.mxu1 %v5473_v21  ;;  %v5559_v21 = vld [vmem:[#allocation3 + $0x228] ss:$16 sps:$4 sm:$0xff]  }
 0x1c3   : > { %2285 = vmatpush1.bf16.msra.mxu0 %v5470_v20  ;;  %2368 = vmatprep.subr.bf16.mxu1 %v5481_v23  ;;  %v5556_v20 = vld [vmem:[#allocation3 + $0x620] ss:$16 sps:$4 sm:$0xff]   ;;  %v5567_v23 = vld [vmem:[#allocation3 + $0x24c] ss:$16 sps:$4 sm:$0xff]  }
 0x1c4   : > { %2286 = vmatprep.subr.bf16.mxu0 %v5478_v22  ;;  %v5564_v22 = vld [vmem:[#allocation3 + $0x644] ss:$16 sps:$4 sm:$0xff]  }
 0x1c6   : > { %2369 = vmatpush1.bf16.msra.mxu1 %v5479_v25  ;;  %v5565_v25 = vld [vmem:[#allocation3 + $0x248] ss:$16 sps:$4 sm:$0xff]  }
 0x1c7   : > { %2287 = vmatpush1.bf16.msra.mxu0 %v5476_v24  ;;  %2370 = vmatprep.subr.bf16.mxu1 %v5487_v27  ;;  %v5562_v24 = vld [vmem:[#allocation3 + $0x640] ss:$16 sps:$4 sm:$0xff]  }
 0x1c8   : > { %2288 = vmatprep.subr.bf16.mxu0 %v5484_v26  ;;  %v5570_v26 = vld [vmem:[#allocation3 + $0x664] ss:$16 sps:$4 sm:$0xff]   ;;  %v5568_v27 = vld [vmem:[#allocation3 + $0x660] ss:$16 sps:$4 sm:$0xff]  }
 0x1ca   : > { %2371 = vmatpush1.bf16.msra.mxu1 %v5485_v29  ;;  %v5576_v29 = vld [vmem:[#allocation3 + $0x684] ss:$16 sps:$4 sm:$0xff]  }
 0x1cb   : > { %2289 = vmatpush1.bf16.msra.mxu0 %v5482_v28  ;;  %2372 = vmatprep.subr.bf16.mxu1 %v5493_v31  ;;  %v5571_v28 = vld [vmem:[#allocation3 + $0x268] ss:$16 sps:$4 sm:$0xff]   ;;  %v5574_v31 = vld [vmem:[#allocation3 + $0x680] ss:$16 sps:$4 sm:$0xff]  }
 0x1cc   : > { %2290 = vmatprep.subr.bf16.mxu0 %v5490_v30  ;;  %v5579_v30 = vld [vmem:[#allocation3 + $0x28c] ss:$16 sps:$4 sm:$0xff]  }
 0x1ce   : > { %2373 = vmatpush1.bf16.msra.mxu1 %v5491_v35  ;;  %v5580_v35 = vld [vmem:[#allocation3 + $0x6a0] ss:$16 sps:$4 sm:$0xff]  }
 0x1cf   : > { %2291 = vmatpush1.bf16.msra.mxu0 %v5488_v33  ;;  %2374 = vmatprep.subr.bf16.mxu1 %v5499_v37  ;;  %v5585_v33 = vld [vmem:[#allocation3 + $0x2ac] ss:$16 sps:$4 sm:$0xff]   ;;  %v5588_v37 = vld [vmem:[#allocation3 + $0x6c4] ss:$16 sps:$4 sm:$0xff]  }
 0x1d0   : > { %2292 = vmatprep.subr.bf16.mxu0 %v5496_v36  ;;  %v5583_v36 = vld [vmem:[#allocation3 + $0x2a8] ss:$16 sps:$4 sm:$0xff]  }
 0x1d2   : > { %2375 = vmatpush1.bf16.msra.mxu1 %v5497_v39  ;;  %v5586_v39 = vld [vmem:[#allocation3 + $0x6c0] ss:$16 sps:$4 sm:$0xff]  }
 0x1d3   : > { %2293 = vmatpush1.bf16.msra.mxu0 %v5494_v38  ;;  %2376 = vmatprep.subr.bf16.mxu1 %v5505_v41  ;;  %v5591_v38 = vld [vmem:[#allocation3 + $0x2cc] ss:$16 sps:$4 sm:$0xff]   ;;  %v5594_v41 = vld [vmem:[#allocation3 + $0x6e4] ss:$16 sps:$4 sm:$0xff]  }
 0x1d4   : > { %2294 = vmatprep.subr.bf16.mxu0 %v5502_v40  ;;  %v5589_v40 = vld [vmem:[#allocation3 + $0x2c8] ss:$16 sps:$4 sm:$0xff]  }
 0x1d6   : > { %2377 = vmatpush1.bf16.msra.mxu1 %v5503_v43  ;;  %v5592_v43 = vld [vmem:[#allocation3 + $0x6e0] ss:$16 sps:$4 sm:$0xff]  }
 0x1d7   : > { %2295 = vmatpush1.bf16.msra.mxu0 %v5500_v42  ;;  %2378 = vmatprep.subr.bf16.mxu1 %v5511_v45  ;;  %v5597_v42 = vld [vmem:[#allocation3 + $0x2ec] ss:$16 sps:$4 sm:$0xff]   ;;  %v5600_v45 = vld [vmem:[#allocation3 + $0x704] ss:$16 sps:$4 sm:$0xff]  }
 0x1d8   : > { %2296 = vmatprep.subr.bf16.mxu0 %v5508_v44  ;;  %v5595_v44 = vld [vmem:[#allocation3 + $0x2e8] ss:$16 sps:$4 sm:$0xff]  }
 0x1da   : > { %2379 = vmatpush1.bf16.msra.mxu1 %v5509_v47  ;;  %v5598_v47 = vld [vmem:[#allocation3 + $0x700] ss:$16 sps:$4 sm:$0xff]  }
 0x1db   : > { %2297 = vmatpush1.bf16.msra.mxu0 %v5506_v46  ;;  %2380 = vmatprep.subr.bf16.mxu1 %v5517_v49  ;;  %v5603_v46 = vld [vmem:[#allocation3 + $0x30c] ss:$16 sps:$4 sm:$0xff]   ;;  %v5606_v49 = vld [vmem:[#allocation3 + $0x724] ss:$16 sps:$4 sm:$0xff]  }
 0x1dc   : > { %2298 = vmatprep.subr.bf16.mxu0 %v5514_v48  ;;  %v5601_v48 = vld [vmem:[#allocation3 + $0x308] ss:$16 sps:$4 sm:$0xff]  }
 0x1de   : > { %2381 = vmatpush1.bf16.msra.mxu1 %v5515_v52  ;;  %v5604_v52 = vld [vmem:[#allocation3 + $0x720] ss:$16 sps:$4 sm:$0xff]  }
 0x1df   : > { %2299 = vmatpush1.bf16.msra.mxu0 %v5512_v50  ;;  %2382 = vmatprep.subr.bf16.mxu1 %v5523_v54  ;;  %v5609_v50 = vld [vmem:[#allocation3 + $0x32c] ss:$16 sps:$4 sm:$0xff]   ;;  %v5612_v54 = vld [vmem:[#allocation3 + $0x744] ss:$16 sps:$4 sm:$0xff]  }
 0x1e0   : > { %2300 = vmatprep.subr.bf16.mxu0 %v5520_v53  ;;  %v5607_v53 = vld [vmem:[#allocation3 + $0x328] ss:$16 sps:$4 sm:$0xff]  }
 0x1e2   : > { %2383 = vmatpush1.bf16.msra.mxu1 %v5521_v56  ;;  %v5610_v56 = vld [vmem:[#allocation3 + $0x740] ss:$16 sps:$4 sm:$0xff]  }
 0x1e3   : > { %2301 = vmatpush1.bf16.msra.mxu0 %v5518_v55  ;;  %2384 = vmatprep.subr.bf16.mxu1 %v5529_v58  ;;  %v5615_v55 = vld [vmem:[#allocation3 + $0x34c] ss:$16 sps:$4 sm:$0xff]   ;;  %v5618_v58 = vld [vmem:[#allocation3 + $0x764] ss:$16 sps:$4 sm:$0xff]  }
 0x1e4   : > { %2302 = vmatprep.subr.bf16.mxu0 %v5526_v57  ;;  %v5613_v57 = vld [vmem:[#allocation3 + $0x348] ss:$16 sps:$4 sm:$0xff]  }
 0x1e6   : > { %2385 = vmatpush1.bf16.msra.mxu1 %v5527_v60  ;;  %v5616_v60 = vld [vmem:[#allocation3 + $0x760] ss:$16 sps:$4 sm:$0xff]  }
 0x1e7   : > { %2303 = vmatpush1.bf16.msra.mxu0 %v5524_v59  ;;  %2386 = vmatprep.subr.bf16.mxu1 %v5535_v62  ;;  %v5621_v59 = vld [vmem:[#allocation3 + $0x36c] ss:$16 sps:$4 sm:$0xff]   ;;  %v5624_v62 = vld [vmem:[#allocation3 + $0x784] ss:$16 sps:$4 sm:$0xff]  }
 0x1e8   : > { %2304 = vmatprep.subr.bf16.mxu0 %v5532_v61  ;;  %v5619_v61 = vld [vmem:[#allocation3 + $0x368] ss:$16 sps:$4 sm:$0xff]  }
 0x1ea   : > { %2387 = vmatpush1.bf16.msra.mxu1 %v5533_v0  ;;  %v5622_v0 = vld [vmem:[#allocation3 + $0x780] ss:$16 sps:$4 sm:$0xff]  }
 0x1eb   : > { %2305 = vmatpush1.bf16.msra.mxu0 %v5530_v63  ;;  %2388 = vmatprep.subr.bf16.mxu1 %v5541_v2  ;;  %v5627_v63 = vld [vmem:[#allocation3 + $0x38c] ss:$16 sps:$4 sm:$0xff]   ;;  %v5630_v2 = vld [vmem:[#allocation3 + $0x7a4] ss:$16 sps:$4 sm:$0xff]  }
 0x1ec   : > { %2306 = vmatprep.subr.bf16.mxu0 %v5538_v1  ;;  %v5625_v1 = vld [vmem:[#allocation3 + $0x388] ss:$16 sps:$4 sm:$0xff]  }
 0x1ee   : > { %2389 = vmatpush1.bf16.msra.mxu1 %v5539_v4  ;;  %v5628_v4 = vld [vmem:[#allocation3 + $0x7a0] ss:$16 sps:$4 sm:$0xff]  }
 0x1ef   : > { %2307 = vmatpush1.bf16.msra.mxu0 %v5536_v3  ;;  %2390 = vmatprep.subr.bf16.mxu1 %v5547_v8  ;;  %v5633_v3 = vld [vmem:[#allocation3 + $0x3ac] ss:$16 sps:$4 sm:$0xff]   ;;  %v5636_v8 = vld [vmem:[#allocation3 + $0x7c4] ss:$16 sps:$4 sm:$0xff]  }
 0x1f0   : > { %2308 = vmatprep.subr.bf16.mxu0 %v5544_v5  ;;  %v5631_v5 = vld [vmem:[#allocation3 + $0x3a8] ss:$16 sps:$4 sm:$0xff]  }
 0x1f2   : > { %2391 = vmatpush1.bf16.msra.mxu1 %v5545_v10  ;;  %v5634_v10 = vld [vmem:[#allocation3 + $0x7c0] ss:$16 sps:$4 sm:$0xff]  }
 0x1f3   : > { %2309 = vmatpush1.bf16.msra.mxu0 %v5542_v9  ;;  %2401 = vmatprep.subr.bf16.mxu1 %v5555_v12  ;;  %v5639_v9 = vld [vmem:[#allocation3 + $0x3cc] ss:$16 sps:$4 sm:$0xff]   ;;  %v5642_v12 = vld [vmem:[#allocation3 + $0x7e4] ss:$16 sps:$4 sm:$0xff]  }
 0x1f4   : > { %2319 = vmatprep.subr.bf16.mxu0 %v5552_v11  ;;  %v5637_v11 = vld [vmem:[#allocation3 + $0x3c8] ss:$16 sps:$4 sm:$0xff]  }
 0x1f5   : > { %2393 = vmatmul.mubr.bf16.vlgmr.msra.gmra.mrb[4].mxu1 %v6968_v6  ;;  %v5573_v6 = vld [vmem:[#allocation3 + $0x26c] ss:$16 sps:$4 sm:$0xff]  }
 0x1f6   : > { %2311 = vmatmul.mubr.bf16.vlgmr.msra.gmra.mrb[0].mxu0 %v6987_v13  ;;  %2402 = vmatpush1.bf16.msra.mxu1 %v5553_v15  ;;  %v5640_v15 = vld [vmem:[#allocation3 + $0x7e0] ss:$16 sps:$4 sm:$0xff]  }
 0x1f7   : > { %2320 = vmatpush1.bf16.msra.mxu0 %v5550_v14  ;;  %2403 = vmatprep.subr.bf16.mxu1 %v5561_v17  ;;  %v5645_v14 = vld [vmem:[#allocation3 + $0x3ec] ss:$16 sps:$4 sm:$0xff]  }
 0x1f8   : > { %2321 = vmatprep.subr.bf16.mxu0 %v5558_v16  ;;  %2351 = vmatprep.mubr.bf16.mxu0 %v6996_v19  ;;  %v5643_v16 = vld [vmem:[#allocation3 + $0x3e8] ss:$16 sps:$4 sm:$0xff]   ;;  %v5650_v17 = vld [vmem:[#allocation3 + $0x40c] ss:$16 sps:$4 sm:$0xff]  }
 0x1f9   : > { %2433 = vmatprep.mubr.bf16.mxu1 %v6964_v51  ;;  %v5582_v51 = vld [vmem:[#allocation3 + $0x6a4] ss:$16 sps:$4 sm:$0xff]  }
 0x1fa   : > { %2404 = vmatpush1.bf16.msra.mxu1 %v5559_v21  ;;  %v7004_v21 = vcombine.low %v6992_v18, %v6992_v18  ;;  %v5657_v18 = vld [vmem:[#allocation3 + $0x468] ss:$16 sps:$4 sm:$0xff]  }
 0x1fb   : > { %2322 = vmatpush1.bf16.msra.mxu0 %v5556_v20  ;;  %2405 = vmatprep.subr.bf16.mxu1 %v5567_v23  ;;  %v5648_v20 = vld [vmem:[#allocation3 + $0x408] ss:$16 sps:$4 sm:$0xff]  }
 0x1fc   : > { %2323 = vmatprep.subr.bf16.mxu0 %v5564_v22  ;;  %v5653_v22 = vld [vmem:[#allocation3 + $0x42c] ss:$16 sps:$4 sm:$0xff]   ;;  %v5651_v23 = vld [vmem:[#allocation3 + $0x428] ss:$16 sps:$4 sm:$0xff]  }
 0x1fe   : > { %2406 = vmatpush1.bf16.msra.mxu1 %v5565_v25  ;;  %v5654_v25 = vld [vmem:[#allocation3 + $0x448] ss:$16 sps:$4 sm:$0xff]  }
 0x1ff   : > { %2324 = vmatpush1.bf16.msra.mxu0 %v5562_v24  ;;  %2407 = vmatprep.subr.bf16.mxu1 %v5573_v6  ;;  %v5656_v24 = vld [vmem:[#allocation3 + $0x44c] ss:$16 sps:$4 sm:$0xff]  }
 0x200   : > { %2325 = vmatprep.subr.bf16.mxu0 %v5570_v26  ;;  %v5659_v26 = vld [vmem:[#allocation3 + $0x46c] ss:$16 sps:$4 sm:$0xff]  }
 0x201   : > { %v5662_v6 = vld [vmem:[#allocation3 + $0x48c] ss:$16 sps:$4 sm:$0xff]  }
 0x202   : > { %2408 = vmatpush1.bf16.msra.mxu1 %v5571_v28  ;;  %v5665_v28 = vld [vmem:[#allocation3 + $0x4ac] ss:$16 sps:$4 sm:$0xff]  }
 0x203   : > { %2326 = vmatpush1.bf16.msra.mxu0 %v5568_v27  ;;  %2409 = vmatprep.subr.bf16.mxu1 %v5579_v30  ;;  %v5660_v27 = vld [vmem:[#allocation3 + $0x488] ss:$16 sps:$4 sm:$0xff]  }
 0x204   : > { %2327 = vmatprep.subr.bf16.mxu0 %v5576_v29  ;;  %v5663_v29 = vld [vmem:[#allocation3 + $0x4a8] ss:$16 sps:$4 sm:$0xff]  }
 0x205   : > { %v5666_v30 = vld [vmem:[#allocation3 + $0x4c8] ss:$16 sps:$4 sm:$0xff]  }
 0x206   : > { %2410 = vmatpush1.bf16.msra.mxu1 %v5577_v32  ;;  %v5674_v32 = vld [vmem:[#allocation3 + $0x50c] ss:$16 sps:$4 sm:$0xff]  }
 0x207   : > { %2328 = vmatpush1.bf16.msra.mxu0 %v5574_v31  ;;  %2411 = vmatprep.subr.bf16.mxu1 %v5585_v33  ;;  %v5669_v31 = vld [vmem:[#allocation3 + $0x4e8] ss:$16 sps:$4 sm:$0xff]   ;;  %v5677_v33 = vld [vmem:[#allocation3 + $0x52c] ss:$16 sps:$4 sm:$0xff]  }
 0x208   : > { %2329 = vmatprep.subr.bf16.mxu0 %v5582_v51  ;;  %v5672_v51 = vld [vmem:[#allocation3 + $0x508] ss:$16 sps:$4 sm:$0xff]  }
 0x20a   : > { %2412 = vmatpush1.bf16.msra.mxu1 %v5583_v36  ;;  %v5680_v36 = vld [vmem:[#allocation3 + $0x54c] ss:$16 sps:$4 sm:$0xff]  }
 0x20b   : > { %2330 = vmatpush1.bf16.msra.mxu0 %v5580_v35  ;;  %2413 = vmatprep.subr.bf16.mxu1 %v5591_v38  ;;  %v5675_v35 = vld [vmem:[#allocation3 + $0x528] ss:$16 sps:$4 sm:$0xff]   ;;  %v5683_v38 = vld [vmem:[#allocation3 + $0x56c] ss:$16 sps:$4 sm:$0xff]  }
 0x20c   : > { %2331 = vmatprep.subr.bf16.mxu0 %v5588_v37  ;;  %v5678_v37 = vld [vmem:[#allocation3 + $0x548] ss:$16 sps:$4 sm:$0xff]  }
 0x20e   : > { %2414 = vmatpush1.bf16.msra.mxu1 %v5589_v40  ;;  %v5686_v40 = vld [vmem:[#allocation3 + $0x58c] ss:$16 sps:$4 sm:$0xff]  }
 0x20f   : > { %2332 = vmatpush1.bf16.msra.mxu0 %v5586_v39  ;;  %2415 = vmatprep.subr.bf16.mxu1 %v5597_v42  ;;  %v5681_v39 = vld [vmem:[#allocation3 + $0x568] ss:$16 sps:$4 sm:$0xff]   ;;  %v5689_v42 = vld [vmem:[#allocation3 + $0x5ac] ss:$16 sps:$4 sm:$0xff]  }
 0x210   : > { %2333 = vmatprep.subr.bf16.mxu0 %v5594_v41  ;;  %v5684_v41 = vld [vmem:[#allocation3 + $0x588] ss:$16 sps:$4 sm:$0xff]  }
 0x212   : > { %2416 = vmatpush1.bf16.msra.mxu1 %v5595_v44  ;;  %v5692_v44 = vld [vmem:[#allocation3 + $0x5cc] ss:$16 sps:$4 sm:$0xff]  }
 0x213   : > { %2334 = vmatpush1.bf16.msra.mxu0 %v5592_v43  ;;  %2417 = vmatprep.subr.bf16.mxu1 %v5603_v46  ;;  %v5687_v43 = vld [vmem:[#allocation3 + $0x5a8] ss:$16 sps:$4 sm:$0xff]   ;;  %v5695_v46 = vld [vmem:[#allocation3 + $0x5ec] ss:$16 sps:$4 sm:$0xff]  }
 0x214   : > { %2335 = vmatprep.subr.bf16.mxu0 %v5600_v45  ;;  %v5690_v45 = vld [vmem:[#allocation3 + $0x5c8] ss:$16 sps:$4 sm:$0xff]  }
 0x216   : > { %2418 = vmatpush1.bf16.msra.mxu1 %v5601_v48  ;;  %v5698_v48 = vld [vmem:[#allocation3 + $0x60c] ss:$16 sps:$4 sm:$0xff]  }
 0x217   : > { %2336 = vmatpush1.bf16.msra.mxu0 %v5598_v47  ;;  %2419 = vmatprep.subr.bf16.mxu1 %v5609_v50  ;;  %v5693_v47 = vld [vmem:[#allocation3 + $0x5e8] ss:$16 sps:$4 sm:$0xff]   ;;  %v5701_v50 = vld [vmem:[#allocation3 + $0x62c] ss:$16 sps:$4 sm:$0xff]  }
 0x218   : > { %2337 = vmatprep.subr.bf16.mxu0 %v5606_v49  ;;  %v5696_v49 = vld [vmem:[#allocation3 + $0x608] ss:$16 sps:$4 sm:$0xff]  }
 0x21a   : > { %2420 = vmatpush1.bf16.msra.mxu1 %v5607_v53  ;;  %v5704_v53 = vld [vmem:[#allocation3 + $0x64c] ss:$16 sps:$4 sm:$0xff]  }
 0x21b   : > { %2338 = vmatpush1.bf16.msra.mxu0 %v5604_v52  ;;  %2421 = vmatprep.subr.bf16.mxu1 %v5615_v55  ;;  %v5699_v52 = vld [vmem:[#allocation3 + $0x628] ss:$16 sps:$4 sm:$0xff]   ;;  %v5707_v55 = vld [vmem:[#allocation3 + $0x66c] ss:$16 sps:$4 sm:$0xff]  }
 0x21c   : > { %2339 = vmatprep.subr.bf16.mxu0 %v5612_v54  ;;  %v5702_v54 = vld [vmem:[#allocation3 + $0x648] ss:$16 sps:$4 sm:$0xff]  }
 0x21e   : > { %2422 = vmatpush1.bf16.msra.mxu1 %v5613_v57  ;;  %v5710_v57 = vld [vmem:[#allocation3 + $0x68c] ss:$16 sps:$4 sm:$0xff]  }
 0x21f   : > { %2340 = vmatpush1.bf16.msra.mxu0 %v5610_v56  ;;  %2423 = vmatprep.subr.bf16.mxu1 %v5621_v59  ;;  %v5705_v56 = vld [vmem:[#allocation3 + $0x668] ss:$16 sps:$4 sm:$0xff]   ;;  %v5713_v59 = vld [vmem:[#allocation3 + $0x6ac] ss:$16 sps:$4 sm:$0xff]  }
 0x220   : > { %2341 = vmatprep.subr.bf16.mxu0 %v5618_v58  ;;  %v5708_v58 = vld [vmem:[#allocation3 + $0x688] ss:$16 sps:$4 sm:$0xff]  }
 0x222   : > { %2424 = vmatpush1.bf16.msra.mxu1 %v5619_v61 }
 0x223   : > { %2342 = vmatpush1.bf16.msra.mxu0 %v5616_v60  ;;  %2425 = vmatprep.subr.bf16.mxu1 %v5627_v63  ;;  %v5716_v60 = vld [vmem:[#allocation3 + $0x6cc] ss:$16 sps:$4 sm:$0xff]   ;;  %v5714_v63 = vld [vmem:[#allocation3 + $0x6c8] ss:$16 sps:$4 sm:$0xff]  }
 0x224   : > { %2343 = vmatprep.subr.bf16.mxu0 %v5624_v62 }
 0x226   : > { %2426 = vmatpush1.bf16.msra.mxu1 %v5625_v1  ;;  %v5719_v1 = vld [vmem:[#allocation3 + $0x6ec] ss:$16 sps:$4 sm:$0xff]  }
 0x227   : > { %2344 = vmatpush1.bf16.msra.mxu0 %v5622_v0  ;;  %2427 = vmatprep.subr.bf16.mxu1 %v5633_v3  ;;  %v5722_v3 = vld [vmem:[#allocation3 + $0x70c] ss:$16 sps:$4 sm:$0xff]  }
 0x228   : > { %2345 = vmatprep.subr.bf16.mxu0 %v5630_v2  ;;  %v5717_v2 = vld [vmem:[#allocation3 + $0x6e8] ss:$16 sps:$4 sm:$0xff]  }
 0x22a   : > { %2428 = vmatpush1.bf16.msra.mxu1 %v5631_v5  ;;  %v5725_v5 = vld [vmem:[#allocation3 + $0x72c] ss:$16 sps:$4 sm:$0xff]  }
 0x22b   : > { %2346 = vmatpush1.bf16.msra.mxu0 %v5628_v4  ;;  %2429 = vmatprep.subr.bf16.mxu1 %v5639_v9  ;;  %v5720_v4 = vld [vmem:[#allocation3 + $0x708] ss:$16 sps:$4 sm:$0xff]   ;;  %v5728_v9 = vld [vmem:[#allocation3 + $0x74c] ss:$16 sps:$4 sm:$0xff]  }
 0x22c   : > { %2347 = vmatprep.subr.bf16.mxu0 %v5636_v8  ;;  %v5723_v8 = vld [vmem:[#allocation3 + $0x728] ss:$16 sps:$4 sm:$0xff]  }
 0x22e   : > { %2430 = vmatpush1.bf16.msra.mxu1 %v5637_v11  ;;  %v5731_v11 = vld [vmem:[#allocation3 + $0x76c] ss:$16 sps:$4 sm:$0xff]  }
 0x22f   : > { %2348 = vmatpush1.bf16.msra.mxu0 %v5634_v10  ;;  %2431 = vmatprep.subr.bf16.mxu1 %v5645_v14  ;;  %v5726_v10 = vld [vmem:[#allocation3 + $0x748] ss:$16 sps:$4 sm:$0xff]   ;;  %v5734_v14 = vld [vmem:[#allocation3 + $0x78c] ss:$16 sps:$4 sm:$0xff]  }
 0x230   : > { %2349 = vmatprep.subr.bf16.mxu0 %v5642_v12  ;;  %v5729_v12 = vld [vmem:[#allocation3 + $0x768] ss:$16 sps:$4 sm:$0xff]  }
 0x232   : > { %2432 = vmatpush1.bf16.msra.mxu1 %v5643_v16  ;;  %v5737_v16 = vld [vmem:[#allocation3 + $0x7ac] ss:$16 sps:$4 sm:$0xff]  }
 0x233   : > { %2350 = vmatpush1.bf16.msra.mxu0 %v5640_v15  ;;  %2442 = vmatprep.subr.bf16.mxu1 %v5650_v17  ;;  %v5732_v15 = vld [vmem:[#allocation3 + $0x788] ss:$16 sps:$4 sm:$0xff]  }
 0x234   : > { %v5735_v17 = vld [vmem:[#allocation3 + $0x7a8] ss:$16 sps:$4 sm:$0xff]  }
 0x235   : > { %2434 = vmatmul.mubr.bf16.vlgmr.msra.gmra.mrb[4].mxu1 %v6970_v7  ;;  %v5668_v7 = vld [vmem:[#allocation3 + $0x4cc] ss:$16 sps:$4 sm:$0xff]  }
 0x236   : > { %2352 = vmatmul.mubr.bf16.vlgmr.msra.gmra.mrb[0].mxu0 %v7004_v21  ;;  %2443 = vmatpush1.bf16.msra.mxu1 %v5648_v20  ;;  %v5740_v20 = vld [vmem:[#allocation3 + $0x7cc] ss:$16 sps:$4 sm:$0xff]  }
 0x237   : > { %2474 = vmatprep.mubr.bf16.mxu1 %v6982_v34  ;;  %2444 = vmatprep.subr.bf16.mxu1 %v5653_v22  ;;  %v5671_v34 = vld [vmem:[#allocation3 + $0x4ec] ss:$16 sps:$4 sm:$0xff]   ;;  %v5738_v22 = vld [vmem:[#allocation3 + $0x7c8] ss:$16 sps:$4 sm:$0xff]  }
 0x23a   : > { %2445 = vmatpush1.bf16.msra.mxu1 %v5651_v23  ;;  %v5743_v23 = vld [vmem:[#allocation3 + $0x7ec] ss:$16 sps:$4 sm:$0xff]  }
 0x23b   : > { %2446 = vmatprep.subr.bf16.mxu1 %v5656_v24  ;;  %v5741_v24 = vld [vmem:[#allocation3 + $0x7e8] ss:$16 sps:$4 sm:$0xff]  }
 0x23e   : > { %2447 = vmatpush1.bf16.msra.mxu1 %v5654_v25  ;;  %v5746_v25 = vld [vmem:[#allocation9 + $0x4] ss:$8 sps:$4 sm:$0xff]  }
 0x23f   : > { %2448 = vmatprep.subr.bf16.mxu1 %v5659_v26  ;;  %3109 = vmatprep.subr.bf16.mxu0 %v5746_v25  ;;  %v5771_v25 = vld [vmem:[#allocation9 + $0x90] ss:$8 sps:$4 sm:$0xff]  }
 0x242   : > { %2449 = vmatpush1.bf16.msra.mxu1 %v5657_v18  ;;  %v5744_v18 = vld [vmem:[#allocation9] ss:$8 sps:$4 sm:$0xff]  }
 0x243   : > { %2450 = vmatprep.subr.bf16.mxu1 %v5662_v6  ;;  %3110 = vmatpush1.bf16.msra.mxu0 %v5744_v18  ;;  %v5774_v18 = vld [vmem:[#allocation9 + $0xa0] ss:$8 sps:$4 sm:$0xff]  }
 0x246   : > { %2451 = vmatpush1.bf16.msra.mxu1 %v5660_v27 }
 0x247   : > { %2452 = vmatprep.subr.bf16.mxu1 %v5665_v28 }
 0x24a   : > { %2453 = vmatpush1.bf16.msra.mxu1 %v5663_v29 }
 0x24b   : > { %2454 = vmatprep.subr.bf16.mxu1 %v5668_v7 }
 0x24e   : > { %2455 = vmatpush1.bf16.msra.mxu1 %v5666_v30 }
 0x24f   : > { %2456 = vmatprep.subr.bf16.mxu1 %v5671_v34 }
 0x252   : > { %2457 = vmatpush1.bf16.msra.mxu1 %v5669_v31  ;;  %v5749_v31 = vld [vmem:[#allocation9 + $0x14] ss:$8 sps:$4 sm:$0xff]  }
 0x253   : > { %2458 = vmatprep.subr.bf16.mxu1 %v5674_v32  ;;  %3111 = vmatprep.subr.bf16.mxu0 %v5749_v31  ;;  %v5783_v31 = vld [vmem:[#allocation9 + $0xd0] ss:$8 sps:$4 sm:$0xff]  }
 0x256   : > { %2459 = vmatpush1.bf16.msra.mxu1 %v5672_v51  ;;  %v5747_v51 = vld [vmem:[#allocation9 + $0x10] ss:$8 sps:$4 sm:$0xff]  }
 0x257   : > { %2460 = vmatprep.subr.bf16.mxu1 %v5677_v33  ;;  %3112 = vmatpush1.bf16.msra.mxu0 %v5747_v51  ;;  %v5791_v51 = vld [vmem:[#allocation9 + $0xf4] ss:$8 sps:$4 sm:$0xff]  }
 0x25a   : > { %2461 = vmatpush1.bf16.msra.mxu1 %v5675_v35 }
 0x25b   : > { %2462 = vmatprep.subr.bf16.mxu1 %v5680_v36 }
 0x25e   : > { %2463 = vmatpush1.bf16.msra.mxu1 %v5678_v37 }
 0x25f   : > { %2464 = vmatprep.subr.bf16.mxu1 %v5683_v38 }
 0x262   : > { %2465 = vmatpush1.bf16.msra.mxu1 %v5681_v39 }
 0x263   : > { %2466 = vmatprep.subr.bf16.mxu1 %v5686_v40  ;;  %v5752_v40 = vld [vmem:[#allocation9 + $0x24] ss:$8 sps:$4 sm:$0xff]  }
 0x264   : > { %3113 = vmatprep.subr.bf16.mxu0 %v5752_v40 }
 0x266   : > { %2467 = vmatpush1.bf16.msra.mxu1 %v5684_v41 }
 0x267   : > { %2468 = vmatprep.subr.bf16.mxu1 %v5689_v42 }
 0x26a   : > { %2469 = vmatpush1.bf16.msra.mxu1 %v5687_v43  ;;  %v5750_v43 = vld [vmem:[#allocation9 + $0x20] ss:$8 sps:$4 sm:$0xff]  }
 0x26b   : > { %2470 = vmatprep.subr.bf16.mxu1 %v5692_v44  ;;  %3114 = vmatpush1.bf16.msra.mxu0 %v5750_v43 }
 0x26e   : > { %2471 = vmatpush1.bf16.msra.mxu1 %v5690_v45 }
 0x26f   : > { %2472 = vmatprep.subr.bf16.mxu1 %v5695_v46 }
 0x272   : > { %2473 = vmatpush1.bf16.msra.mxu1 %v5693_v47 }
 0x273   : > { %2483 = vmatprep.subr.bf16.mxu1 %v5698_v48 }
 0x275   : > { %2475 = vmatmul.mubr.bf16.vlgmr.msra.gmra.mrb[4].mxu1 %v6987_v13  ;;  %v5711_v13 = vld [vmem:[#allocation3 + $0x6a8] ss:$16 sps:$4 sm:$0xff]  }
 0x276   : > { %2484 = vmatpush1.bf16.msra.mxu1 %v5696_v49  ;;  %2515 = vmatprep.mubr.bf16.mxu1 %v6996_v19 }
 0x277   : > { %2485 = vmatprep.subr.bf16.mxu1 %v5701_v50  ;;  %v5755_v50 = vld [vmem:[#allocation9 + $0x34] ss:$8 sps:$4 sm:$0xff]  }
 0x278   : > { %3115 = vmatprep.subr.bf16.mxu0 %v5755_v50 }
 0x27a   : > { %2486 = vmatpush1.bf16.msra.mxu1 %v5699_v52 }
 0x27b   : > { %2487 = vmatprep.subr.bf16.mxu1 %v5704_v53 }
 0x27e   : > { %2488 = vmatpush1.bf16.msra.mxu1 %v5702_v54  ;;  %v5753_v54 = vld [vmem:[#allocation9 + $0x30] ss:$8 sps:$4 sm:$0xff]  }
 0x27f   : > { %2489 = vmatprep.subr.bf16.mxu1 %v5707_v55  ;;  %3116 = vmatpush1.bf16.msra.mxu0 %v5753_v54 }
 0x282   : > { %2490 = vmatpush1.bf16.msra.mxu1 %v5705_v56 }
 0x283   : > { %2491 = vmatprep.subr.bf16.mxu1 %v5710_v57 }
 0x286   : > { %2492 = vmatpush1.bf16.msra.mxu1 %v5708_v58 }
 0x287   : > { %2493 = vmatprep.subr.bf16.mxu1 %v5713_v59 }
 0x288   : > { %v2230_v61 = vpop.f32.mrb[0].mxu1 }
 0x289   : > { %v2232_v19 = vpop.f32.mrb[1].mxu1 }
 0x28a   : > { %v2234_v62 = vpop.f32.mrb[2].mxu1  ;;  %2494 = vmatpush1.bf16.msra.mxu1 %v5711_v13 }
 0x28b   : > { %v2235_v0 = vpop.f32.mrb[3].mxu1  ;;  %2495 = vmatprep.subr.bf16.mxu1 %v5716_v60  ;;  %v5758_v60 = vld [vmem:[#allocation9 + $0x44] ss:$8 sps:$4 sm:$0xff]   ;;  %v5756_v62 = vld [vmem:[#allocation9 + $0x40] ss:$8 sps:$4 sm:$0xff]  }
 0x28c   : > { %3117 = vmatprep.subr.bf16.mxu0 %v5758_v60 }
 0x28d   : > { %3118 = vmatpush1.bf16.msra.mxu0 %v5756_v62 }
 0x28e   : > { %2496 = vmatpush1.bf16.msra.mxu1 %v5714_v63 }
 0x28f   : > { %2497 = vmatprep.subr.bf16.mxu1 %v5719_v1 }
 0x292   : > { %2498 = vmatpush1.bf16.msra.mxu1 %v5717_v2 }
 0x293   : > { %2499 = vmatprep.subr.bf16.mxu1 %v5722_v3 }
 0x296   : > { %2500 = vmatpush1.bf16.msra.mxu1 %v5720_v4  ;;  %v5761_v4 = vld [vmem:[#allocation9 + $0x54] ss:$8 sps:$4 sm:$0xff]  }
 0x297   : > { %2501 = vmatprep.subr.bf16.mxu1 %v5725_v5  ;;  %3119 = vmatprep.subr.bf16.mxu0 %v5761_v4 }
 0x29a   : > { %2502 = vmatpush1.bf16.msra.mxu1 %v5723_v8  ;;  %v5759_v8 = vld [vmem:[#allocation9 + $0x50] ss:$8 sps:$4 sm:$0xff]  }
 0x29b   : > { %2503 = vmatprep.subr.bf16.mxu1 %v5728_v9  ;;  %3120 = vmatpush1.bf16.msra.mxu0 %v5759_v8 }
 0x29e   : > { %2504 = vmatpush1.bf16.msra.mxu1 %v5726_v10 }
 0x29f   : > { %2505 = vmatprep.subr.bf16.mxu1 %v5731_v11  ;;  %v5764_v11 = vld [vmem:[#allocation9 + $0x64] ss:$8 sps:$4 sm:$0xff]  }
 0x2a0   : > { %3121 = vmatprep.subr.bf16.mxu0 %v5764_v11 }
 0x2a2   : > { %2506 = vmatpush1.bf16.msra.mxu1 %v5729_v12  ;;  %v5762_v12 = vld [vmem:[#allocation9 + $0x60] ss:$8 sps:$4 sm:$0xff]  }
 0x2a3   : > { %2507 = vmatprep.subr.bf16.mxu1 %v5734_v14  ;;  %3122 = vmatpush1.bf16.msra.mxu0 %v5762_v12  ;;  %v5767_v14 = vld [vmem:[#allocation9 + $0x74] ss:$8 sps:$4 sm:$0xff]  }
 0x2a4   : > { %3123 = vmatprep.subr.bf16.mxu0 %v5767_v14 }
 0x2a6   : > { %2508 = vmatpush1.bf16.msra.mxu1 %v5732_v15  ;;  %v5765_v15 = vld [vmem:[#allocation9 + $0x70] ss:$8 sps:$4 sm:$0xff]  }
 0x2a7   : > { %2509 = vmatprep.subr.bf16.mxu1 %v5737_v16  ;;  %3124 = vmatpush1.bf16.msra.mxu0 %v5765_v15  ;;  %v5770_v16 = vld [vmem:[#allocation9 + $0x84] ss:$8 sps:$4 sm:$0xff]  }
 0x2a8   : > { %3125 = vmatprep.subr.bf16.mxu0 %v5770_v16  ;;  %v6490_v16 = vmov 1966171168  }
 0x2aa   : > { %2510 = vmatpush1.bf16.msra.mxu1 %v5735_v17  ;;  %v5768_v17 = vld [vmem:[#allocation9 + $0x80] ss:$8 sps:$4 sm:$0xff]  }
 0x2ab   : > { %2511 = vmatprep.subr.bf16.mxu1 %v5740_v20  ;;  %3126 = vmatpush1.bf16.msra.mxu0 %v5768_v17  ;;  %v2610_v17 = vunpack.c.l.s4 %v6490_v16  ;;  %v5812_v16 = vld [vmem:[#allocation9 + $0x164] ss:$8 sps:$4 sm:$0xff]  }
 0x2ae   : > { %2512 = vmatpush1.bf16.msra.mxu1 %v5738_v22 }
 0x2af   : > { %2513 = vmatprep.subr.bf16.mxu1 %v5743_v23 }
 0x2b2   : > { %2514 = vmatpush1.bf16.msra.mxu1 %v5741_v24  ;;  %v5773_v24 = vld [vmem:[#allocation9 + $0x94] ss:$8 sps:$4 sm:$0xff]  }
 0x2b3   : > { %3127 = vmatprep.subr.bf16.mxu0 %v5773_v24  ;;  %v2612_v24 = vlaneseq }
 0x2b4   : > { %3128 = vmatpush1.bf16.msra.mxu0 %v5771_v25  ;;  %v2611_v25 = vunpack.c.0.s8 %v2610_v17  ;;  %v5810_v17 = vld [vmem:[#allocation9 + $0x160] ss:$8 sps:$4 sm:$0xff]  }
 0x2b5   : > { %2516 = vmatmul.mubr.bf16.vlgmr.msra.gmra.mrb[4].mxu1 %v7004_v21 }
 0x309   : > { %v2353_v26 = vpop.f32.mrb[0].mxu0 }
 0x30a   : > { %v7012_v6 = vadd.f32 %v2353_v26, %v2230_v61  ;;  %v2355_v27 = vpop.f32.mrb[1].mxu0  ;;  %v5776_v26 = vld [vmem:[#allocation9 + $0xa4] ss:$8 sps:$4 sm:$0xff]  }
 0x30b   : > { %v7014_v28 = vadd.f32 %v2355_v27, %v2232_v19  ;;  %v2357_v29 = vpop.f32.mrb[2].mxu0  ;;  %3129 = vmatprep.subr.bf16.mxu0 %v5776_v26  ;;  %v5779_v27 = vld [vmem:[#allocation9 + $0xb4] ss:$8 sps:$4 sm:$0xff]   ;;  %v2613_v26 = vshrl.u32 %v2612_v24, 7 }
 0x30c   : > { %v2526_v7 = vrot.slane %v7012_v6, 4  ;;  %v2555_v30 = vmul.f32 %v7012_v6, %v7012_v6  ;;  %v2358_v34 = vpop.f32.mrb[3].mxu0  ;;  %3130 = vmatpush1.bf16.msra.mxu0 %v5774_v18  ;;  %v5777_v29 = vld [vmem:[#allocation9 + $0xb0] ss:$8 sps:$4 sm:$0xff]   ;;  %v5815_v24 = vld [vmem:[#allocation9 + $0x174] ss:$8 sps:$4 sm:$0xff]  }
 0x30d   : > { %v2532_v21 = vrot.slane %v7014_v28, 4  ;;  %v2556_v32 = vmul.f32 %v7014_v28, %v7014_v28  ;;  %3131 = vmatprep.subr.bf16.mxu0 %v5779_v27  ;;  %v5785_v34 = vld [vmem:[#allocation9 + $0xd4] ss:$8 sps:$4 sm:$0xff]   ;;  %v7050_v27 = vsub.s32 %v2611_v25, %v2613_v26  ;;  %v5813_v25 = vld [vmem:[#allocation9 + $0x170] ss:$8 sps:$4 sm:$0xff]  }
 0x30e   : > { %v2527_v33 = vadd.f32 %v7012_v6, %v2526_v7  ;;  %v2559_v35 = vrot.slane %v2555_v30, 4  ;;  %v5782_v7 = vld [vmem:[#allocation9 + $0xc4] ss:$8 sps:$4 sm:$0xff]  }
 0x30f   : > { %v2533_v36 = vadd.f32 %v7014_v28, %v2532_v21  ;;  %v2565_v37 = vrot.slane %v2556_v32, 4  ;;  %v5788_v21 = vld [vmem:[#allocation9 + $0xe4] ss:$8 sps:$4 sm:$0xff]  }
 0x310   : > { %v2528_v38 = vrot.slane %v2527_v33, 2  ;;  %v2560_v39 = vadd.f32 %v2559_v35, %v2555_v30  ;;  %3132 = vmatpush1.bf16.msra.mxu0 %v5777_v29  ;;  %v5780_v30 = vld [vmem:[#allocation9 + $0xc0] ss:$8 sps:$4 sm:$0xff]   ;;  %v5794_v35 = vld [vmem:[#allocation9 + $0x104] ss:$8 sps:$4 sm:$0xff]  }
 0x311   : > { %v2534_v41 = vrot.slane %v2533_v36, 2  ;;  %v2566_v42 = vadd.f32 %v2565_v37, %v2556_v32  ;;  %3133 = vmatprep.subr.bf16.mxu0 %v5782_v7  ;;  %v5786_v32 = vld [vmem:[#allocation9 + $0xe0] ss:$8 sps:$4 sm:$0xff]  }
 0x312   : > { %v2529_v44 = vadd.f32 %v2528_v38, %v2527_v33  ;;  %v2561_v45 = vrot.slane %v2560_v39, 2  ;;  %v5789_v33 = vld [vmem:[#allocation9 + $0xf0] ss:$8 sps:$4 sm:$0xff]  }
 0x313   : > { %v2535_v46 = vadd.f32 %v2534_v41, %v2533_v36  ;;  %v2567_v47 = vrot.slane %v2566_v42, 2 }
 0x314   : > { %v2530_v48 = vrot.slane %v2529_v44, 1  ;;  %v2562_v49 = vadd.f32 %v2561_v45, %v2560_v39  ;;  %3134 = vmatpush1.bf16.msra.mxu0 %v5780_v30 }
 0x315   : > { %v2536_v52 = vrot.slane %v2535_v46, 1  ;;  %v2568_v53 = vadd.f32 %v2567_v47, %v2566_v42  ;;  %3135 = vmatprep.subr.bf16.mxu0 %v5785_v34 }
 0x316   : > { %v2531_v55 = vadd.f32 %v2530_v48, %v2529_v44  ;;  %v2563_v56 = vrot.slane %v2562_v49, 1 }
 0x317   : > { %v2537_v57 = vadd.f32 %v2536_v52, %v2535_v46  ;;  %v2569_v58 = vrot.slane %v2568_v53, 1 }
 0x318   : > { %v7024_v59 = vmul.f32 0.125, %v2531_v55  ;;  %v2564_v13 = vadd.f32 %v2563_v56, %v2562_v49  ;;  %3136 = vmatpush1.bf16.msra.mxu0 %v5783_v31 }
 0x319   : > { %v7026_v61 = vmul.f32 0.125, %v2537_v57  ;;  %v2570_v19 = vadd.f32 %v2569_v58, %v2568_v53  ;;  %3137 = vmatprep.subr.bf16.mxu0 %v5788_v21  ;;  %v2524_v21 = vld [vmem:[#allocation6] sm:$0xf] }
 0x31a   : > { %v2583_v63 = vmul.f32 0.125, %v2564_v13  ;;  %v2587_v0 = vmul.f32 %v7024_v59, %v7024_v59 }
 0x31b   : > { %v2584_v1 = vmul.f32 0.125, %v2570_v19  ;;  %v2588_v2 = vmul.f32 %v7026_v61, %v7026_v61 }
 0x31c   : > { %v2591_v3 = vsub.f32 %v2583_v63, %v2587_v0  ;;  %3138 = vmatpush1.bf16.msra.mxu0 %v5786_v32  ;;  %v7057_v32 = vsub.s32 0, %v2613_v26 }
 0x31d   : > { %v2592_v5 = vsub.f32 %v2584_v1, %v2588_v2  ;;  %3139 = vmatprep.subr.bf16.mxu0 %v5791_v51 }
 0x31e   : > { %v2595_v9 = vadd.f32 1e-05, %v2591_v3 }
 0x31f   : > { %v2596_v10 = vadd.f32 1e-05, %v2592_v5 }
 0x320   : > { %5856 = vrsqrt.f32 %v2595_v9  ;;  %3140 = vmatpush1.bf16.msra.mxu0 %v5789_v33  ;;  %v2644_v33 = vsub.s32 2, %v2613_v26 }
 0x321   : > { %5858 = vrsqrt.f32 %v2596_v10  ;;  %3150 = vmatprep.subr.bf16.mxu0 %v5794_v35  ;;  %v2648_v35 = vsub.s32 3, %v2613_v26 }
 0x32a   : > { %v7032_v20 = vpop.eup %5856 }
 0x32b   : > { %v7034_v22 = vpop.eup %5858 }
 0x32c   : > { %v2607_v23 = vcombine.low %v7032_v20, %v7034_v22 }
 0x32e   : > { %v2615_v30 = vrot.slane %v2607_v23, %v7050_v27 }
 0x388   : > { %v7038_v36 = vpop.f32.mrb[4].mxu1 }
 0x389   : > { %v2538_v37 = vrot.slane %v7038_v36, 4  ;;  %v2557_v38 = vmul.f32 %v7038_v36, %v7038_v36  ;;  %v7043_v39 = vpop.f32.mrb[5].mxu1 }
 0x38a   : > { %v2544_v40 = vrot.slane %v7043_v39, 4  ;;  %v2558_v41 = vmul.f32 %v7043_v39, %v7043_v39  ;;  %v2521_v42 = vpop.f32.mrb[6].mxu1 }
 0x38b   : > { %v2539_v43 = vadd.f32 %v2538_v37, %v7038_v36  ;;  %v2571_v44 = vrot.slane %v2557_v38, 4  ;;  %v2522_v45 = vpop.f32.mrb[7].mxu1  ;;  %v7060_v37 = vsub.s32 1, %v2613_v26  ;;  %v5818_v26 = vld [vmem:[#allocation9 + $0x184] ss:$8 sps:$4 sm:$0xff]  }
 0x38c   : > { %v2545_v46 = vadd.f32 %v2544_v40, %v7043_v39  ;;  %v2577_v47 = vrot.slane %v2558_v41, 4 }
 0x38d   : > { %v2540_v48 = vrot.slane %v2539_v43, 2  ;;  %v2572_v49 = vadd.f32 %v2571_v44, %v2557_v38 }
 0x38e   : > { %v2546_v50 = vrot.slane %v2545_v46, 2  ;;  %v2578_v52 = vadd.f32 %v2577_v47, %v2558_v41 }
 0x38f   : > { %v2541_v53 = vadd.f32 %v2540_v48, %v2539_v43  ;;  %v2573_v54 = vrot.slane %v2572_v49, 2 }
 0x390   : > { %v2547_v55 = vadd.f32 %v2546_v50, %v2545_v46  ;;  %v2579_v56 = vrot.slane %v2578_v52, 2 }
 0x391   : > { %v2542_v57 = vrot.slane %v2541_v53, 1  ;;  %v2574_v58 = vadd.f32 %v2573_v54, %v2572_v49 }
 0x392   : > { %v2548_v13 = vrot.slane %v2547_v55, 1  ;;  %v2580_v60 = vadd.f32 %v2579_v56, %v2578_v52 }
 0x393   : > { %v2543_v19 = vadd.f32 %v2542_v57, %v2541_v53  ;;  %v2575_v62 = vrot.slane %v2574_v58, 1 }
 0x394   : > { %v2549_v63 = vadd.f32 %v2548_v13, %v2547_v55  ;;  %v2581_v0 = vrot.slane %v2580_v60, 1  ;;  %v2525_v55 = vld [vmem:[#allocation8] sm:$0xf] }
 0x395   : > { %v2553_v1 = vmul.f32 0.125, %v2543_v19  ;;  %v2576_v2 = vadd.f32 %v2575_v62, %v2574_v58 }
 0x396   : > { %v2554_v3 = vmul.f32 0.125, %v2549_v63  ;;  %v2582_v4 = vadd.f32 %v2581_v0, %v2580_v60  ;;  %v5792_v0 = vld [vmem:[#allocation9 + $0x100] ss:$8 sps:$4 sm:$0xff]  }
 0x397   : > { %v2585_v5 = vmul.f32 0.125, %v2576_v2  ;;  %v2589_v8 = vmul.f32 %v2553_v1, %v2553_v1  ;;  %v5797_v2 = vld [vmem:[#allocation9 + $0x114] ss:$8 sps:$4 sm:$0xff]  }
 0x398   : > { %v2586_v9 = vmul.f32 0.125, %v2582_v4  ;;  %v2590_v10 = vmul.f32 %v2554_v3, %v2554_v3  ;;  %v5795_v4 = vld [vmem:[#allocation9 + $0x110] ss:$8 sps:$4 sm:$0xff]  }
 0x399   : > { %v2593_v11 = vsub.f32 %v2585_v5, %v2589_v8  ;;  %v5800_v5 = vld [vmem:[#allocation9 + $0x124] ss:$8 sps:$4 sm:$0xff]   ;;  %v5798_v8 = vld [vmem:[#allocation9 + $0x120] ss:$8 sps:$4 sm:$0xff]  }
 0x39a   : > { %v2594_v12 = vsub.f32 %v2586_v9, %v2590_v10  ;;  %v5803_v9 = vld [vmem:[#allocation9 + $0x134] ss:$8 sps:$4 sm:$0xff]   ;;  %v5801_v10 = vld [vmem:[#allocation9 + $0x130] ss:$8 sps:$4 sm:$0xff]  }
 0x39b   : > { %v2597_v14 = vadd.f32 1e-05, %v2593_v11  ;;  %v5806_v11 = vld [vmem:[#allocation9 + $0x144] ss:$8 sps:$4 sm:$0xff]  }
 0x39c   : > { %v2598_v15 = vadd.f32 1e-05, %v2594_v12  ;;  %v5804_v12 = vld [vmem:[#allocation9 + $0x140] ss:$8 sps:$4 sm:$0xff]  }
 0x39d   : > { %5860 = vrsqrt.f32 %v2597_v14  ;;  %v5809_v14 = vld [vmem:[#allocation9 + $0x154] ss:$8 sps:$4 sm:$0xff]  }
 0x39e   : > { %5862 = vrsqrt.f32 %v2598_v15  ;;  %v5807_v15 = vld [vmem:[#allocation9 + $0x150] ss:$8 sps:$4 sm:$0xff]  }
 0x3a7   : > { %v5861_v18 = vpop.eup %5860 }
 0x3a8   : > { %v5863_v29 = vpop.eup %5862 }
 0x3a9   : > { %v2608_v7 = vcombine.low %v5861_v18, %v5863_v29  ;;  %v5816_v18 = vld [vmem:[#allocation9 + $0x180] ss:$8 sps:$4 sm:$0xff]   ;;  %v5821_v29 = vld [vmem:[#allocation9 + $0x194] ss:$8 sps:$4 sm:$0xff]  }
 0x3ab   : > { %v2622_v34 = vrot.slane %v2608_v7, %v7050_v27  ;;  %v5819_v7 = vld [vmem:[#allocation9 + $0x190] ss:$8 sps:$4 sm:$0xff]  }
 0x3ad   : > { %v2623_v31 = vcombine.low %v2615_v30, %v2622_v34  ;;  %v5824_v30 = vld [vmem:[#allocation9 + $0x1a4] ss:$8 sps:$4 sm:$0xff]   ;;  %v5822_v34 = vld [vmem:[#allocation9 + $0x1a0] ss:$8 sps:$4 sm:$0xff]  }
 0x3af   : > { %v2630_v51 = vrot.slane %v2623_v31, %v7050_v27  ;;  %v5827_v31 = vld [vmem:[#allocation9 + $0x1b4] ss:$8 sps:$4 sm:$0xff]  }
 0x3b1   : > { %v2632_v38 = vmul.f32 %v2630_v51, %v2524_v21  ;;  %v5825_v21 = vld [vmem:[#allocation9 + $0x1b0] ss:$8 sps:$4 sm:$0xff]   ;;  %v5830_v51 = vld [vmem:[#allocation9 + $0x1c4] ss:$8 sps:$4 sm:$0xff]  }
 0x3b3   : > { %v2645_v40 = vrot.slane %v2632_v38, %v2644_v33  ;;  %v2649_v41 = vrot.slane %v2632_v38, %v2648_v35  ;;  %v2637_v42 = vrot.slane %v2632_v38, %v7057_v32  ;;  %v2641_v20 = vrot.slane %v2632_v38, %v7060_v37  ;;  %v5831_v38 = vld [vmem:[#allocation9 + $0x1d0] ss:$8 sps:$4 sm:$0xff]  }
 0x3b5   : > { %v2656_v22 = vmul.f32 %v2645_v40, %v2553_v1  ;;  %v2657_v23 = vmul.f32 %v2649_v41, %v2554_v3  ;;  %v2691_v43 = vmul.f32 %v2649_v41, %v7043_v39  ;;  %v2654_v44 = vmul.f32 %v2637_v42, %v7024_v59  ;;  %v5834_v41 = vld [vmem:[#allocation9 + $0x1e0] ss:$8 sps:$4 sm:$0xff]  }
 0x3b6   : > { %v2655_v45 = vmul.f32 %v2641_v20, %v7026_v61  ;;  %v2689_v46 = vmul.f32 %v7014_v28, %v2641_v20  ;;  %v2688_v47 = vmul.f32 %v7012_v6, %v2637_v42  ;;  %v2690_v48 = vmul.f32 %v2645_v40, %v7038_v36  ;;  %v5836_v40 = vld [vmem:[#allocation9 + $0x1e4] ss:$8 sps:$4 sm:$0xff]   ;;  %v5839_v42 = vld [vmem:[#allocation9 + $0x1f4] ss:$8 sps:$4 sm:$0xff]   ;;  %v5837_v20 = vld [vmem:[#allocation9 + $0x1f0] ss:$8 sps:$4 sm:$0xff]  }
 0x3b7   : > { %v2663_v49 = vcombine.low %v2656_v22, %v2657_v23 }
 0x3b8   : > { %v2662_v50 = vcombine.low %v2654_v44, %v2655_v45  ;;  %v5841_v44 = vld [vmem:[#allocation14] sm:$0xff]   ;;  %v5842_v45 = vld [vmem:[#allocation14 + $0x48] sm:$0xff]  }
 0x3b9   : > { %v2677_v52 = vrot.slane %v2663_v49, %v7050_v27  ;;  %v5846_v49 = vld [vmem:[#allocation14 + $0x58] sm:$0xff]  }
 0x3ba   : > { %v2670_v53 = vrot.slane %v2662_v50, %v7050_v27  ;;  %v5847_v50 = vld [vmem:[#allocation14 + $0x18] sm:$0xff]  }
 0x3bc   : > { %v2678_v54 = vcombine.low %v2670_v53, %v2677_v52  ;;  %v5848_v52 = vld [vmem:[#allocation14 + $0x60] sm:$0xff]  }
 0x3bd   : > { %v5849_v53 = vld [vmem:[#allocation14 + $0x20] sm:$0xff]  }
 0x3be   : > { %v2685_v39 = vrot.slane %v2678_v54, %v7050_v27  ;;  %v5850_v54 = vld [vmem:[#allocation14 + $0x68] sm:$0xff]  }
 0x3c0   : > { %v2687_v56 = vsub.f32 %v2525_v55, %v2685_v39  ;;  %v5851_v55 = vld [vmem:[#allocation14 + $0x28] sm:$0xff]   ;;  %v5852_v39 = vld [vmem:[#allocation14 + $0x70] sm:$0xff]  }
 0x3c2   : > { %v2700_v59 = vrot.slane %v2687_v56, %v7060_v37  ;;  %v2696_v61 = vrot.slane %v2687_v56, %v7057_v32  ;;  %v2708_v28 = vrot.slane %v2687_v56, %v2648_v35  ;;  %v2704_v57 = vrot.slane %v2687_v56, %v2644_v33  ;;  %v5828_v33 = vld [vmem:[#allocation9 + $0x1c0] ss:$8 sps:$4 sm:$0xff]   ;;  %v5833_v35 = vld [vmem:[#allocation9 + $0x1d4] ss:$8 sps:$4 sm:$0xff]  }
 0x3c3   : > { %v5853_v56 = vld [vmem:[#allocation14 + $0x30] sm:$0xff]  }
 0x3c4   : > { %v2714_v6 = vadd.f32 %v2700_v59, %v2689_v46  ;;  %v2713_v58 = vadd.f32 %v2696_v61, %v2688_v47  ;;  %v2716_v36 = vadd.f32 %v2708_v28, %v2691_v43  ;;  %v7075_v13 = vadd.f32 %v2704_v57, %v2690_v48  ;;  %v5840_v43 = vld [vmem:[#allocation14 + $0x40] sm:$0xff]   ;;  %v5843_v46 = vld [vmem:[#allocation14 + $0x8] sm:$0xff]   ;;  %v5844_v47 = vld [vmem:[#allocation14 + $0x50] sm:$0xff]  }
 0x3c5   : > { %5114 = vmatprep.subr.bf16.mxu1 %v5840_v43  ;;  %v5845_v48 = vld [vmem:[#allocation14 + $0x10] sm:$0xff]   ;;  %v5854_v59 = vld [vmem:[#allocation14 + $0x78] sm:$0xff]  }
 0x3c6   : > { %v2718_v60 = vmax.f32 %v2714_v6, 0.0  ;;  %v2717_v19 = vmax.f32 %v2713_v58, 0.0  ;;  %v2720_v62 = vmax.f32 %v2716_v36, 0.0  ;;  %v2719_v22 = vmax.f32 %v7075_v13, 0.0  ;;  %5115 = vmatpush3.bf16.msra.mxu1 %v5841_v44  ;;  %v5855_v61 = vld [vmem:[#allocation14 + $0x38] sm:$0xff]  }
 0x3c7   : > { %5116 = vmatprep.subr.bf16.mxu1 %v5842_v45 }
 0x3c8   : > { %v2722_v63 = vpack.c.bf16 %v2718_v60, %v2718_v60  ;;  %v2721_v1 = vpack.c.bf16 %v2717_v19, %v2717_v19  ;;  %v2724_v3 = vpack.c.bf16 %v2720_v62, %v2720_v62  ;;  %v2723_v23 = vpack.c.bf16 %v2719_v22, %v2719_v22 }
 0x3ca   : > { %3141 = vmatprep.mubr.bf16.mxu0 %v2722_v63  ;;  %5117 = vmatpush3.bf16.msra.mxu1 %v5843_v46 }
 0x3cb   : > { %3142 = vmatmul.mubr.bf16.vlgmr.msra.gmra.mrb[4].mxu0 %v2721_v1  ;;  %5118 = vmatprep.subr.bf16.mxu1 %v5844_v47 }
 0x3cc   : > { %3151 = vmatpush1.bf16.msra.mxu0 %v5792_v0  ;;  %3182 = vmatprep.mubr.bf16.mxu0 %v2724_v3 }
 0x3cd   : > { %3152 = vmatprep.subr.bf16.mxu0 %v5797_v2 }
 0x3ce   : > { %5119 = vmatpush3.bf16.msra.mxu1 %v5845_v48 }
 0x3cf   : > { %5120 = vmatprep.subr.bf16.mxu1 %v5846_v49 }
 0x3d0   : > { %3153 = vmatpush1.bf16.msra.mxu0 %v5795_v4 }
 0x3d1   : > { %3154 = vmatprep.subr.bf16.mxu0 %v5800_v5 }
 0x3d2   : > { %5121 = vmatpush3.bf16.msra.mxu1 %v5847_v50 }
 0x3d3   : > { %5122 = vmatprep.subr.bf16.mxu1 %v5848_v52 }
 0x3d4   : > { %3155 = vmatpush1.bf16.msra.mxu0 %v5798_v8 }
 0x3d5   : > { %3156 = vmatprep.subr.bf16.mxu0 %v5803_v9 }
 0x3d6   : > { %5123 = vmatpush3.bf16.msra.mxu1 %v5849_v53 }
 0x3d7   : > { %5124 = vmatprep.subr.bf16.mxu1 %v5850_v54  ;;  %v3192_v54 = vld [vmem:[#allocation12] sm:$0x3] }
 0x3d8   : > { %3157 = vmatpush1.bf16.msra.mxu0 %v5801_v10 }
 0x3d9   : > { %3158 = vmatprep.subr.bf16.mxu0 %v5806_v11 }
 0x3da   : > { %5125 = vmatpush3.bf16.msra.mxu1 %v5851_v55 }
 0x3db   : > { %5126 = vmatprep.subr.bf16.mxu1 %v5852_v39 }
 0x3dc   : > { %3159 = vmatpush1.bf16.msra.mxu0 %v5804_v12 }
 0x3dd   : > { %3160 = vmatprep.subr.bf16.mxu0 %v5809_v14 }
 0x3de   : > { %5127 = vmatpush3.bf16.msra.mxu1 %v5853_v56 }
 0x3df   : > { %5128 = vmatprep.subr.bf16.mxu1 %v5854_v59 }
 0x3e0   : > { %3161 = vmatpush1.bf16.msra.mxu0 %v5807_v15 }
 0x3e1   : > { %3162 = vmatprep.subr.bf16.mxu0 %v5812_v16 }
 0x3e2   : > { %5129 = vmatpush3.bf16.msra.mxu1 %v5855_v61 }
 0x3e4   : > { %3163 = vmatpush1.bf16.msra.mxu0 %v5810_v17 }
 0x3e5   : > { %3164 = vmatprep.subr.bf16.mxu0 %v5815_v24 }
 0x3e8   : > { %3165 = vmatpush1.bf16.msra.mxu0 %v5813_v25 }
 0x3e9   : > { %3166 = vmatprep.subr.bf16.mxu0 %v5818_v26 }
 0x3ec   : > { %3167 = vmatpush1.bf16.msra.mxu0 %v5816_v18 }
 0x3ed   : > { %3168 = vmatprep.subr.bf16.mxu0 %v5821_v29 }
 0x3f0   : > { %3169 = vmatpush1.bf16.msra.mxu0 %v5819_v7 }
 0x3f1   : > { %3170 = vmatprep.subr.bf16.mxu0 %v5824_v30 }
 0x3f4   : > { %3171 = vmatpush1.bf16.msra.mxu0 %v5822_v34 }
 0x3f5   : > { %3172 = vmatprep.subr.bf16.mxu0 %v5827_v31 }
 0x3f8   : > { %3173 = vmatpush1.bf16.msra.mxu0 %v5825_v21 }
 0x3f9   : > { %3174 = vmatprep.subr.bf16.mxu0 %v5830_v51 }
 0x3fc   : > { %3175 = vmatpush1.bf16.msra.mxu0 %v5828_v33 }
 0x3fd   : > { %3176 = vmatprep.subr.bf16.mxu0 %v5833_v35 }
 0x400   : > { %3177 = vmatpush1.bf16.msra.mxu0 %v5831_v38 }
 0x401   : > { %3178 = vmatprep.subr.bf16.mxu0 %v5836_v40 }
 0x404   : > { %3179 = vmatpush1.bf16.msra.mxu0 %v5834_v41 }
 0x405   : > { %3180 = vmatprep.subr.bf16.mxu0 %v5839_v42 }
 0x408   : > { %3181 = vmatpush1.bf16.msra.mxu0 %v5837_v20 }
 0x40b   : > { %3183 = vmatmul.mubr.bf16.vlgmr.msra.gmra.mrb[4].mxu0 %v2723_v23  ;;  %v3191_v23 = vld [vmem:[#allocation11] sm:$0x3] }
 0x4de   : > { %v3184_v28 = vpop.f32.mrb[4].mxu0 }
 0x4df   : > { %v3193_v57 = vrot.slane %v3184_v28, 4  ;;  %v3207_v6 = vmul.f32 %v3184_v28, %v3184_v28  ;;  %v3186_v58 = vpop.f32.mrb[5].mxu0 }
 0x4e0   : > { %v3199_v36 = vrot.slane %v3186_v58, 4  ;;  %v3208_v13 = vmul.f32 %v3186_v58, %v3186_v58  ;;  %v3188_v60 = vpop.f32.mrb[6].mxu0 }
 0x4e1   : > { %v3194_v19 = vadd.f32 %v3193_v57, %v3184_v28  ;;  %v3209_v62 = vrot.slane %v3207_v6, 4  ;;  %v3189_v63 = vpop.f32.mrb[7].mxu0 }
 0x4e2   : > { %v3200_v0 = vadd.f32 %v3199_v36, %v3186_v58  ;;  %v3215_v1 = vrot.slane %v3208_v13, 4 }
 0x4e3   : > { %v3195_v2 = vrot.slane %v3194_v19, 2  ;;  %v3210_v3 = vadd.f32 %v3209_v62, %v3207_v6 }
 0x4e4   : > { %v3201_v4 = vrot.slane %v3200_v0, 2  ;;  %v3216_v5 = vadd.f32 %v3215_v1, %v3208_v13 }
 0x4e5   : > { %v3196_v8 = vadd.f32 %v3195_v2, %v3194_v19  ;;  %v3211_v9 = vrot.slane %v3210_v3, 2 }
 0x4e6   : > { %v3202_v10 = vadd.f32 %v3201_v4, %v3200_v0  ;;  %v3217_v11 = vrot.slane %v3216_v5, 2 }
 0x4e7   : > { %v3197_v12 = vrot.slane %v3196_v8, 1  ;;  %v3212_v14 = vadd.f32 %v3211_v9, %v3210_v3 }
 0x4e8   : > { %v3203_v15 = vrot.slane %v3202_v10, 1  ;;  %v3218_v16 = vadd.f32 %v3217_v11, %v3216_v5 }
 0x4e9   : > { %v3198_v17 = vadd.f32 %v3197_v12, %v3196_v8  ;;  %v3213_v24 = vrot.slane %v3212_v14, 1 }
 0x4ea   : > { %v3204_v25 = vadd.f32 %v3203_v15, %v3202_v10  ;;  %v3219_v26 = vrot.slane %v3218_v16, 1 }
 0x4eb   : > { %v3205_v18 = vmul.f32 0.125, %v3198_v17  ;;  %v3214_v29 = vadd.f32 %v3213_v24, %v3212_v14 }
 0x4ec   : > { %v3206_v7 = vmul.f32 0.125, %v3204_v25  ;;  %v3220_v30 = vadd.f32 %v3219_v26, %v3218_v16  ;;  %v3469_v25 = vld [vmem:[#allocation15] sm:$0x1] }
 0x4ed   : > { %v3221_v34 = vmul.f32 0.125, %v3214_v29  ;;  %v3223_v31 = vmul.f32 %v3205_v18, %v3205_v18  ;;  %v3470_v29 = vld [vmem:[#allocation17] sm:$0x1] }
 0x4ee   : > { %v3222_v21 = vmul.f32 0.125, %v3220_v30  ;;  %v3224_v51 = vmul.f32 %v3206_v7, %v3206_v7 }
 0x4ef   : > { %v3225_v33 = vsub.f32 %v3221_v34, %v3223_v31 }
 0x4f0   : > { %v3226_v35 = vsub.f32 %v3222_v21, %v3224_v51 }
 0x4f1   : > { %v3227_v38 = vadd.f32 1e-05, %v3225_v33 }
 0x4f2   : > { %v3228_v40 = vadd.f32 1e-05, %v3226_v35 }
 0x4f3   : > { %5864 = vrsqrt.f32 %v3227_v38 }
 0x4f4   : > { %5866 = vrsqrt.f32 %v3228_v40 }
 0x4fd   : > { %v5865_v41 = vpop.eup %5864 }
 0x4fe   : > { %v5867_v42 = vpop.eup %5866 }
 0x4ff   : > { %v3233_v20 = vcombine.low %v5865_v41, %v5867_v42 }
 0x501   : > { %v3240_v22 = vrot.slane %v3233_v20, %v7050_v27 }
 0x503   : > { %v3247_v43 = vrot.slane %v3240_v22, %v7050_v27 }
 0x505   : > { %v3249_v44 = vmul.f32 %v3247_v43, %v3191_v23 }
 0x507   : > { %v3254_v45 = vrot.slane %v3249_v44, %v7057_v32  ;;  %v3258_v46 = vrot.slane %v3249_v44, %v7060_v37 }
 0x509   : > { %v3261_v47 = vmul.f32 %v3254_v45, %v3205_v18  ;;  %v3262_v48 = vmul.f32 %v3258_v46, %v3206_v7  ;;  %v3283_v49 = vmul.f32 %v3258_v46, %v3186_v58  ;;  %v3282_v50 = vmul.f32 %v3254_v45, %v3184_v28 }
 0x50b   : > { %v3265_v52 = vcombine.low %v3261_v47, %v3262_v48 }
 0x50d   : > { %v3272_v53 = vrot.slane %v3265_v52, %v7050_v27 }
 0x50f   : > { %v3279_v55 = vrot.slane %v3272_v53, %v7050_v27 }
 0x511   : > { %v3281_v39 = vsub.f32 %v3192_v54, %v3279_v55 }
 0x513   : > { %v3292_v56 = vrot.slane %v3281_v39, %v7060_v37  ;;  %v3288_v59 = vrot.slane %v3281_v39, %v7057_v32 }
 0x515   : > { %v3296_v61 = vadd.f32 %v3292_v56, %v3283_v49  ;;  %v3295_v57 = vadd.f32 %v3288_v59, %v3282_v50 }
 0x517   : > { %v3298_v6 = vmax.f32 %v3296_v61, 0.0  ;;  %v3297_v36 = vmax.f32 %v3295_v57, 0.0 }
 0x519   : > { %v3300_v13 = vpack.c.bf16 %v3298_v6, %v3298_v6  ;;  %v3299_v60 = vpack.c.bf16 %v3297_v36, %v3297_v36 }
 0x51b   : > { %3461 = vmatprep.mubr.bf16.mxu1 %v3300_v13 }
 0x51c   : > { %3462 = vmatmul.mubr.bf16.vlgmr.msra.gmra.mrb[8].mxu1 %v3299_v60 }
 0x5ef   : > { %v5130_v28 = vpop.f32.mrb[8].mxu1 }
 0x5f0   : > { %v5131_v58 = vpop.f32.mrb[9].mxu1 }
 0x5f1   : > { %v5132_v19 = vadd.f32 %v5131_v58, %v5130_v28  ;;  %v5133_v62 = vpop.f32.mrb[10].mxu1 }
 0x5f2   : > { %v5134_v63 = vpop.f32.mrb[11].mxu1 }
 0x5f3   : > { %v3471_v0 = vrot.slane %v5132_v19, 4  ;;  %v3478_v27 = vmul.f32 %v5132_v19, %v5132_v19 }
 0x5f5   : > { %v3472_v1 = vadd.f32 %v5132_v19, %v3471_v0  ;;  %v3479_v2 = vrot.slane %v3478_v27, 4 }
 0x5f7   : > { %v3473_v37 = vrot.slane %v3472_v1, 2  ;;  %v3480_v3 = vadd.f32 %v3479_v2, %v3478_v27 }
 0x5f9   : > { %v3474_v4 = vadd.f32 %v3473_v37, %v3472_v1  ;;  %v3481_v5 = vrot.slane %v3480_v3, 2 }
 0x5fb   : > { %v3475_v8 = vrot.slane %v3474_v4, 1  ;;  %v3482_v9 = vadd.f32 %v3481_v5, %v3480_v3 }
 0x5fd   : > { %v3476_v10 = vadd.f32 %v3475_v8, %v3474_v4  ;;  %v3483_v11 = vrot.slane %v3482_v9, 1 }
 0x5ff   : > { %v3477_v12 = vmul.f32 0.125, %v3476_v10  ;;  %v3484_v14 = vadd.f32 %v3483_v11, %v3482_v9 }
 0x601   : > { %v3485_v15 = vmul.f32 0.125, %v3484_v14  ;;  %v3486_v16 = vmul.f32 %v3477_v12, %v3477_v12 }
 0x603   : > { %v3487_v17 = vsub.f32 %v3485_v15, %v3486_v16 }
 0x605   : > { %v3488_v24 = vadd.f32 1e-05, %v3487_v17 }
 0x607   : > { %5868 = vrsqrt.f32 %v3488_v24 }
 0x611   : > { %v5869_v26 = vpop.eup %5868 }
 0x612   : > { %v3490_v18 = vmul.f32 %v5869_v26, %v3469_v25 }
 0x614   : > { %v3491_v7 = vmul.f32 %v3490_v18, %v3477_v12  ;;  %v3497_v30 = vrot.slane %v3490_v18, %v7057_v32 }
 0x616   : > { %v3492_v34 = vsub.f32 %v3470_v29, %v3491_v7  ;;  %v3499_v31 = vmul.f32 %v5132_v19, %v3497_v30 }
 0x618   : > { %v3504_v21 = vrot.slane %v3492_v34, %v7057_v32 }
 0x61a   : > { %v3506_v51 = vadd.f32 %v3504_v21, %v3499_v31 }
 0x61c   : > { %v3507_v33 = vmax.f32 %v3506_v51, 0.0 }
 0x61e   : > { %v3508_v35 = vpack.c.bf16 %v3507_v33, %v3507_v33 }
 0x620   : > { %3509 = vst [vmem:[#allocation2] sm:$0xf] %v3508_v35 }
 0x621 PF: > { %v5870_v38 = vld [vmem:[%s6943_s25 + $0x4] ss:$48 sps:$4 sm:$0xff]   ;;  %v5872_v40 = vld [vmem:[%s6943_s25 + $0xc] ss:$48 sps:$4 sm:$0xff]   ;;  %v6491_v41 = vmov 0   ;;  %s7388_s16 = sld [smem:[#allocation31_spill]] }
 0x622   : > { %4183 = vmatprep.mubr.bf16.mxu0 %v6491_v41  ;;  %4224 = vmatprep.mubr.bf16.mxu1 %v6491_v41  ;;  %v5874_v32 = vld [vmem:[%s6943_s25] ss:$48 sps:$4 sm:$0xff]   ;;  %v5875_v42 = vld [vmem:[%s6943_s25 + $0x8] ss:$48 sps:$4 sm:$0xff]   ;;  %v5876_v20 = vld [vmem:[%s6943_s25 + $0x64] ss:$48 sps:$4 sm:$0xff]  }
 0x623   : > { %4151 = vmatprep.subr.bf16.mxu0 %v5870_v38  ;;  %4192 = vmatprep.subr.bf16.mxu1 %v5872_v40  ;;  %v5878_v22 = vld [vmem:[%s6943_s25 + $0x6c] ss:$48 sps:$4 sm:$0xff]   ;;  %v5880_v23 = vld [vmem:[%s6943_s25 + $0x60] ss:$48 sps:$4 sm:$0xff]   ;;  %v5881_v43 = vld [vmem:[%s6943_s25 + $0x68] ss:$48 sps:$4 sm:$0xff]  }
 0x624   : > { %4152 = vmatpush1.bf16.msra.mxu0 %v5874_v32  ;;  %4193 = vmatpush1.bf16.msra.mxu1 %v5875_v42  ;;  %v5882_v44 = vld [vmem:[%s6943_s25 + $0xc4] ss:$48 sps:$4 sm:$0xff]   ;;  %v5884_v45 = vld [vmem:[%s6943_s25 + $0xcc] ss:$48 sps:$4 sm:$0xff]   ;;  %v5886_v46 = vld [vmem:[%s6943_s25 + $0xc0] ss:$48 sps:$4 sm:$0xff]  }
 0x625   : > { %4153 = vmatprep.subr.bf16.mxu0 %v5876_v20  ;;  %4194 = vmatprep.subr.bf16.mxu1 %v5878_v22  ;;  %v5887_v47 = vld [vmem:[%s6943_s25 + $0xc8] ss:$48 sps:$4 sm:$0xff]   ;;  %v5888_v48 = vld [vmem:[%s6943_s25 + $0x124] ss:$48 sps:$4 sm:$0xff]   ;;  %v5890_v49 = vld [vmem:[%s6943_s25 + $0x12c] ss:$48 sps:$4 sm:$0xff]  }
 0x626   : > { %v5892_v50 = vld [vmem:[%s6943_s25 + $0x120] ss:$48 sps:$4 sm:$0xff]   ;;  %v5893_v52 = vld [vmem:[%s6943_s25 + $0x128] ss:$48 sps:$4 sm:$0xff]   ;;  %v5894_v53 = vld [vmem:[%s6943_s25 + $0x184] ss:$48 sps:$4 sm:$0xff]  }
 0x627   : > { %v5896_v54 = vld [vmem:[%s6943_s25 + $0x18c] ss:$48 sps:$4 sm:$0xff]   ;;  %v5898_v55 = vld [vmem:[%s6943_s25 + $0x180] ss:$48 sps:$4 sm:$0xff]   ;;  %v5899_v39 = vld [vmem:[%s6943_s25 + $0x188] ss:$48 sps:$4 sm:$0xff]  }
 0x628   : > { %4154 = vmatpush1.bf16.msra.mxu0 %v5880_v23  ;;  %4195 = vmatpush1.bf16.msra.mxu1 %v5881_v43  ;;  %v5900_v56 = vld [vmem:[%s6943_s25 + $0x1e4] ss:$48 sps:$4 sm:$0xff]   ;;  %v5902_v59 = vld [vmem:[%s6943_s25 + $0x1ec] ss:$48 sps:$4 sm:$0xff]   ;;  %v5904_v61 = vld [vmem:[%s6943_s25 + $0x1e0] ss:$48 sps:$4 sm:$0xff]  }
 0x629   : > { %4155 = vmatprep.subr.bf16.mxu0 %v5882_v44  ;;  %4196 = vmatprep.subr.bf16.mxu1 %v5884_v45  ;;  %v5905_v57 = vld [vmem:[%s6943_s25 + $0x1e8] ss:$48 sps:$4 sm:$0xff]   ;;  %v5906_v6 = vld [vmem:[%s6943_s25 + $0x244] ss:$48 sps:$4 sm:$0xff]   ;;  %v5908_v36 = vld [vmem:[%s6943_s25 + $0x24c] ss:$48 sps:$4 sm:$0xff]  }
 0x62a   : > { %v5910_v13 = vld [vmem:[%s6943_s25 + $0x240] ss:$48 sps:$4 sm:$0xff]   ;;  %v5911_v60 = vld [vmem:[%s6943_s25 + $0x248] ss:$48 sps:$4 sm:$0xff]   ;;  %v5912_v28 = vld [vmem:[%s6943_s25 + $0x2a4] ss:$48 sps:$4 sm:$0xff]  }
 0x62b   : > { %v5914_v58 = vld [vmem:[%s6943_s25 + $0x2ac] ss:$48 sps:$4 sm:$0xff]   ;;  %v5916_v19 = vld [vmem:[%s6943_s25 + $0x2a0] ss:$48 sps:$4 sm:$0xff]   ;;  %v5917_v62 = vld [vmem:[%s6943_s25 + $0x2a8] ss:$48 sps:$4 sm:$0xff]  }
 0x62c   : > { %4156 = vmatpush1.bf16.msra.mxu0 %v5886_v46  ;;  %4197 = vmatpush1.bf16.msra.mxu1 %v5887_v47  ;;  %v5920_v63 = vld [vmem:[%s6943_s25 + $0x14] ss:$48 sps:$4 sm:$0xff]   ;;  %v5923_v0 = vld [vmem:[%s6943_s25 + $0x1c] ss:$48 sps:$4 sm:$0xff]   ;;  %v5918_v1 = vld [vmem:[%s6943_s25 + $0x10] ss:$48 sps:$4 sm:$0xff]  }
 0x62d   : > { %4157 = vmatprep.subr.bf16.mxu0 %v5888_v48  ;;  %4198 = vmatprep.subr.bf16.mxu1 %v5890_v49  ;;  %v7124_v27 = vld [vmem:[#allocation2] sm:$0xf]  ;;  %v5921_v2 = vld [vmem:[%s6943_s25 + $0x18] ss:$48 sps:$4 sm:$0xff]   ;;  %v5926_v37 = vld [vmem:[%s6943_s25 + $0x74] ss:$48 sps:$4 sm:$0xff]  }
 0x62e   : > { %v5929_v3 = vld [vmem:[%s6943_s25 + $0x7c] ss:$48 sps:$4 sm:$0xff]   ;;  %v5924_v4 = vld [vmem:[%s6943_s25 + $0x70] ss:$48 sps:$4 sm:$0xff]   ;;  %v5927_v5 = vld [vmem:[%s6943_s25 + $0x78] ss:$48 sps:$4 sm:$0xff]  }
 0x62f   : > { %v5932_v8 = vld [vmem:[%s6943_s25 + $0xd4] ss:$48 sps:$4 sm:$0xff]   ;;  %v5935_v9 = vld [vmem:[%s6943_s25 + $0xdc] ss:$48 sps:$4 sm:$0xff]   ;;  %v5930_v10 = vld [vmem:[%s6943_s25 + $0xd0] ss:$48 sps:$4 sm:$0xff]  }
 0x630   : > { %4158 = vmatpush1.bf16.msra.mxu0 %v5892_v50  ;;  %4199 = vmatpush1.bf16.msra.mxu1 %v5893_v52  ;;  %v5933_v11 = vld [vmem:[%s6943_s25 + $0xd8] ss:$48 sps:$4 sm:$0xff]   ;;  %v5938_v12 = vld [vmem:[%s6943_s25 + $0x134] ss:$48 sps:$4 sm:$0xff]   ;;  %v5941_v14 = vld [vmem:[%s6943_s25 + $0x13c] ss:$48 sps:$4 sm:$0xff]  }
 0x631   : > { %4159 = vmatprep.subr.bf16.mxu0 %v5894_v53  ;;  %4200 = vmatprep.subr.bf16.mxu1 %v5896_v54  ;;  %v5936_v15 = vld [vmem:[%s6943_s25 + $0x130] ss:$48 sps:$4 sm:$0xff]   ;;  %v5939_v16 = vld [vmem:[%s6943_s25 + $0x138] ss:$48 sps:$4 sm:$0xff]   ;;  %v5944_v17 = vld [vmem:[%s6943_s25 + $0x194] ss:$48 sps:$4 sm:$0xff]  }
 0x632   : > { %v5947_v24 = vld [vmem:[%s6943_s25 + $0x19c] ss:$48 sps:$4 sm:$0xff]   ;;  %v5942_v25 = vld [vmem:[%s6943_s25 + $0x190] ss:$48 sps:$4 sm:$0xff]   ;;  %v5945_v26 = vld [vmem:[%s6943_s25 + $0x198] ss:$48 sps:$4 sm:$0xff]  }
 0x633   : > { %v5950_v18 = vld [vmem:[%s6943_s25 + $0x1f4] ss:$48 sps:$4 sm:$0xff]   ;;  %v5953_v29 = vld [vmem:[%s6943_s25 + $0x1fc] ss:$48 sps:$4 sm:$0xff]   ;;  %v5948_v7 = vld [vmem:[%s6943_s25 + $0x1f0] ss:$48 sps:$4 sm:$0xff]  }
 0x634   : > { %4160 = vmatpush1.bf16.msra.mxu0 %v5898_v55  ;;  %4201 = vmatpush1.bf16.msra.mxu1 %v5899_v39  ;;  %v5951_v30 = vld [vmem:[%s6943_s25 + $0x1f8] ss:$48 sps:$4 sm:$0xff]   ;;  %v5956_v34 = vld [vmem:[%s6943_s25 + $0x254] ss:$48 sps:$4 sm:$0xff]   ;;  %v5959_v31 = vld [vmem:[%s6943_s25 + $0x25c] ss:$48 sps:$4 sm:$0xff]  }
 0x635   : > { %4161 = vmatprep.subr.bf16.mxu0 %v5900_v56  ;;  %4202 = vmatprep.subr.bf16.mxu1 %v5902_v59  ;;  %v5954_v21 = vld [vmem:[%s6943_s25 + $0x250] ss:$48 sps:$4 sm:$0xff]   ;;  %v5957_v51 = vld [vmem:[%s6943_s25 + $0x258] ss:$48 sps:$4 sm:$0xff]   ;;  %v5962_v33 = vld [vmem:[%s6943_s25 + $0x2b4] ss:$48 sps:$4 sm:$0xff]  }
 0x636   : > { %v5965_v35 = vld [vmem:[%s6943_s25 + $0x2bc] ss:$48 sps:$4 sm:$0xff]   ;;  %v5960_v38 = vld [vmem:[%s6943_s25 + $0x2b0] ss:$48 sps:$4 sm:$0xff]   ;;  %v5963_v40 = vld [vmem:[%s6943_s25 + $0x2b8] ss:$48 sps:$4 sm:$0xff]  }
 0x637   : > { %v5968_v32 = vld [vmem:[%s6943_s25 + $0x24] ss:$48 sps:$4 sm:$0xff]   ;;  %v5971_v42 = vld [vmem:[%s6943_s25 + $0x2c] ss:$48 sps:$4 sm:$0xff]   ;;  %v5966_v20 = vld [vmem:[%s6943_s25 + $0x20] ss:$48 sps:$4 sm:$0xff]  }
 0x638   : > { %4162 = vmatpush1.bf16.msra.mxu0 %v5904_v61  ;;  %4203 = vmatpush1.bf16.msra.mxu1 %v5905_v57  ;;  %v5969_v22 = vld [vmem:[%s6943_s25 + $0x28] ss:$48 sps:$4 sm:$0xff]   ;;  %v5974_v23 = vld [vmem:[%s6943_s25 + $0x84] ss:$48 sps:$4 sm:$0xff]   ;;  %v5977_v43 = vld [vmem:[%s6943_s25 + $0x8c] ss:$48 sps:$4 sm:$0xff]  }
 0x639   : > { %4163 = vmatprep.subr.bf16.mxu0 %v5906_v6  ;;  %4204 = vmatprep.subr.bf16.mxu1 %v5908_v36  ;;  %v5972_v44 = vld [vmem:[%s6943_s25 + $0x80] ss:$48 sps:$4 sm:$0xff]   ;;  %v5975_v45 = vld [vmem:[%s6943_s25 + $0x88] ss:$48 sps:$4 sm:$0xff]   ;;  %v5980_v46 = vld [vmem:[%s6943_s25 + $0xe4] ss:$48 sps:$4 sm:$0xff]  }
 0x63a   : > { %v5983_v47 = vld [vmem:[%s6943_s25 + $0xec] ss:$48 sps:$4 sm:$0xff]   ;;  %v5978_v48 = vld [vmem:[%s6943_s25 + $0xe0] ss:$48 sps:$4 sm:$0xff]   ;;  %v5981_v49 = vld [vmem:[%s6943_s25 + $0xe8] ss:$48 sps:$4 sm:$0xff]  }
 0x63b   : > { %v5986_v50 = vld [vmem:[%s6943_s25 + $0x144] ss:$48 sps:$4 sm:$0xff]   ;;  %v5989_v52 = vld [vmem:[%s6943_s25 + $0x14c] ss:$48 sps:$4 sm:$0xff]   ;;  %v5984_v53 = vld [vmem:[%s6943_s25 + $0x140] ss:$48 sps:$4 sm:$0xff]  }
 0x63c   : > { %4164 = vmatpush1.bf16.msra.mxu0 %v5910_v13  ;;  %4205 = vmatpush1.bf16.msra.mxu1 %v5911_v60  ;;  %v5987_v54 = vld [vmem:[%s6943_s25 + $0x148] ss:$48 sps:$4 sm:$0xff]   ;;  %v5995_v55 = vld [vmem:[%s6943_s25 + $0x1ac] ss:$48 sps:$4 sm:$0xff]   ;;  %v5990_v39 = vld [vmem:[%s6943_s25 + $0x1a0] ss:$48 sps:$4 sm:$0xff]  }
 0x63d   : > { %4165 = vmatprep.subr.bf16.mxu0 %v5912_v28  ;;  %4206 = vmatprep.subr.bf16.mxu1 %v5914_v58  ;;  %v5993_v56 = vld [vmem:[%s6943_s25 + $0x1a8] ss:$48 sps:$4 sm:$0xff]   ;;  %v5998_v59 = vld [vmem:[%s6943_s25 + $0x204] ss:$48 sps:$4 sm:$0xff]   ;;  %v6001_v61 = vld [vmem:[%s6943_s25 + $0x20c] ss:$48 sps:$4 sm:$0xff]  }
 0x63e   : > { %v5996_v57 = vld [vmem:[%s6943_s25 + $0x200] ss:$48 sps:$4 sm:$0xff]   ;;  %v5999_v6 = vld [vmem:[%s6943_s25 + $0x208] ss:$48 sps:$4 sm:$0xff]   ;;  %v6004_v36 = vld [vmem:[%s6943_s25 + $0x264] ss:$48 sps:$4 sm:$0xff]  }
 0x63f   : > { %v6007_v13 = vld [vmem:[%s6943_s25 + $0x26c] ss:$48 sps:$4 sm:$0xff]   ;;  %v6002_v60 = vld [vmem:[%s6943_s25 + $0x260] ss:$48 sps:$4 sm:$0xff]   ;;  %v6005_v28 = vld [vmem:[%s6943_s25 + $0x268] ss:$48 sps:$4 sm:$0xff]  }
 0x640   : > { %4166 = vmatpush1.bf16.msra.mxu0 %v5916_v19  ;;  %4207 = vmatpush1.bf16.msra.mxu1 %v5917_v62  ;;  %v6010_v58 = vld [vmem:[%s6943_s25 + $0x2c4] ss:$48 sps:$4 sm:$0xff]   ;;  %v6013_v19 = vld [vmem:[%s6943_s25 + $0x2cc] ss:$48 sps:$4 sm:$0xff]   ;;  %v6008_v62 = vld [vmem:[%s6943_s25 + $0x2c0] ss:$48 sps:$4 sm:$0xff]  }
 0x641   : > { %4233 = vmatprep.subr.bf16.mxu0 %v5920_v63  ;;  %4274 = vmatprep.subr.bf16.mxu1 %v5923_v0  ;;  %v6011_v63 = vld [vmem:[%s6943_s25 + $0x2c8] ss:$48 sps:$4 sm:$0xff]   ;;  %v3611_v0 = vlaneseq  ;;  %s7389_s18 = sld [smem:[#allocation30_spill]]  ;;  %s5107_s4 = sshll.u32 %s7388_s16, 1 }
 0x642   : > { %s4438_s8 = sshll.u32 %s6953_s28, 4  ;;  %s7390_s21 = sld [smem:[#allocation47_spill]]  ;;  %s7244_s8 = int_to_ptr.vmem [resolvable:$true] %s4438_s8 }
 0x643   : > { %4184 = vmatmul.mubr.bf16.vlgmr.msra.gmra.mrb[0].mxu0 %v7124_v27  ;;  %4225 = vmatmul.mubr.bf16.vlgmr.msra.gmra.mrb[0].mxu1 %v7124_v27  ;;  %s4422_s20 = scalar_lea.sflag [#allocation5], %s6940_s0  ;;  %s6350_s6 = scalar_lea.vmem %s7244_s8, 1536 }
 0x644   : > { %4234 = vmatpush1.bf16.msra.mxu0 %v5918_v1  ;;  %4275 = vmatpush1.bf16.msra.mxu1 %v5921_v2  ;;  %v7198_v1 = vshrl.u32 %v3611_v0, 7  ;;  %p6351_p9 = scmp.ne.s32.totalorder %s7244_s8, %s6350_s6  ;;  %p7392_p8 = scmp.ne.s32.totalorder %s7360_s19, 0 }
 0x645   : > { %4235 = vmatprep.subr.bf16.mxu0 %v5926_v37  ;;  %4276 = vmatprep.subr.bf16.mxu1 %v5929_v3  ;;  %v3607_v3 = vld [vmem:[%s6951_s15] sm:$0xff]  ;;  %s6492_s30 = smov [#allocation21]  }
 0x646   : > { %4265 = vmatprep.mubr.bf16.mxu0 %v6491_v41  ;;  %4306 = vmatprep.mubr.bf16.mxu1 %v6491_v41  ;;  %v3613_v2 = vsub.s32 0, %v7198_v1  ;;  %v3621_v37 = vsub.s32 2, %v7198_v1  ;;  %p6352_p11 = pnand %p6351_p9, %p7392_p8  ;;  %s6354_s14 = sshll.u32 %s6492_s30, 4  ;;  %s6355_s14 = int_to_ptr.vmem [resolvable:$false] %s6354_s14 }
 0x647   : > { %s4430_s27 = sadd.s32 %s7389_s18, %s5107_s4  ;;  %s6356_s11 = scalar_lea.vmem %s6355_s14, 3072 }
 0x648   : > { %4236 = vmatpush1.bf16.msra.mxu0 %v5924_v4  ;;  %4277 = vmatpush1.bf16.msra.mxu1 %v5927_v5  ;;  %v3617_v4 = vsub.s32 1, %v7198_v1  ;;  %v3625_v5 = vsub.s32 3, %v7198_v1  ;;  %s5113_s12 = smul.u32 1536, %s4430_s27  ;;  %p6353_p6 = pneg %p6352_p11 }
 0x649   : > { %4237 = vmatprep.subr.bf16.mxu0 %v5932_v8  ;;  %4278 = vmatprep.subr.bf16.mxu1 %v5935_v9  ;;  %v3614_v8 = vrot.slane %v3607_v3, %v3613_v2  ;;  %v3622_v9 = vrot.slane %v3607_v3, %v3621_v37  ;;  %p6357_p1 = scmp.lt.s32.totalorder %s7244_s8, %s6355_s14  ;;  %p6358_p10 = scmp.lt.s32.totalorder %s6356_s11, %s6350_s6 }
 0x64a   : > { %s7242_s13 = scalar_lea.hbm %s7390_s21, %s5113_s12 }
 0x64b   : > { %p6359_p12 = por %p6358_p10, %p6357_p1 }
 0x64c   : > { %4238 = vmatpush1.bf16.msra.mxu0 %v5930_v10  ;;  %4279 = vmatpush1.bf16.msra.mxu1 %v5933_v11  ;;  %v3626_v10 = vrot.slane %v3607_v3, %v3625_v5 }
 0x64d   : > { %4239 = vmatprep.subr.bf16.mxu0 %v5938_v12  ;;  %4280 = vmatprep.subr.bf16.mxu1 %v5941_v14  ;;  %p6360_p3 = pnand %p6359_p12, %p6353_p6 }
 0x650   : > { %4240 = vmatpush1.bf16.msra.mxu0 %v5936_v15  ;;  %4281 = vmatpush1.bf16.msra.mxu1 %v5939_v16 }
 0x651   : > { %4241 = vmatprep.subr.bf16.mxu0 %v5944_v17  ;;  %4282 = vmatprep.subr.bf16.mxu1 %v5947_v24 }
 0x654   : > { %4242 = vmatpush1.bf16.msra.mxu0 %v5942_v25  ;;  %4283 = vmatpush1.bf16.msra.mxu1 %v5945_v26 }
 0x655   : > { %4243 = vmatprep.subr.bf16.mxu0 %v5950_v18  ;;  %4284 = vmatprep.subr.bf16.mxu1 %v5953_v29 }
 0x658   : > { %4244 = vmatpush1.bf16.msra.mxu0 %v5948_v7  ;;  %4285 = vmatpush1.bf16.msra.mxu1 %v5951_v30 }
 0x659   : > { %4245 = vmatprep.subr.bf16.mxu0 %v5956_v34  ;;  %4286 = vmatprep.subr.bf16.mxu1 %v5959_v31 }
 0x65c   : > { %4246 = vmatpush1.bf16.msra.mxu0 %v5954_v21  ;;  %4287 = vmatpush1.bf16.msra.mxu1 %v5957_v51  ;;  %v3629_v51 = vsub.s32 4, %v7198_v1 }
 0x65d   : > { %4247 = vmatprep.subr.bf16.mxu0 %v5962_v33  ;;  %4288 = vmatprep.subr.bf16.mxu1 %v5965_v35  ;;  %v3637_v33 = vsub.s32 6, %v7198_v1  ;;  %v3633_v35 = vsub.s32 5, %v7198_v1 }
 0x660   : > { %4248 = vmatpush1.bf16.msra.mxu0 %v5960_v38  ;;  %4289 = vmatpush1.bf16.msra.mxu1 %v5963_v40  ;;  %v3641_v38 = vsub.s32 7, %v7198_v1  ;;  %v3630_v40 = vrot.slane %v3607_v3, %v3629_v51 }
 0x661   : > { %4315 = vmatprep.subr.bf16.mxu0 %v5968_v32  ;;  %4356 = vmatprep.subr.bf16.mxu1 %v5971_v42  ;;  %v3638_v32 = vrot.slane %v3607_v3, %v3637_v33  ;;  %v3634_v42 = vrot.slane %v3607_v3, %v3633_v35 }
 0x663   : > { %4266 = vmatmul.mubr.bf16.vlgmr.msra.gmra.mrb[4].mxu0 %v7124_v27  ;;  %4307 = vmatmul.mubr.bf16.vlgmr.msra.gmra.mrb[4].mxu1 %v7124_v27 }
 0x664   : > { %4316 = vmatpush1.bf16.msra.mxu0 %v5966_v20  ;;  %4357 = vmatpush1.bf16.msra.mxu1 %v5969_v22  ;;  %v3642_v20 = vrot.slane %v3607_v3, %v3641_v38 }
 0x665   : > { %4317 = vmatprep.subr.bf16.mxu0 %v5974_v23  ;;  %4358 = vmatprep.subr.bf16.mxu1 %v5977_v43 }
 0x666   : > { %4347 = vmatprep.mubr.bf16.mxu0 %v6491_v41  ;;  %4388 = vmatprep.mubr.bf16.mxu1 %v6491_v41  ;;  %v5992_v41 = vld [vmem:[%s6943_s25 + $0x1a4] ss:$48 sps:$4 sm:$0xff]  }
 0x668   : > { %4318 = vmatpush1.bf16.msra.mxu0 %v5972_v44  ;;  %4359 = vmatpush1.bf16.msra.mxu1 %v5975_v45 }
 0x669   : > { %4319 = vmatprep.subr.bf16.mxu0 %v5980_v46  ;;  %4360 = vmatprep.subr.bf16.mxu1 %v5983_v47 }
 0x66c   : > { %4320 = vmatpush1.bf16.msra.mxu0 %v5978_v48  ;;  %4361 = vmatpush1.bf16.msra.mxu1 %v5981_v49 }
 0x66d   : > { %4321 = vmatprep.subr.bf16.mxu0 %v5986_v50  ;;  %4362 = vmatprep.subr.bf16.mxu1 %v5989_v52 }
 0x670   : > { %4322 = vmatpush1.bf16.msra.mxu0 %v5984_v53  ;;  %4363 = vmatpush1.bf16.msra.mxu1 %v5987_v54 }
 0x671   : > { %4323 = vmatprep.subr.bf16.mxu0 %v5992_v41  ;;  %4364 = vmatprep.subr.bf16.mxu1 %v5995_v55 }
 0x674   : > { %4324 = vmatpush1.bf16.msra.mxu0 %v5990_v39  ;;  %4365 = vmatpush1.bf16.msra.mxu1 %v5993_v56  ;;  %v3608_v56 = vld [vmem:[%s6951_s15 + $0x8] sm:$0xf]  ;;  %s7391_s15 = smov %s7390_s21 }
 0x675   : > { %4325 = vmatprep.subr.bf16.mxu0 %v5998_v59  ;;  %4366 = vmatprep.subr.bf16.mxu1 %v6001_v61  ;;  %v3646_v59 = vrot.slane %v3608_v56, %v3613_v2  ;;  %v3654_v61 = vrot.slane %v3608_v56, %v3621_v37 }
 0x678   : > { %4326 = vmatpush1.bf16.msra.mxu0 %v5996_v57  ;;  %4367 = vmatpush1.bf16.msra.mxu1 %v5999_v6  ;;  %v3650_v57 = vrot.slane %v3608_v56, %v3617_v4  ;;  %v3658_v6 = vrot.slane %v3608_v56, %v3625_v5 }
 0x679   : > { %4327 = vmatprep.subr.bf16.mxu0 %v6004_v36  ;;  %4368 = vmatprep.subr.bf16.mxu1 %v6007_v13 }
 0x67c   : > { %4328 = vmatpush1.bf16.msra.mxu0 %v6002_v60  ;;  %4369 = vmatpush1.bf16.msra.mxu1 %v6005_v28 }
 0x67d   : > { %4329 = vmatprep.subr.bf16.mxu0 %v6010_v58  ;;  %4370 = vmatprep.subr.bf16.mxu1 %v6013_v19 }
 0x680   : > { %4330 = vmatpush1.bf16.msra.mxu0 %v6008_v62  ;;  %4371 = vmatpush1.bf16.msra.mxu1 %v6011_v63 }
 0x683   : > { %4348 = vmatmul.mubr.bf16.vlgmr.msra.gmra.mrb[8].mxu0 %v7124_v27  ;;  %4389 = vmatmul.mubr.bf16.vlgmr.msra.gmra.mrb[8].mxu1 %v7124_v27  ;;  %v3618_v27 = vrot.slane %v3607_v3, %v3617_v4 }
 0x716   : > { %v4185_v11 = vpop.f32.mrb[0].mxu0  ;;  %v4226_v12 = vpop.f32.mrb[0].mxu1 }
 0x717   : > { %v4186_v14 = vadd.f32 %v4185_v11, %v3614_v8  ;;  %v4227_v15 = vadd.f32 %v4226_v12, %v3622_v9  ;;  %v4187_v16 = vpop.f32.mrb[1].mxu0  ;;  %v4228_v17 = vpop.f32.mrb[1].mxu1 }
 0x718   : > { %v4188_v24 = vadd.f32 %v4187_v16, %v3618_v27  ;;  %v4229_v25 = vadd.f32 %v4228_v17, %v3626_v10  ;;  %v4189_v26 = vpop.f32.mrb[2].mxu0  ;;  %v4230_v18 = vpop.f32.mrb[2].mxu1 }
 0x719   : > { %6014 = vtanh.f32 %v4186_v14  ;;  %v4190_v29 = vpop.f32.mrb[3].mxu0  ;;  %v4231_v7 = vpop.f32.mrb[3].mxu1 }
 0x71a   : > { %6016 = vtanh.f32 %v4227_v15 }
 0x71b   : > { %6018 = vtanh.f32 %v4188_v24 }
 0x71c   : > { %6020 = vtanh.f32 %v4229_v25 }
 0x723   : > { %v6015_v30 = vpop.eup %6014 }
 0x724   : > { %v6017_v34 = vpop.eup %6016  ;;  %4409 = vst [vmem:[%s6953_s28] sm:$0xff] %v6015_v30 }
 0x725   : > { %v6019_v31 = vpop.eup %6018  ;;  %4411 = vst [vmem:[%s6953_s28 + $0x10] sm:$0xff] %v6017_v34 }
 0x726   : > { %v6021_v21 = vpop.eup %6020  ;;  %4410 = vst [vmem:[%s6953_s28 + $0x8] sm:$0xff] %v6019_v31 }
 0x727   : > { %4412 = vst [vmem:[%s6953_s28 + $0x18] sm:$0xff] %v6021_v21 }
 0x736   : > { %v4267_v22 = vpop.f32.mrb[4].mxu0  ;;  %v4308_v23 = vpop.f32.mrb[4].mxu1 }
 0x737   : > { %v4268_v43 = vadd.f32 %v4267_v22, %v3630_v40  ;;  %v4309_v44 = vadd.f32 %v4308_v23, %v3638_v32  ;;  %v4269_v45 = vpop.f32.mrb[5].mxu0  ;;  %v4310_v46 = vpop.f32.mrb[5].mxu1 }
 0x738   : > { %v4270_v47 = vadd.f32 %v4269_v45, %v3634_v42  ;;  %v4311_v48 = vadd.f32 %v4310_v46, %v3642_v20  ;;  %v4271_v49 = vpop.f32.mrb[6].mxu0  ;;  %v4312_v50 = vpop.f32.mrb[6].mxu1 }
 0x739   : > { %6022 = vtanh.f32 %v4268_v43  ;;  %v4272_v52 = vpop.f32.mrb[7].mxu0  ;;  %v4313_v53 = vpop.f32.mrb[7].mxu1 }
 0x73a   : > { %6024 = vtanh.f32 %v4309_v44 }
 0x73b   : > { %6026 = vtanh.f32 %v4270_v47 }
 0x73c   : > { %6028 = vtanh.f32 %v4311_v48 }
 0x743   : > { %v6023_v54 = vpop.eup %6022 }
 0x744   : > { %v6025_v41 = vpop.eup %6024  ;;  %4413 = vst [vmem:[%s6953_s28 + $0x20] sm:$0xff] %v6023_v54 }
 0x745   : > { %v6027_v55 = vpop.eup %6026  ;;  %4415 = vst [vmem:[%s6953_s28 + $0x30] sm:$0xff] %v6025_v41 }
 0x746   : > { %v6029_v39 = vpop.eup %6028  ;;  %4414 = vst [vmem:[%s6953_s28 + $0x28] sm:$0xff] %v6027_v55 }
 0x747   : > { %4416 = vst [vmem:[%s6953_s28 + $0x38] sm:$0xff] %v6029_v39 }
 0x756   : > { %v4349_v36 = vpop.f32.mrb[8].mxu0  ;;  %v4390_v13 = vpop.f32.mrb[8].mxu1 }
 0x757   : > { %v4350_v60 = vadd.f32 %v4349_v36, %v3646_v59  ;;  %v4391_v28 = vadd.f32 %v4390_v13, %v3654_v61  ;;  %v4351_v58 = vpop.f32.mrb[9].mxu0  ;;  %v4392_v19 = vpop.f32.mrb[9].mxu1 }
 0x758   : > { %v4352_v62 = vadd.f32 %v4351_v58, %v3650_v57  ;;  %v4393_v63 = vadd.f32 %v4392_v19, %v3658_v6  ;;  %v4353_v0 = vpop.f32.mrb[10].mxu0  ;;  %v4394_v2 = vpop.f32.mrb[10].mxu1 }
 0x759   : > { %6030 = vtanh.f32 %v4350_v60  ;;  %v4354_v37 = vpop.f32.mrb[11].mxu0  ;;  %v4395_v3 = vpop.f32.mrb[11].mxu1 }
 0x75a   : > { %6032 = vtanh.f32 %v4391_v28 }
 0x75b   : > { %6034 = vtanh.f32 %v4352_v62 }
 0x75c   : > { %6036 = vtanh.f32 %v4393_v63 }
 0x763   : > { %v6031_v1 = vpop.eup %6030 }
 0x764   : > { %v6033_v4 = vpop.eup %6032  ;;  %4417 = vst [vmem:[%s6953_s28 + $0x40] sm:$0xff] %v6031_v1 }
 0x765   : > { %v6035_v5 = vpop.eup %6034  ;;  %4419 = vst [vmem:[%s6953_s28 + $0x50] sm:$0xff] %v6033_v4 }
 0x766   : > { %v6037_v8 = vpop.eup %6036  ;;  %4418 = vst [vmem:[%s6953_s28 + $0x48] sm:$0xff] %v6035_v5 }
 0x767   : > { %4420 = vst [vmem:[%s6953_s28 + $0x58] sm:$0xff] %v6037_v8 }
 0x768   : > { %6363 = shalt.err (!%p6360_p3)
}
 0x769   : > { %s6364_s0 = scalar_lea.hbm %s7242_s13, 1536  ;;  %s6368_s29 = scalar_lea.hbm %s7391_s15, 6144 }
 0x76a   : > { %p6365_p2 = scmp.ne.s32.totalorder %s7242_s13, %s6364_s0  ;;  %p6369_p13 = scmp.lt.u32.totalorder %s7242_s13, %s7391_s15 }
 0x76b   : > { %p6370_p0 = scmp.lt.u32.totalorder %s6368_s29, %s6364_s0  ;;  %p6372_p9 = scmp.lt.u32.totalorder %s6364_s0, %s7242_s13 }
 0x76c   : > { %p6366_p4 = pnand %p6365_p2, %p7392_p8 }
 0x76d   : > { %p6371_p5 = por %p6370_p0, %p6369_p13 }
 0x76e   : > { %p6367_p7 = pneg %p6366_p4 }
 0x76f   : > { %p6373_p11 = por %p6372_p9, %p6371_p5 }
 0x771   : > { %p6374_p6 = pnand %p6373_p11, %p6367_p7 }
 0x773   : > { %6377 = shalt.err (!%p6374_p6)
}
 0x774   : > { %5207 = dma.vmem_to_hbm [thread:$0]  (%p7392_p8), %s7244_s8, 1536, %s7242_s13, %s4422_s20  }
 0x775 PF: > { %s7393_s18 = sld [smem:[#allocation34_spill]]  ;;  %s7394_s4 = sld [smem:[#allocation29_spill]] }
 0x776   : > { %s7395_s27 = sld [smem:[#allocation38_spill]] }
 0x77b   : > { %p5267_p1 = scmp.ge.s32.totalorder %s7393_s18, 2  ;;  %s4450_s12 = sand.u32 1, %s7394_s4  }
 0x77c   : > { %p7396_p10 = scmp.ne.s32.totalorder %s7395_s27, 0  ;;  %s4451_s25 = scalar_lea.sflag [#allocation5], %s4450_s12 }
 0x77e   : > { %p5245_p12 = pnand %p5267_p1, %p7396_p10 }
 0x780   : > { %6435 = dma.done.wait (!%p5245_p12), %s4451_s25, 1536  }
 0x781   : > { %6437 = vsyncadd (!%p5245_p12), %s4451_s25, 4294965760  ;;  %s33_s28 = sadd.s32 1, %s7393_s18   ;;  %s7397_s19 = sld [smem:[#allocation39_spill]] }
 0x782   : > { %p30_p3 = scmp.ge.s32.totalorder %s33_s28, 6   ;;  %s7398_s24 = sld [smem:[#allocation32_spill]] }
 0x783   : > { %s7399_s25 = sld [smem:[#allocation33_spill]]  ;;  %s7400_s26 = sld [smem:[#allocation36_spill]] }
 0x784   : > { %s7401_s27 = sld [smem:[#allocation37_spill]]  ;;  %s7402_s21 = smov %s6444_s22 }
 0x785   : > { %s7403_s22 = smov %s6448_s23  ;;  %32 = sbr.rel (!%p30_p3) target bundleno = 21 (0x15), region = 165 }
 0x787   : > { %s7404_s23 = smov %s7397_s19 }
 0x78c   :  { %4456 = vsyncpa [#allocation4], 1 }
 0x78d   :  { %4458 = vsyncpa [#allocation4 + $0x1], 1 }
 0x78e   :  { %4459 = vsyncpa [#allocation7], 1 }
 0x78f   :  { %4460 = vsyncpa [#allocation10], 1 }
 0x790   :  { %4461 = vsyncpa [#allocation13], 1 }
 0x791   :  { %4462 = vsyncpa [#allocation16], 1 }
 0x792   :  { %4463 = vsyncpa [#allocation19], 1 }
 0x793   :  { %4465 = vsyncpa [#allocation19 + $0x1], 1 }
 0x794   :  { %4466 = vsyncpa [#allocation5], 1 }
 0x795   :  { %4468 = vsyncpa [#allocation5 + $0x1], 1 }

</bundles_post_ra>
